<compile_context>
chip_gen: v6e
topology: v6e:2x2x1
jax: 0.10.0
libtpu: 0.0.40
codegen_flags: <defaults>
</compile_context>

<pallas_src>
import functools
import math

import jax
import jax.numpy as jnp
from jax.experimental import pallas as pl
from jax.experimental.pallas import tpu as pltpu


# ---------------------------------------------------------------------------
# shared math helpers (used inside Pallas kernels and in the JAX reference)
# ---------------------------------------------------------------------------

def _layernorm(x, gamma, beta, eps):
    """LayerNorm over the last dim (biased variance, like torch.nn.LayerNorm)."""
    mean = jnp.mean(x, axis=-1, keepdims=True)
    xc = x - mean                                     # reused for var AND normalize
    var = jnp.mean(xc * xc, axis=-1, keepdims=True)
    return xc * jax.lax.rsqrt(var + eps) * gamma + beta


def _gelu_tanh(x):
    """tanh-approximate GELU (HF 'gelu_new'); tanh lowers to the TPU EUP."""
    c = math.sqrt(2.0 / math.pi)
    return 0.5 * x * (1.0 + jnp.tanh(c * (x + 0.044715 * x * x * x)))


def _mha_core(x, kv_src, gamma, beta, wq_ref, wk_ref, wv_ref, wo_ref, *,
              num_heads, use_query_residual, eps):
    """Fused LN -> per-head QKV -> softmax(QK^T/sqrt(d)) V -> output projection
    (+ optional query residual) on a single 2-D (Lq, Cq)/(Lkv, Ckv) slab."""
    x_ln = _layernorm(x, gamma, beta, eps)
    kv = x_ln if kv_src is None else kv_src           # self-attn: K/V from LN'd queries
    lq = x.shape[0]
    v_channels = wo_ref.shape[2]
    d_qk = wq_ref.shape[2]
    scale = 1.0 / math.sqrt(d_qk)

    acc = jnp.zeros((lq, v_channels), jnp.float32)
    for h in range(num_heads):                         # static, fully unrolled
        qh = jnp.dot(x_ln, wq_ref[h], preferred_element_type=jnp.float32)
        kh = jnp.dot(kv, wk_ref[h], preferred_element_type=jnp.float32)
        vh = jnp.dot(kv, wv_ref[h], preferred_element_type=jnp.float32)
        # scores: contract the head dim directly (no transpose materialization)
        s = jax.lax.dot_general(qh, kh, (((1,), (1,)), ((), ())),
                                preferred_element_type=jnp.float32) * scale
        s = s - jnp.max(s, axis=-1, keepdims=True)
        e = jnp.exp(s)
        p = e / jnp.sum(e, axis=-1, keepdims=True)
        ctx_h = jnp.dot(p, vh, preferred_element_type=jnp.float32)
        # concat-of-heads @ Wo  ==  sum_h ctx_h @ Wo[h]
        acc = acc + jnp.dot(ctx_h, wo_ref[h], preferred_element_type=jnp.float32)
    if use_query_residual:
        acc = acc + x
    return acc


def _mlp_core(x, gamma, beta, w1, w2, eps):
    """SMALayer feed-forward: gelu(LN(x) @ W1) @ W2 + x."""
    x_ln = _layernorm(x, gamma, beta, eps)
    h = _gelu_tanh(jnp.dot(x_ln, w1, preferred_element_type=jnp.float32))
    return jnp.dot(h, w2, preferred_element_type=jnp.float32) + x


# ---------------------------------------------------------------------------
# Pallas kernels
# ---------------------------------------------------------------------------

def _layer_cross_kernel(x_ref, kv_ref, g1_ref, b1_ref, wq_ref, wk_ref, wv_ref,
                        wo_ref, g2_ref, b2_ref, w1_ref, w2_ref, o_ref, *,
                        num_heads, use_query_residual, eps):
    """Fused full SMALayer (cross-attention) for one batch element."""
    a = _mha_core(x_ref[...], kv_ref[...], g1_ref[...], b1_ref[...],
                  wq_ref, wk_ref, wv_ref, wo_ref,
                  num_heads=num_heads, use_query_residual=use_query_residual, eps=eps)
    o_ref[...] = _mlp_core(a, g2_ref[...], b2_ref[...], w1_ref[...], w2_ref[...], eps)


def _layer_self_kernel(x_ref, g1_ref, b1_ref, wq_ref, wk_ref, wv_ref,
                       wo_ref, g2_ref, b2_ref, w1_ref, w2_ref, o_ref, *,
                       num_heads, use_query_residual, eps):
    """Fused full SMALayer (self-attention) for one batch element."""
    a = _mha_core(x_ref[...], None, g1_ref[...], b1_ref[...],
                  wq_ref, wk_ref, wv_ref, wo_ref,
                  num_heads=num_heads, use_query_residual=use_query_residual, eps=eps)
    o_ref[...] = _mlp_core(a, g2_ref[...], b2_ref[...], w1_ref[...], w2_ref[...], eps)


def _attn_cross_kernel(x_ref, kv_ref, g_ref, b_ref, wq_ref, wk_ref, wv_ref,
                       wo_ref, o_ref, *, num_heads, use_query_residual, eps):
    o_ref[...] = _mha_core(x_ref[...], kv_ref[...], g_ref[...], b_ref[...],
                           wq_ref, wk_ref, wv_ref, wo_ref, num_heads=num_heads,
                           use_query_residual=use_query_residual, eps=eps)


def _attn_self_kernel(x_ref, g_ref, b_ref, wq_ref, wk_ref, wv_ref,
                      wo_ref, o_ref, *, num_heads, use_query_residual, eps):
    o_ref[...] = _mha_core(x_ref[...], None, g_ref[...], b_ref[...],
                           wq_ref, wk_ref, wv_ref, wo_ref, num_heads=num_heads,
                           use_query_residual=use_query_residual, eps=eps)


def _mlp_kernel(x_ref, g_ref, b_ref, w1_ref, w2_ref, o_ref, *, eps):
    o_ref[...] = _mlp_core(x_ref[...], g_ref[...], b_ref[...],
                           w1_ref[...], w2_ref[...], eps)


# ---------------------------------------------------------------------------
# wrappers (pallas_call with grids / BlockSpecs)
# ---------------------------------------------------------------------------

def _const_spec(shape):
    """A whole-array block that never changes across the (1-D) grid."""
    return pl.BlockSpec(shape, lambda b, _s=shape: tuple(0 for _ in _s))


def _split_heads(p, num_heads):
    """Pre-split projection weights per head (cheap, outside the kernel)."""
    wq, wk, wv, wo = p['wq'], p['wk'], p['wv'], p['wo']
    Cq, QK = wq.shape
    Ckv = wk.shape[0]
    V = wv.shape[1]
    dqk, dv = QK // num_heads, V // num_heads
    wq_h = wq.reshape(Cq, num_heads, dqk).transpose(1, 0, 2)     # (H, Cq, dqk)
    wk_h = wk.reshape(Ckv, num_heads, dqk).transpose(1, 0, 2)    # (H, Ckv, dqk)
    wv_h = wv.reshape(Ckv, num_heads, dv).transpose(1, 0, 2)     # (H, Ckv, dv)
    wo_h = wo.reshape(num_heads, dv, V)                          # (H, dv, V)
    return wq_h, wk_h, wv_h, wo_h


def _fused_fits_vmem(Lq, Cq, Lkv, Ckv, QK, V, F, budget_bytes=24 << 20):
    """Conservative estimate: fused-layer resident f32 bytes (x2 double-buffering)."""
    weights = Cq * QK + Ckv * QK + Ckv * V + V * V + V * F + F * V + 4 * Cq
    acts = 2 * (Lq * Cq + Lkv * Ckv + Lq * V) + Lq * F + Lq * V
    return 4 * 2 * (weights + acts) < budget_bytes


def fused_layer(hidden, kv, attn_p, mlp_p, *, num_heads, use_query_residual,
                is_cross, eps):
    """One full SMALayer as a single fused pallas_call, gridded over batch."""
    B, Lq, Cq = hidden.shape
    wq_h, wk_h, wv_h, wo_h = _split_heads(attn_p, num_heads)
    H, _, dqk = wq_h.shape
    Ckv = wk_h.shape[1]
    dv = wv_h.shape[2]
    V = wo_h.shape[2]
    w1, w2 = mlp_p['w1'], mlp_p['w2']
    F = w1.shape[1]

    g1 = attn_p['ln_g'].reshape(1, Cq)
    b1 = attn_p['ln_b'].reshape(1, Cq)
    g2 = mlp_p['ln_g'].reshape(1, V)
    b2 = mlp_p['ln_b'].reshape(1, V)

    x_spec = pl.BlockSpec((None, Lq, Cq), lambda b: (b, 0, 0))
    out_spec = pl.BlockSpec((None, Lq, V), lambda b: (b, 0, 0))
    w_specs = [_const_spec((1, Cq)), _const_spec((1, Cq)),
               _const_spec((H, Cq, dqk)), _const_spec((H, Ckv, dqk)),
               _const_spec((H, Ckv, dv)), _const_spec((H, dv, V)),
               _const_spec((1, V)), _const_spec((1, V)),
               _const_spec((V, F)), _const_spec((F, V))]

    if is_cross:
        Lkv = kv.shape[1]
        kernel = functools.partial(_layer_cross_kernel, num_heads=num_heads,
                                   use_query_residual=use_query_residual, eps=eps)
        in_specs = [x_spec, pl.BlockSpec((None, Lkv, Ckv), lambda b: (b, 0, 0))] + w_specs
        args = (hidden, kv, g1, b1, wq_h, wk_h, wv_h, wo_h, g2, b2, w1, w2)
    else:
        kernel = functools.partial(_layer_self_kernel, num_heads=num_heads,
                                   use_query_residual=use_query_residual, eps=eps)
        in_specs = [x_spec] + w_specs
        args = (hidden, g1, b1, wq_h, wk_h, wv_h, wo_h, g2, b2, w1, w2)

    return pl.pallas_call(
        kernel,
        grid=(B,),
        in_specs=in_specs,
        out_specs=out_spec,
        out_shape=jax.ShapeDtypeStruct((B, Lq, V), jnp.float32),
        compiler_params=pltpu.CompilerParams(dimension_semantics=("parallel",)),
    )(*args)


# ------------------------------ split fallback ------------------------------

def attention_block(hidden, kv, p, *, num_heads, use_query_residual, is_cross, eps):
    """SMAAttention (LN + MHA + output dense + query residual). Grid over batch."""
    B, Lq, Cq = hidden.shape
    wq_h, wk_h, wv_h, wo_h = _split_heads(p, num_heads)
    H, _, dqk = wq_h.shape
    Ckv = wk_h.shape[1]
    dv = wv_h.shape[2]
    V = wo_h.shape[2]
    gamma = p['ln_g'].reshape(1, Cq)
    beta = p['ln_b'].reshape(1, Cq)

    x_spec = pl.BlockSpec((None, Lq, Cq), lambda b: (b, 0, 0))
    out_spec = pl.BlockSpec((None, Lq, V), lambda b: (b, 0, 0))
    w_specs = [_const_spec((1, Cq)), _const_spec((1, Cq)),
               _const_spec((H, Cq, dqk)), _const_spec((H, Ckv, dqk)),
               _const_spec((H, Ckv, dv)), _const_spec((H, dv, V))]

    if is_cross:
        Lkv = kv.shape[1]
        kernel = functools.partial(_attn_cross_kernel, num_heads=num_heads,
                                   use_query_residual=use_query_residual, eps=eps)
        in_specs = [x_spec, pl.BlockSpec((None, Lkv, Ckv), lambda b: (b, 0, 0))] + w_specs
        args = (hidden, kv, gamma, beta, wq_h, wk_h, wv_h, wo_h)
    else:
        kernel = functools.partial(_attn_self_kernel, num_heads=num_heads,
                                   use_query_residual=use_query_residual, eps=eps)
        in_specs = [x_spec] + w_specs
        args = (hidden, gamma, beta, wq_h, wk_h, wv_h, wo_h)

    return pl.pallas_call(
        kernel,
        grid=(B,),
        in_specs=in_specs,
        out_specs=out_spec,
        out_shape=jax.ShapeDtypeStruct((B, Lq, V), jnp.float32),
        compiler_params=pltpu.CompilerParams(dimension_semantics=("parallel",)),
    )(*args)


def _choose_row_tile(n, max_tile=512):
    for t in (512, 256, 128, 64, 32, 16, 8):
        if t <= max_tile and n % t == 0:
            return t
    return n


def mlp_block(x, p, *, eps):
    """SMALayer feed-forward on flattened lane-dense (B*L, C) tokens."""
    B, L, C = x.shape
    N = B * L
    xf = x.reshape(N, C)
    TM = _choose_row_tile(N)
    w1, w2 = p['w1'], p['w2']
    F = w1.shape[1]
    gamma = p['ln_g'].reshape(1, C)
    beta = p['ln_b'].reshape(1, C)

    out = pl.pallas_call(
        functools.partial(_mlp_kernel, eps=eps),
        grid=(N // TM,),
        in_specs=[pl.BlockSpec((TM, C), lambda i: (i, 0)),
                  _const_spec((1, C)), _const_spec((1, C)),
                  _const_spec((C, F)), _const_spec((F, C))],
        out_specs=pl.BlockSpec((TM, C), lambda i: (i, 0)),
        out_shape=jax.ShapeDtypeStruct((N, C), jnp.float32),
        compiler_params=pltpu.CompilerParams(dimension_semantics=("parallel",)),
    )(xf, gamma, beta, w1, w2)
    return out.reshape(B, L, C)


def sma_layer(hidden, kv, attn_p, mlp_p, *, num_heads, use_query_residual,
              is_cross, eps):
    """Dispatch: fused single-kernel layer if it fits VMEM, else split path."""
    B, Lq, Cq = hidden.shape
    QK = attn_p['wq'].shape[1]
    Ckv = attn_p['wk'].shape[0]
    V = attn_p['wv'].shape[1]
    F = mlp_p['w1'].shape[1]
    Lkv = kv.shape[1] if is_cross else Lq
    if _fused_fits_vmem(Lq, Cq, Lkv, Ckv, QK, V, F):
        return fused_layer(hidden, kv, attn_p, mlp_p, num_heads=num_heads,
                           use_query_residual=use_query_residual,
                           is_cross=is_cross, eps=eps)
    h = attention_block(hidden, kv, attn_p, num_heads=num_heads,
                        use_query_residual=use_query_residual,
                        is_cross=is_cross, eps=eps)
    return mlp_block(h, mlp_p, eps=eps)


def sma_encoder_forward(hidden_states, inputs, params, config):
    """SMAEncoder.forward (encoder_type='cross_attention', masks=None, eval mode)."""
    eps = config['layer_norm_eps']
    h = sma_layer(hidden_states, inputs, params['cross']['attn'],
                  params['cross']['mlp'],
                  num_heads=config['num_cross_attention_heads'],
                  use_query_residual=config['use_query_residual'],
                  is_cross=True, eps=eps)
    for _ in range(config['num_blocks']):
        for lp in params['self_layers']:
            h = sma_layer(h, None, lp['attn'], lp['mlp'],
                          num_heads=config['num_self_attention_heads'],
                          use_query_residual=True, is_cross=False, eps=eps)
    return h


# ---------------------------------------------------------------------------
# pure-JAX reference (mirrors the PyTorch module math)
# ---------------------------------------------------------------------------

def _attention_ref(x, kv, p, num_heads, use_query_residual, is_cross, eps):
    x_ln = _layernorm(x, p['ln_g'], p['ln_b'], eps)
    kv_src = kv if is_cross else x_ln
    q = x_ln @ p['wq']
    k = kv_src @ p['wk']
    v = kv_src @ p['wv']
    B, Lq, QK = q.shape
    Lkv, V = k.shape[1], v.shape[-1]
    dqk, dv = QK // num_heads, V // num_heads
    qh = q.reshape(B, Lq, num_heads, dqk).transpose(0, 2, 1, 3)
    kh = k.reshape(B, Lkv, num_heads, dqk).transpose(0, 2, 1, 3)
    vh = v.reshape(B, Lkv, num_heads, dv).transpose(0, 2, 1, 3)
    s = jnp.einsum('bhqd,bhkd->bhqk', qh, kh) / math.sqrt(dqk)
    probs = jax.nn.softmax(s, axis=-1)
    ctx = jnp.einsum('bhqk,bhkd->bhqd', probs, vh)
    ctx = ctx.transpose(0, 2, 1, 3).reshape(B, Lq, V)
    out = ctx @ p['wo']
    return out + x if use_query_residual else out


def _mlp_ref(x, p, eps):
    x_ln = _layernorm(x, p['ln_g'], p['ln_b'], eps)
    return _gelu_tanh(x_ln @ p['w1']) @ p['w2'] + x


def sma_encoder_ref(hidden_states, inputs, params, config):
    eps = config['layer_norm_eps']
    h = _attention_ref(hidden_states, inputs, params['cross']['attn'],
                       config['num_cross_attention_heads'],
                       config['use_query_residual'], True, eps)
    h = _mlp_ref(h, params['cross']['mlp'], eps)
    for _ in range(config['num_blocks']):
        for lp in params['self_layers']:
            h = _attention_ref(h, None, lp['attn'],
                               config['num_self_attention_heads'], True, False, eps)
            h = _mlp_ref(h, lp['mlp'], eps)
    return h


# ---------------------------------------------------------------------------
# main
# ---------------------------------------------------------------------------

def _init_attn_params(key, q_dim, kv_dim, qk_ch, v_ch):
    ks = jax.random.split(key, 6)
    s = 0.05
    return {
        'ln_g': jnp.ones((q_dim,), jnp.float32)
                + 0.01 * jax.random.normal(ks[0], (q_dim,), jnp.float32),
        'ln_b': 0.01 * jax.random.normal(ks[1], (q_dim,), jnp.float32),
        'wq': s * jax.random.normal(ks[2], (q_dim, qk_ch), jnp.float32),
        'wk': s * jax.random.normal(ks[3], (kv_dim, qk_ch), jnp.float32),
        'wv': s * jax.random.normal(ks[4], (kv_dim, v_ch), jnp.float32),
        'wo': s * jax.random.normal(ks[5], (v_ch, v_ch), jnp.float32),
    }


def _init_mlp_params(key, size, widening):
    ks = jax.random.split(key, 4)
    s = 0.05
    return {
        'ln_g': jnp.ones((size,), jnp.float32)
                + 0.01 * jax.random.normal(ks[0], (size,), jnp.float32),
        'ln_b': 0.01 * jax.random.normal(ks[1], (size,), jnp.float32),
        'w1': s * jax.random.normal(ks[2], (size, widening * size), jnp.float32),
        'w2': s * jax.random.normal(ks[3], (widening * size, size), jnp.float32),
    }


if __name__ == "__main__":
    # Small SMAConfig-like setup (encoder_type='cross_attention', dense_use_bias=False,
    # hidden_act='gelu_new', drop_path_rate=0, eval mode => dropouts are identity).
    cfg = dict(
        latent_channels=32,
        qk_channels=32,
        v_channels=32,
        encoder_cross_attention_channels=32,
        num_cross_attention_heads=2,
        num_self_attention_heads=4,
        cross_attention_widening_factor=4,
        self_attention_widening_factor=4,
        num_self_attends_per_block=2,
        num_blocks=2,
        use_query_residual=True,
        layer_norm_eps=1e-5,
    )
    batch, num_latents, input_seq, input_channels = 2, 8, 16, 64

    key = jax.random.PRNGKey(0)
    k_lat, k_in, k_cross_a, k_cross_m, k_self = jax.random.split(key, 5)

    latents = jax.random.normal(k_lat, (batch, num_latents, cfg['latent_channels']),
                                jnp.float32)
    inputs = jax.random.normal(k_in, (batch, input_seq, input_channels), jnp.float32)

    params = {
        'cross': {
            'attn': _init_attn_params(k_cross_a, cfg['latent_channels'], input_channels,
                                      cfg['encoder_cross_attention_channels'],
                                      cfg['v_channels']),
            'mlp': _init_mlp_params(k_cross_m, cfg['v_channels'],
                                    cfg['cross_attention_widening_factor']),
        },
        'self_layers': [],
    }
    self_keys = jax.random.split(k_self, cfg['num_self_attends_per_block'])
    for lk in self_keys:
        ka, km = jax.random.split(lk)
        params['self_layers'].append({
            'attn': _init_attn_params(ka, cfg['latent_channels'], cfg['latent_channels'],
                                      cfg['qk_channels'], cfg['v_channels']),
            'mlp': _init_mlp_params(km, cfg['v_channels'],
                                    cfg['self_attention_widening_factor']),
        })

    fwd = jax.jit(functools.partial(sma_encoder_forward, config=cfg))
    out = fwd(latents, inputs, params)
    out = jax.block_until_ready(out)

    ref = sma_encoder_ref(latents, inputs, params, cfg)
    assert out.shape == (batch, num_latents, cfg['latent_channels'])
    assert jnp.allclose(out, ref, atol=1e-4, rtol=1e-4), \
        f"max abs err = {jnp.max(jnp.abs(out - ref))}"

    print("KERNEL_OK")
</pallas_src>

<mosaic_0001>
module attributes {stable_mosaic.version = 11 : i64} {
  func.func @_layer_cross_kernel(%arg0: i32, %arg1: memref<1x8x32xf32, #tpu.memory_space<vmem>>, %arg2: memref<1x16x64xf32, #tpu.memory_space<vmem>>, %arg3: memref<1x32xf32, #tpu.memory_space<vmem>>, %arg4: memref<1x32xf32, #tpu.memory_space<vmem>>, %arg5: memref<2x32x16xf32, #tpu.memory_space<vmem>>, %arg6: memref<2x64x16xf32, #tpu.memory_space<vmem>>, %arg7: memref<2x64x16xf32, #tpu.memory_space<vmem>>, %arg8: memref<2x16x32xf32, #tpu.memory_space<vmem>>, %arg9: memref<1x32xf32, #tpu.memory_space<vmem>>, %arg10: memref<1x32xf32, #tpu.memory_space<vmem>>, %arg11: memref<32x128xf32, #tpu.memory_space<vmem>>, %arg12: memref<128x32xf32, #tpu.memory_space<vmem>>, %arg13: memref<1x8x32xf32, #tpu.memory_space<vmem>>) attributes {dimension_semantics = [#tpu.dimension_semantics<parallel>], iteration_bounds = array<i64: 2>, scalar_prefetch = 0 : i64, scratch_operands = 0 : i64, tpu.core_type = #tpu.core_type<tc>, window_params = [{transform_indices = @transform_0, window_bounds = array<i64: 1, 8, 32>}, {transform_indices = @transform_1, window_bounds = array<i64: 1, 16, 64>}, {pipeline_mode = #tpu.pipeline_mode<synchronous>, transform_indices = @transform_2, window_bounds = array<i64: 1, 32>}, {pipeline_mode = #tpu.pipeline_mode<synchronous>, transform_indices = @transform_3, window_bounds = array<i64: 1, 32>}, {pipeline_mode = #tpu.pipeline_mode<synchronous>, transform_indices = @transform_4, window_bounds = array<i64: 2, 32, 16>}, {pipeline_mode = #tpu.pipeline_mode<synchronous>, transform_indices = @transform_5, window_bounds = array<i64: 2, 64, 16>}, {pipeline_mode = #tpu.pipeline_mode<synchronous>, transform_indices = @transform_6, window_bounds = array<i64: 2, 64, 16>}, {pipeline_mode = #tpu.pipeline_mode<synchronous>, transform_indices = @transform_7, window_bounds = array<i64: 2, 16, 32>}, {pipeline_mode = #tpu.pipeline_mode<synchronous>, transform_indices = @transform_8, window_bounds = array<i64: 1, 32>}, {pipeline_mode = #tpu.pipeline_mode<synchronous>, transform_indices = @transform_9, window_bounds = array<i64: 1, 32>}, {pipeline_mode = #tpu.pipeline_mode<synchronous>, transform_indices = @transform_10, window_bounds = array<i64: 32, 128>}, {pipeline_mode = #tpu.pipeline_mode<synchronous>, transform_indices = @transform_11, window_bounds = array<i64: 128, 32>}, {transform_indices = @transform_12, window_bounds = array<i64: 1, 8, 32>}]} {
    %c0 = arith.constant 0 : index
    %c0_0 = arith.constant 0 : index
    %c0_1 = arith.constant 0 : index
    %0 = vector.load %arg1[%c0, %c0_0, %c0_1] : memref<1x8x32xf32, #tpu.memory_space<vmem>>, vector<1x8x32xf32>
    %1 = vector.shape_cast %0 : vector<1x8x32xf32> to vector<8x32xf32>
    %c0_2 = arith.constant 0 : index
    %c0_3 = arith.constant 0 : index
    %c0_4 = arith.constant 0 : index
    %2 = vector.load %arg2[%c0_2, %c0_3, %c0_4] : memref<1x16x64xf32, #tpu.memory_space<vmem>>, vector<1x16x64xf32>
    %3 = vector.shape_cast %2 : vector<1x16x64xf32> to vector<16x64xf32>
    %c0_5 = arith.constant 0 : index
    %c0_6 = arith.constant 0 : index
    %4 = vector.load %arg3[%c0_5, %c0_6] : memref<1x32xf32, #tpu.memory_space<vmem>>, vector<1x32xf32>
    %c0_7 = arith.constant 0 : index
    %c0_8 = arith.constant 0 : index
    %5 = vector.load %arg4[%c0_7, %c0_8] : memref<1x32xf32, #tpu.memory_space<vmem>>, vector<1x32xf32>
    %cst = arith.constant dense<0.000000e+00> : vector<8xf32>
    %6 = vector.multi_reduction <add>, %1, %cst [1] : vector<8x32xf32> to vector<8xf32>
    %7 = vector.shape_cast %6 : vector<8xf32> to vector<8x1xf32>
    %cst_9 = arith.constant 3.200000e+01 : f32
    %8 = vector.broadcast %cst_9 : f32 to vector<8x1xf32>
    %9 = arith.divf %7, %8 : vector<8x1xf32>
    %10 = vector.broadcast %9 : vector<8x1xf32> to vector<8x32xf32>
    %11 = arith.subf %1, %10 : vector<8x32xf32>
    %12 = arith.mulf %11, %11 : vector<8x32xf32>
    %cst_10 = arith.constant dense<0.000000e+00> : vector<8xf32>
    %13 = vector.multi_reduction <add>, %12, %cst_10 [1] : vector<8x32xf32> to vector<8xf32>
    %14 = vector.shape_cast %13 : vector<8xf32> to vector<8x1xf32>
    %cst_11 = arith.constant 3.200000e+01 : f32
    %15 = vector.broadcast %cst_11 : f32 to vector<8x1xf32>
    %16 = arith.divf %14, %15 : vector<8x1xf32>
    %cst_12 = arith.constant 9.99999974E-6 : f32
    %17 = vector.broadcast %cst_12 : f32 to vector<8x1xf32>
    %18 = arith.addf %16, %17 : vector<8x1xf32>
    %19 = math.rsqrt %18 : vector<8x1xf32>
    %20 = vector.broadcast %19 : vector<8x1xf32> to vector<8x32xf32>
    %21 = arith.mulf %11, %20 : vector<8x32xf32>
    %22 = vector.broadcast %4 : vector<1x32xf32> to vector<8x32xf32>
    %23 = arith.mulf %21, %22 : vector<8x32xf32>
    %24 = vector.broadcast %5 : vector<1x32xf32> to vector<8x32xf32>
    %25 = arith.addf %23, %24 : vector<8x32xf32>
    %cst_13 = arith.constant 0.000000e+00 : f32
    %26 = vector.broadcast %cst_13 : f32 to vector<8x32xf32>
    %c0_14 = arith.constant 0 : index
    %c0_15 = arith.constant 0 : index
    %c0_16 = arith.constant 0 : index
    %27 = vector.load %arg5[%c0_14, %c0_15, %c0_16] : memref<2x32x16xf32, #tpu.memory_space<vmem>>, vector<1x32x16xf32>
    %28 = vector.shape_cast %27 : vector<1x32x16xf32> to vector<32x16xf32>
    %cst_17 = arith.constant dense<0.000000e+00> : vector<8x16xf32>
    %29 = tpu.matmul %25, %28, %cst_17 {dimension_numbers = #tpu.dot_dimension_numbers<[1], [0], [0], [1], [0, 0, 1, 1], [], []>} : vector<8x32xf32>, vector<32x16xf32>, vector<8x16xf32> -> vector<8x16xf32>
    %c0_18 = arith.constant 0 : index
    %c0_19 = arith.constant 0 : index
    %c0_20 = arith.constant 0 : index
    %30 = vector.load %arg6[%c0_18, %c0_19, %c0_20] : memref<2x64x16xf32, #tpu.memory_space<vmem>>, vector<1x64x16xf32>
    %31 = vector.shape_cast %30 : vector<1x64x16xf32> to vector<64x16xf32>
    %cst_21 = arith.constant dense<0.000000e+00> : vector<16x16xf32>
    %32 = tpu.matmul %3, %31, %cst_21 {dimension_numbers = #tpu.dot_dimension_numbers<[1], [0], [0], [1], [0, 0, 1, 1], [], []>} : vector<16x64xf32>, vector<64x16xf32>, vector<16x16xf32> -> vector<16x16xf32>
    %c0_22 = arith.constant 0 : index
    %c0_23 = arith.constant 0 : index
    %c0_24 = arith.constant 0 : index
    %33 = vector.load %arg7[%c0_22, %c0_23, %c0_24] : memref<2x64x16xf32, #tpu.memory_space<vmem>>, vector<1x64x16xf32>
    %34 = vector.shape_cast %33 : vector<1x64x16xf32> to vector<64x16xf32>
    %cst_25 = arith.constant dense<0.000000e+00> : vector<16x16xf32>
    %35 = tpu.matmul %3, %34, %cst_25 {dimension_numbers = #tpu.dot_dimension_numbers<[1], [0], [0], [1], [0, 0, 1, 1], [], []>} : vector<16x64xf32>, vector<64x16xf32>, vector<16x16xf32> -> vector<16x16xf32>
    %cst_26 = arith.constant dense<0.000000e+00> : vector<8x16xf32>
    %36 = tpu.matmul %29, %32, %cst_26 {dimension_numbers = #tpu.dot_dimension_numbers<[1], [1], [0], [0], [0, 0, 1, 0], [], []>} : vector<8x16xf32>, vector<16x16xf32>, vector<8x16xf32> -> vector<8x16xf32>
    %cst_27 = arith.constant 2.500000e-01 : f32
    %37 = vector.broadcast %cst_27 : f32 to vector<8x16xf32>
    %38 = arith.mulf %36, %37 : vector<8x16xf32>
    %cst_28 = arith.constant dense<0xFF800000> : vector<8xf32>
    %39 = vector.multi_reduction <maximumf>, %38, %cst_28 [1] : vector<8x16xf32> to vector<8xf32>
    %40 = vector.shape_cast %39 : vector<8xf32> to vector<8x1xf32>
    %41 = vector.broadcast %40 : vector<8x1xf32> to vector<8x16xf32>
    %42 = arith.subf %38, %41 : vector<8x16xf32>
    %43 = math.exp %42 : vector<8x16xf32>
    %cst_29 = arith.constant dense<0.000000e+00> : vector<8xf32>
    %44 = vector.multi_reduction <add>, %43, %cst_29 [1] : vector<8x16xf32> to vector<8xf32>
    %45 = vector.shape_cast %44 : vector<8xf32> to vector<8x1xf32>
    %46 = vector.broadcast %45 : vector<8x1xf32> to vector<8x16xf32>
    %47 = arith.divf %43, %46 : vector<8x16xf32>
    %cst_30 = arith.constant dense<0.000000e+00> : vector<8x16xf32>
    %48 = tpu.matmul %47, %35, %cst_30 {dimension_numbers = #tpu.dot_dimension_numbers<[1], [0], [0], [1], [0, 0, 1, 1], [], []>} : vector<8x16xf32>, vector<16x16xf32>, vector<8x16xf32> -> vector<8x16xf32>
    %c0_31 = arith.constant 0 : index
    %c0_32 = arith.constant 0 : index
    %c0_33 = arith.constant 0 : index
    %49 = vector.load %arg8[%c0_31, %c0_32, %c0_33] : memref<2x16x32xf32, #tpu.memory_space<vmem>>, vector<1x16x32xf32>
    %50 = vector.shape_cast %49 : vector<1x16x32xf32> to vector<16x32xf32>
    %cst_34 = arith.constant dense<0.000000e+00> : vector<8x32xf32>
    %51 = tpu.matmul %48, %50, %cst_34 {dimension_numbers = #tpu.dot_dimension_numbers<[1], [0], [0], [1], [0, 0, 1, 1], [], []>} : vector<8x16xf32>, vector<16x32xf32>, vector<8x32xf32> -> vector<8x32xf32>
    %52 = arith.addf %26, %51 : vector<8x32xf32>
    %c1 = arith.constant 1 : index
    %c0_35 = arith.constant 0 : index
    %c0_36 = arith.constant 0 : index
    %53 = vector.load %arg5[%c1, %c0_35, %c0_36] : memref<2x32x16xf32, #tpu.memory_space<vmem>>, vector<1x32x16xf32>
    %54 = vector.shape_cast %53 : vector<1x32x16xf32> to vector<32x16xf32>
    %cst_37 = arith.constant dense<0.000000e+00> : vector<8x16xf32>
    %55 = tpu.matmul %25, %54, %cst_37 {dimension_numbers = #tpu.dot_dimension_numbers<[1], [0], [0], [1], [0, 0, 1, 1], [], []>} : vector<8x32xf32>, vector<32x16xf32>, vector<8x16xf32> -> vector<8x16xf32>
    %c1_38 = arith.constant 1 : index
    %c0_39 = arith.constant 0 : index
    %c0_40 = arith.constant 0 : index
    %56 = vector.load %arg6[%c1_38, %c0_39, %c0_40] : memref<2x64x16xf32, #tpu.memory_space<vmem>>, vector<1x64x16xf32>
    %57 = vector.shape_cast %56 : vector<1x64x16xf32> to vector<64x16xf32>
    %cst_41 = arith.constant dense<0.000000e+00> : vector<16x16xf32>
    %58 = tpu.matmul %3, %57, %cst_41 {dimension_numbers = #tpu.dot_dimension_numbers<[1], [0], [0], [1], [0, 0, 1, 1], [], []>} : vector<16x64xf32>, vector<64x16xf32>, vector<16x16xf32> -> vector<16x16xf32>
    %c1_42 = arith.constant 1 : index
    %c0_43 = arith.constant 0 : index
    %c0_44 = arith.constant 0 : index
    %59 = vector.load %arg7[%c1_42, %c0_43, %c0_44] : memref<2x64x16xf32, #tpu.memory_space<vmem>>, vector<1x64x16xf32>
    %60 = vector.shape_cast %59 : vector<1x64x16xf32> to vector<64x16xf32>
    %cst_45 = arith.constant dense<0.000000e+00> : vector<16x16xf32>
    %61 = tpu.matmul %3, %60, %cst_45 {dimension_numbers = #tpu.dot_dimension_numbers<[1], [0], [0], [1], [0, 0, 1, 1], [], []>} : vector<16x64xf32>, vector<64x16xf32>, vector<16x16xf32> -> vector<16x16xf32>
    %cst_46 = arith.constant dense<0.000000e+00> : vector<8x16xf32>
    %62 = tpu.matmul %55, %58, %cst_46 {dimension_numbers = #tpu.dot_dimension_numbers<[1], [1], [0], [0], [0, 0, 1, 0], [], []>} : vector<8x16xf32>, vector<16x16xf32>, vector<8x16xf32> -> vector<8x16xf32>
    %cst_47 = arith.constant 2.500000e-01 : f32
    %63 = vector.broadcast %cst_47 : f32 to vector<8x16xf32>
    %64 = arith.mulf %62, %63 : vector<8x16xf32>
    %cst_48 = arith.constant dense<0xFF800000> : vector<8xf32>
    %65 = vector.multi_reduction <maximumf>, %64, %cst_48 [1] : vector<8x16xf32> to vector<8xf32>
    %66 = vector.shape_cast %65 : vector<8xf32> to vector<8x1xf32>
    %67 = vector.broadcast %66 : vector<8x1xf32> to vector<8x16xf32>
    %68 = arith.subf %64, %67 : vector<8x16xf32>
    %69 = math.exp %68 : vector<8x16xf32>
    %cst_49 = arith.constant dense<0.000000e+00> : vector<8xf32>
    %70 = vector.multi_reduction <add>, %69, %cst_49 [1] : vector<8x16xf32> to vector<8xf32>
    %71 = vector.shape_cast %70 : vector<8xf32> to vector<8x1xf32>
    %72 = vector.broadcast %71 : vector<8x1xf32> to vector<8x16xf32>
    %73 = arith.divf %69, %72 : vector<8x16xf32>
    %cst_50 = arith.constant dense<0.000000e+00> : vector<8x16xf32>
    %74 = tpu.matmul %73, %61, %cst_50 {dimension_numbers = #tpu.dot_dimension_numbers<[1], [0], [0], [1], [0, 0, 1, 1], [], []>} : vector<8x16xf32>, vector<16x16xf32>, vector<8x16xf32> -> vector<8x16xf32>
    %c1_51 = arith.constant 1 : index
    %c0_52 = arith.constant 0 : index
    %c0_53 = arith.constant 0 : index
    %75 = vector.load %arg8[%c1_51, %c0_52, %c0_53] : memref<2x16x32xf32, #tpu.memory_space<vmem>>, vector<1x16x32xf32>
    %76 = vector.shape_cast %75 : vector<1x16x32xf32> to vector<16x32xf32>
    %cst_54 = arith.constant dense<0.000000e+00> : vector<8x32xf32>
    %77 = tpu.matmul %74, %76, %cst_54 {dimension_numbers = #tpu.dot_dimension_numbers<[1], [0], [0], [1], [0, 0, 1, 1], [], []>} : vector<8x16xf32>, vector<16x32xf32>, vector<8x32xf32> -> vector<8x32xf32>
    %78 = arith.addf %52, %77 : vector<8x32xf32>
    %79 = arith.addf %78, %1 : vector<8x32xf32>
    %c0_55 = arith.constant 0 : index
    %c0_56 = arith.constant 0 : index
    %80 = vector.load %arg9[%c0_55, %c0_56] : memref<1x32xf32, #tpu.memory_space<vmem>>, vector<1x32xf32>
    %c0_57 = arith.constant 0 : index
    %c0_58 = arith.constant 0 : index
    %81 = vector.load %arg10[%c0_57, %c0_58] : memref<1x32xf32, #tpu.memory_space<vmem>>, vector<1x32xf32>
    %c0_59 = arith.constant 0 : index
    %c0_60 = arith.constant 0 : index
    %82 = vector.load %arg11[%c0_59, %c0_60] : memref<32x128xf32, #tpu.memory_space<vmem>>, vector<32x128xf32>
    %c0_61 = arith.constant 0 : index
    %c0_62 = arith.constant 0 : index
    %83 = vector.load %arg12[%c0_61, %c0_62] : memref<128x32xf32, #tpu.memory_space<vmem>>, vector<128x32xf32>
    %cst_63 = arith.constant dense<0.000000e+00> : vector<8xf32>
    %84 = vector.multi_reduction <add>, %79, %cst_63 [1] : vector<8x32xf32> to vector<8xf32>
    %85 = vector.shape_cast %84 : vector<8xf32> to vector<8x1xf32>
    %cst_64 = arith.constant 3.200000e+01 : f32
    %86 = vector.broadcast %cst_64 : f32 to vector<8x1xf32>
    %87 = arith.divf %85, %86 : vector<8x1xf32>
    %88 = vector.broadcast %87 : vector<8x1xf32> to vector<8x32xf32>
    %89 = arith.subf %79, %88 : vector<8x32xf32>
    %90 = arith.mulf %89, %89 : vector<8x32xf32>
    %cst_65 = arith.constant dense<0.000000e+00> : vector<8xf32>
    %91 = vector.multi_reduction <add>, %90, %cst_65 [1] : vector<8x32xf32> to vector<8xf32>
    %92 = vector.shape_cast %91 : vector<8xf32> to vector<8x1xf32>
    %cst_66 = arith.constant 3.200000e+01 : f32
    %93 = vector.broadcast %cst_66 : f32 to vector<8x1xf32>
    %94 = arith.divf %92, %93 : vector<8x1xf32>
    %cst_67 = arith.constant 9.99999974E-6 : f32
    %95 = vector.broadcast %cst_67 : f32 to vector<8x1xf32>
    %96 = arith.addf %94, %95 : vector<8x1xf32>
    %97 = math.rsqrt %96 : vector<8x1xf32>
    %98 = vector.broadcast %97 : vector<8x1xf32> to vector<8x32xf32>
    %99 = arith.mulf %89, %98 : vector<8x32xf32>
    %100 = vector.broadcast %80 : vector<1x32xf32> to vector<8x32xf32>
    %101 = arith.mulf %99, %100 : vector<8x32xf32>
    %102 = vector.broadcast %81 : vector<1x32xf32> to vector<8x32xf32>
    %103 = arith.addf %101, %102 : vector<8x32xf32>
    %cst_68 = arith.constant dense<0.000000e+00> : vector<8x128xf32>
    %104 = tpu.matmul %103, %82, %cst_68 {dimension_numbers = #tpu.dot_dimension_numbers<[1], [0], [0], [1], [0, 0, 1, 1], [], []>} : vector<8x32xf32>, vector<32x128xf32>, vector<8x128xf32> -> vector<8x128xf32>
    %cst_69 = arith.constant 5.000000e-01 : f32
    %105 = vector.broadcast %cst_69 : f32 to vector<8x128xf32>
    %106 = arith.mulf %105, %104 : vector<8x128xf32>
    %cst_70 = arith.constant 4.471500e-02 : f32
    %107 = vector.broadcast %cst_70 : f32 to vector<8x128xf32>
    %108 = arith.mulf %107, %104 : vector<8x128xf32>
    %109 = arith.mulf %108, %104 : vector<8x128xf32>
    %110 = arith.mulf %109, %104 : vector<8x128xf32>
    %111 = arith.addf %104, %110 : vector<8x128xf32>
    %cst_71 = arith.constant 0.797884583 : f32
    %112 = vector.broadcast %cst_71 : f32 to vector<8x128xf32>
    %113 = arith.mulf %112, %111 : vector<8x128xf32>
    %114 = math.tanh %113 : vector<8x128xf32>
    %cst_72 = arith.constant 1.000000e+00 : f32
    %115 = vector.broadcast %cst_72 : f32 to vector<8x128xf32>
    %116 = arith.addf %115, %114 : vector<8x128xf32>
    %117 = arith.mulf %106, %116 : vector<8x128xf32>
    %cst_73 = arith.constant dense<0.000000e+00> : vector<8x32xf32>
    %118 = tpu.matmul %117, %83, %cst_73 {dimension_numbers = #tpu.dot_dimension_numbers<[1], [0], [0], [1], [0, 0, 1, 1], [], []>} : vector<8x128xf32>, vector<128x32xf32>, vector<8x32xf32> -> vector<8x32xf32>
    %119 = arith.addf %118, %79 : vector<8x32xf32>
    %c0_74 = arith.constant 0 : index
    %c0_75 = arith.constant 0 : index
    %c0_76 = arith.constant 0 : index
    %120 = vector.load %arg13[%c0_74, %c0_75, %c0_76] : memref<1x8x32xf32, #tpu.memory_space<vmem>>, vector<1x8x32xf32>
    %121 = vector.shape_cast %120 : vector<1x8x32xf32> to vector<8x32xf32>
    %122 = vector.shape_cast %119 : vector<8x32xf32> to vector<1x8x32xf32>
    tpu.vector_store %arg13[%c0_74, %c0_75, %c0_76], %122 {strides = array<i32>} : memref<1x8x32xf32, #tpu.memory_space<vmem>>, vector<1x8x32xf32>,
    return
  }
  func.func @transform_0(%arg0: i32) -> (i32, i32, i32) {
    %c0_i32 = arith.constant 0 : i32
    %c0_i32_0 = arith.constant 0 : i32
    %c0_i32_1 = arith.constant 0 : i32
    return %arg0, %c0_i32, %c0_i32_0 : i32, i32, i32
  }
  func.func @transform_1(%arg0: i32) -> (i32, i32, i32) {
    %c0_i32 = arith.constant 0 : i32
    %c0_i32_0 = arith.constant 0 : i32
    %c0_i32_1 = arith.constant 0 : i32
    return %arg0, %c0_i32, %c0_i32_0 : i32, i32, i32
  }
  func.func @transform_2(%arg0: i32) -> (i32, i32) {
    %c0_i32 = arith.constant 0 : i32
    %c0_i32_0 = arith.constant 0 : i32
    %c0_i32_1 = arith.constant 0 : i32
    return %c0_i32, %c0_i32_0 : i32, i32
  }
  func.func @transform_3(%arg0: i32) -> (i32, i32) {
    %c0_i32 = arith.constant 0 : i32
    %c0_i32_0 = arith.constant 0 : i32
    %c0_i32_1 = arith.constant 0 : i32
    return %c0_i32, %c0_i32_0 : i32, i32
  }
  func.func @transform_4(%arg0: i32) -> (i32, i32, i32) {
    %c0_i32 = arith.constant 0 : i32
    %c0_i32_0 = arith.constant 0 : i32
    %c0_i32_1 = arith.constant 0 : i32
    %c0_i32_2 = arith.constant 0 : i32
    return %c0_i32, %c0_i32_0, %c0_i32_1 : i32, i32, i32
  }
  func.func @transform_5(%arg0: i32) -> (i32, i32, i32) {
    %c0_i32 = arith.constant 0 : i32
    %c0_i32_0 = arith.constant 0 : i32
    %c0_i32_1 = arith.constant 0 : i32
    %c0_i32_2 = arith.constant 0 : i32
    return %c0_i32, %c0_i32_0, %c0_i32_1 : i32, i32, i32
  }
  func.func @transform_6(%arg0: i32) -> (i32, i32, i32) {
    %c0_i32 = arith.constant 0 : i32
    %c0_i32_0 = arith.constant 0 : i32
    %c0_i32_1 = arith.constant 0 : i32
    %c0_i32_2 = arith.constant 0 : i32
    return %c0_i32, %c0_i32_0, %c0_i32_1 : i32, i32, i32
  }
  func.func @transform_7(%arg0: i32) -> (i32, i32, i32) {
    %c0_i32 = arith.constant 0 : i32
    %c0_i32_0 = arith.constant 0 : i32
    %c0_i32_1 = arith.constant 0 : i32
    %c0_i32_2 = arith.constant 0 : i32
    return %c0_i32, %c0_i32_0, %c0_i32_1 : i32, i32, i32
  }
  func.func @transform_8(%arg0: i32) -> (i32, i32) {
    %c0_i32 = arith.constant 0 : i32
    %c0_i32_0 = arith.constant 0 : i32
    %c0_i32_1 = arith.constant 0 : i32
    return %c0_i32, %c0_i32_0 : i32, i32
  }
  func.func @transform_9(%arg0: i32) -> (i32, i32) {
    %c0_i32 = arith.constant 0 : i32
    %c0_i32_0 = arith.constant 0 : i32
    %c0_i32_1 = arith.constant 0 : i32
    return %c0_i32, %c0_i32_0 : i32, i32
  }
  func.func @transform_10(%arg0: i32) -> (i32, i32) {
    %c0_i32 = arith.constant 0 : i32
    %c0_i32_0 = arith.constant 0 : i32
    %c0_i32_1 = arith.constant 0 : i32
    return %c0_i32, %c0_i32_0 : i32, i32
  }
  func.func @transform_11(%arg0: i32) -> (i32, i32) {
    %c0_i32 = arith.constant 0 : i32
    %c0_i32_0 = arith.constant 0 : i32
    %c0_i32_1 = arith.constant 0 : i32
    return %c0_i32, %c0_i32_0 : i32, i32
  }
  func.func @transform_12(%arg0: i32) -> (i32, i32, i32) {
    %c0_i32 = arith.constant 0 : i32
    %c0_i32_0 = arith.constant 0 : i32
    %c0_i32_1 = arith.constant 0 : i32
    return %arg0, %c0_i32, %c0_i32_0 : i32, i32, i32
  }
}

module attributes {stable_mosaic.version = 11 : i64} {
  func.func @_layer_self_kernel(%arg0: i32, %arg1: memref<1x8x32xf32, #tpu.memory_space<vmem>>, %arg2: memref<1x32xf32, #tpu.memory_space<vmem>>, %arg3: memref<1x32xf32, #tpu.memory_space<vmem>>, %arg4: memref<4x32x8xf32, #tpu.memory_space<vmem>>, %arg5: memref<4x32x8xf32, #tpu.memory_space<vmem>>, %arg6: memref<4x32x8xf32, #tpu.memory_space<vmem>>, %arg7: memref<4x8x32xf32, #tpu.memory_space<vmem>>, %arg8: memref<1x32xf32, #tpu.memory_space<vmem>>, %arg9: memref<1x32xf32, #tpu.memory_space<vmem>>, %arg10: memref<32x128xf32, #tpu.memory_space<vmem>>, %arg11: memref<128x32xf32, #tpu.memory_space<vmem>>, %arg12: memref<1x8x32xf32, #tpu.memory_space<vmem>>) attributes {dimension_semantics = [#tpu.dimension_semantics<parallel>], iteration_bounds = array<i64: 2>, scalar_prefetch = 0 : i64, scratch_operands = 0 : i64, tpu.core_type = #tpu.core_type<tc>, window_params = [{transform_indices = @transform_0, window_bounds = array<i64: 1, 8, 32>}, {pipeline_mode = #tpu.pipeline_mode<synchronous>, transform_indices = @transform_1, window_bounds = array<i64: 1, 32>}, {pipeline_mode = #tpu.pipeline_mode<synchronous>, transform_indices = @transform_2, window_bounds = array<i64: 1, 32>}, {pipeline_mode = #tpu.pipeline_mode<synchronous>, transform_indices = @transform_3, window_bounds = array<i64: 4, 32, 8>}, {pipeline_mode = #tpu.pipeline_mode<synchronous>, transform_indices = @transform_4, window_bounds = array<i64: 4, 32, 8>}, {pipeline_mode = #tpu.pipeline_mode<synchronous>, transform_indices = @transform_5, window_bounds = array<i64: 4, 32, 8>}, {pipeline_mode = #tpu.pipeline_mode<synchronous>, transform_indices = @transform_6, window_bounds = array<i64: 4, 8, 32>}, {pipeline_mode = #tpu.pipeline_mode<synchronous>, transform_indices = @transform_7, window_bounds = array<i64: 1, 32>}, {pipeline_mode = #tpu.pipeline_mode<synchronous>, transform_indices = @transform_8, window_bounds = array<i64: 1, 32>}, {pipeline_mode = #tpu.pipeline_mode<synchronous>, transform_indices = @transform_9, window_bounds = array<i64: 32, 128>}, {pipeline_mode = #tpu.pipeline_mode<synchronous>, transform_indices = @transform_10, window_bounds = array<i64: 128, 32>}, {transform_indices = @transform_11, window_bounds = array<i64: 1, 8, 32>}]} {
    %c0 = arith.constant 0 : index
    %c0_0 = arith.constant 0 : index
    %c0_1 = arith.constant 0 : index
    %0 = vector.load %arg1[%c0, %c0_0, %c0_1] : memref<1x8x32xf32, #tpu.memory_space<vmem>>, vector<1x8x32xf32>
    %1 = vector.shape_cast %0 : vector<1x8x32xf32> to vector<8x32xf32>
    %c0_2 = arith.constant 0 : index
    %c0_3 = arith.constant 0 : index
    %2 = vector.load %arg2[%c0_2, %c0_3] : memref<1x32xf32, #tpu.memory_space<vmem>>, vector<1x32xf32>
    %c0_4 = arith.constant 0 : index
    %c0_5 = arith.constant 0 : index
    %3 = vector.load %arg3[%c0_4, %c0_5] : memref<1x32xf32, #tpu.memory_space<vmem>>, vector<1x32xf32>
    %cst = arith.constant dense<0.000000e+00> : vector<8xf32>
    %4 = vector.multi_reduction <add>, %1, %cst [1] : vector<8x32xf32> to vector<8xf32>
    %5 = vector.shape_cast %4 : vector<8xf32> to vector<8x1xf32>
    %cst_6 = arith.constant 3.200000e+01 : f32
    %6 = vector.broadcast %cst_6 : f32 to vector<8x1xf32>
    %7 = arith.divf %5, %6 : vector<8x1xf32>
    %8 = vector.broadcast %7 : vector<8x1xf32> to vector<8x32xf32>
    %9 = arith.subf %1, %8 : vector<8x32xf32>
    %10 = arith.mulf %9, %9 : vector<8x32xf32>
    %cst_7 = arith.constant dense<0.000000e+00> : vector<8xf32>
    %11 = vector.multi_reduction <add>, %10, %cst_7 [1] : vector<8x32xf32> to vector<8xf32>
    %12 = vector.shape_cast %11 : vector<8xf32> to vector<8x1xf32>
    %cst_8 = arith.constant 3.200000e+01 : f32
    %13 = vector.broadcast %cst_8 : f32 to vector<8x1xf32>
    %14 = arith.divf %12, %13 : vector<8x1xf32>
    %cst_9 = arith.constant 9.99999974E-6 : f32
    %15 = vector.broadcast %cst_9 : f32 to vector<8x1xf32>
    %16 = arith.addf %14, %15 : vector<8x1xf32>
    %17 = math.rsqrt %16 : vector<8x1xf32>
    %18 = vector.broadcast %17 : vector<8x1xf32> to vector<8x32xf32>
    %19 = arith.mulf %9, %18 : vector<8x32xf32>
    %20 = vector.broadcast %2 : vector<1x32xf32> to vector<8x32xf32>
    %21 = arith.mulf %19, %20 : vector<8x32xf32>
    %22 = vector.broadcast %3 : vector<1x32xf32> to vector<8x32xf32>
    %23 = arith.addf %21, %22 : vector<8x32xf32>
    %cst_10 = arith.constant 0.000000e+00 : f32
    %24 = vector.broadcast %cst_10 : f32 to vector<8x32xf32>
    %c0_11 = arith.constant 0 : index
    %c0_12 = arith.constant 0 : index
    %c0_13 = arith.constant 0 : index
    %25 = vector.load %arg4[%c0_11, %c0_12, %c0_13] : memref<4x32x8xf32, #tpu.memory_space<vmem>>, vector<1x32x8xf32>
    %26 = vector.shape_cast %25 : vector<1x32x8xf32> to vector<32x8xf32>
    %cst_14 = arith.constant dense<0.000000e+00> : vector<8x8xf32>
    %27 = tpu.matmul %23, %26, %cst_14 {dimension_numbers = #tpu.dot_dimension_numbers<[1], [0], [0], [1], [0, 0, 1, 1], [], []>} : vector<8x32xf32>, vector<32x8xf32>, vector<8x8xf32> -> vector<8x8xf32>
    %c0_15 = arith.constant 0 : index
    %c0_16 = arith.constant 0 : index
    %c0_17 = arith.constant 0 : index
    %28 = vector.load %arg5[%c0_15, %c0_16, %c0_17] : memref<4x32x8xf32, #tpu.memory_space<vmem>>, vector<1x32x8xf32>
    %29 = vector.shape_cast %28 : vector<1x32x8xf32> to vector<32x8xf32>
    %cst_18 = arith.constant dense<0.000000e+00> : vector<8x8xf32>
    %30 = tpu.matmul %23, %29, %cst_18 {dimension_numbers = #tpu.dot_dimension_numbers<[1], [0], [0], [1], [0, 0, 1, 1], [], []>} : vector<8x32xf32>, vector<32x8xf32>, vector<8x8xf32> -> vector<8x8xf32>
    %c0_19 = arith.constant 0 : index
    %c0_20 = arith.constant 0 : index
    %c0_21 = arith.constant 0 : index
    %31 = vector.load %arg6[%c0_19, %c0_20, %c0_21] : memref<4x32x8xf32, #tpu.memory_space<vmem>>, vector<1x32x8xf32>
    %32 = vector.shape_cast %31 : vector<1x32x8xf32> to vector<32x8xf32>
    %cst_22 = arith.constant dense<0.000000e+00> : vector<8x8xf32>
    %33 = tpu.matmul %23, %32, %cst_22 {dimension_numbers = #tpu.dot_dimension_numbers<[1], [0], [0], [1], [0, 0, 1, 1], [], []>} : vector<8x32xf32>, vector<32x8xf32>, vector<8x8xf32> -> vector<8x8xf32>
    %cst_23 = arith.constant dense<0.000000e+00> : vector<8x8xf32>
    %34 = tpu.matmul %27, %30, %cst_23 {dimension_numbers = #tpu.dot_dimension_numbers<[1], [1], [0], [0], [0, 0, 1, 0], [], []>} : vector<8x8xf32>, vector<8x8xf32>, vector<8x8xf32> -> vector<8x8xf32>
    %cst_24 = arith.constant 0.353553385 : f32
    %35 = vector.broadcast %cst_24 : f32 to vector<8x8xf32>
    %36 = arith.mulf %34, %35 : vector<8x8xf32>
    %cst_25 = arith.constant dense<0xFF800000> : vector<8xf32>
    %37 = vector.multi_reduction <maximumf>, %36, %cst_25 [1] : vector<8x8xf32> to vector<8xf32>
    %38 = vector.shape_cast %37 : vector<8xf32> to vector<8x1xf32>
    %39 = vector.broadcast %38 : vector<8x1xf32> to vector<8x8xf32>
    %40 = arith.subf %36, %39 : vector<8x8xf32>
    %41 = math.exp %40 : vector<8x8xf32>
    %cst_26 = arith.constant dense<0.000000e+00> : vector<8xf32>
    %42 = vector.multi_reduction <add>, %41, %cst_26 [1] : vector<8x8xf32> to vector<8xf32>
    %43 = vector.shape_cast %42 : vector<8xf32> to vector<8x1xf32>
    %44 = vector.broadcast %43 : vector<8x1xf32> to vector<8x8xf32>
    %45 = arith.divf %41, %44 : vector<8x8xf32>
    %cst_27 = arith.constant dense<0.000000e+00> : vector<8x8xf32>
    %46 = tpu.matmul %45, %33, %cst_27 {dimension_numbers = #tpu.dot_dimension_numbers<[1], [0], [0], [1], [0, 0, 1, 1], [], []>} : vector<8x8xf32>, vector<8x8xf32>, vector<8x8xf32> -> vector<8x8xf32>
    %c0_28 = arith.constant 0 : index
    %c0_29 = arith.constant 0 : index
    %c0_30 = arith.constant 0 : index
    %47 = vector.load %arg7[%c0_28, %c0_29, %c0_30] : memref<4x8x32xf32, #tpu.memory_space<vmem>>, vector<1x8x32xf32>
    %48 = vector.shape_cast %47 : vector<1x8x32xf32> to vector<8x32xf32>
    %cst_31 = arith.constant dense<0.000000e+00> : vector<8x32xf32>
    %49 = tpu.matmul %46, %48, %cst_31 {dimension_numbers = #tpu.dot_dimension_numbers<[1], [0], [0], [1], [0, 0, 1, 1], [], []>} : vector<8x8xf32>, vector<8x32xf32>, vector<8x32xf32> -> vector<8x32xf32>
    %50 = arith.addf %24, %49 : vector<8x32xf32>
    %c1 = arith.constant 1 : index
    %c0_32 = arith.constant 0 : index
    %c0_33 = arith.constant 0 : index
    %51 = vector.load %arg4[%c1, %c0_32, %c0_33] : memref<4x32x8xf32, #tpu.memory_space<vmem>>, vector<1x32x8xf32>
    %52 = vector.shape_cast %51 : vector<1x32x8xf32> to vector<32x8xf32>
    %cst_34 = arith.constant dense<0.000000e+00> : vector<8x8xf32>
    %53 = tpu.matmul %23, %52, %cst_34 {dimension_numbers = #tpu.dot_dimension_numbers<[1], [0], [0], [1], [0, 0, 1, 1], [], []>} : vector<8x32xf32>, vector<32x8xf32>, vector<8x8xf32> -> vector<8x8xf32>
    %c1_35 = arith.constant 1 : index
    %c0_36 = arith.constant 0 : index
    %c0_37 = arith.constant 0 : index
    %54 = vector.load %arg5[%c1_35, %c0_36, %c0_37] : memref<4x32x8xf32, #tpu.memory_space<vmem>>, vector<1x32x8xf32>
    %55 = vector.shape_cast %54 : vector<1x32x8xf32> to vector<32x8xf32>
    %cst_38 = arith.constant dense<0.000000e+00> : vector<8x8xf32>
    %56 = tpu.matmul %23, %55, %cst_38 {dimension_numbers = #tpu.dot_dimension_numbers<[1], [0], [0], [1], [0, 0, 1, 1], [], []>} : vector<8x32xf32>, vector<32x8xf32>, vector<8x8xf32> -> vector<8x8xf32>
    %c1_39 = arith.constant 1 : index
    %c0_40 = arith.constant 0 : index
    %c0_41 = arith.constant 0 : index
    %57 = vector.load %arg6[%c1_39, %c0_40, %c0_41] : memref<4x32x8xf32, #tpu.memory_space<vmem>>, vector<1x32x8xf32>
    %58 = vector.shape_cast %57 : vector<1x32x8xf32> to vector<32x8xf32>
    %cst_42 = arith.constant dense<0.000000e+00> : vector<8x8xf32>
    %59 = tpu.matmul %23, %58, %cst_42 {dimension_numbers = #tpu.dot_dimension_numbers<[1], [0], [0], [1], [0, 0, 1, 1], [], []>} : vector<8x32xf32>, vector<32x8xf32>, vector<8x8xf32> -> vector<8x8xf32>
    %cst_43 = arith.constant dense<0.000000e+00> : vector<8x8xf32>
    %60 = tpu.matmul %53, %56, %cst_43 {dimension_numbers = #tpu.dot_dimension_numbers<[1], [1], [0], [0], [0, 0, 1, 0], [], []>} : vector<8x8xf32>, vector<8x8xf32>, vector<8x8xf32> -> vector<8x8xf32>
    %cst_44 = arith.constant 0.353553385 : f32
    %61 = vector.broadcast %cst_44 : f32 to vector<8x8xf32>
    %62 = arith.mulf %60, %61 : vector<8x8xf32>
    %cst_45 = arith.constant dense<0xFF800000> : vector<8xf32>
    %63 = vector.multi_reduction <maximumf>, %62, %cst_45 [1] : vector<8x8xf32> to vector<8xf32>
    %64 = vector.shape_cast %63 : vector<8xf32> to vector<8x1xf32>
    %65 = vector.broadcast %64 : vector<8x1xf32> to vector<8x8xf32>
    %66 = arith.subf %62, %65 : vector<8x8xf32>
    %67 = math.exp %66 : vector<8x8xf32>
    %cst_46 = arith.constant dense<0.000000e+00> : vector<8xf32>
    %68 = vector.multi_reduction <add>, %67, %cst_46 [1] : vector<8x8xf32> to vector<8xf32>
    %69 = vector.shape_cast %68 : vector<8xf32> to vector<8x1xf32>
    %70 = vector.broadcast %69 : vector<8x1xf32> to vector<8x8xf32>
    %71 = arith.divf %67, %70 : vector<8x8xf32>
    %cst_47 = arith.constant dense<0.000000e+00> : vector<8x8xf32>
    %72 = tpu.matmul %71, %59, %cst_47 {dimension_numbers = #tpu.dot_dimension_numbers<[1], [0], [0], [1], [0, 0, 1, 1], [], []>} : vector<8x8xf32>, vector<8x8xf32>, vector<8x8xf32> -> vector<8x8xf32>
    %c1_48 = arith.constant 1 : index
    %c0_49 = arith.constant 0 : index
    %c0_50 = arith.constant 0 : index
    %73 = vector.load %arg7[%c1_48, %c0_49, %c0_50] : memref<4x8x32xf32, #tpu.memory_space<vmem>>, vector<1x8x32xf32>
    %74 = vector.shape_cast %73 : vector<1x8x32xf32> to vector<8x32xf32>
    %cst_51 = arith.constant dense<0.000000e+00> : vector<8x32xf32>
    %75 = tpu.matmul %72, %74, %cst_51 {dimension_numbers = #tpu.dot_dimension_numbers<[1], [0], [0], [1], [0, 0, 1, 1], [], []>} : vector<8x8xf32>, vector<8x32xf32>, vector<8x32xf32> -> vector<8x32xf32>
    %76 = arith.addf %50, %75 : vector<8x32xf32>
    %c2 = arith.constant 2 : index
    %c0_52 = arith.constant 0 : index
    %c0_53 = arith.constant 0 : index
    %77 = vector.load %arg4[%c2, %c0_52, %c0_53] : memref<4x32x8xf32, #tpu.memory_space<vmem>>, vector<1x32x8xf32>
    %78 = vector.shape_cast %77 : vector<1x32x8xf32> to vector<32x8xf32>
    %cst_54 = arith.constant dense<0.000000e+00> : vector<8x8xf32>
    %79 = tpu.matmul %23, %78, %cst_54 {dimension_numbers = #tpu.dot_dimension_numbers<[1], [0], [0], [1], [0, 0, 1, 1], [], []>} : vector<8x32xf32>, vector<32x8xf32>, vector<8x8xf32> -> vector<8x8xf32>
    %c2_55 = arith.constant 2 : index
    %c0_56 = arith.constant 0 : index
    %c0_57 = arith.constant 0 : index
    %80 = vector.load %arg5[%c2_55, %c0_56, %c0_57] : memref<4x32x8xf32, #tpu.memory_space<vmem>>, vector<1x32x8xf32>
    %81 = vector.shape_cast %80 : vector<1x32x8xf32> to vector<32x8xf32>
    %cst_58 = arith.constant dense<0.000000e+00> : vector<8x8xf32>
    %82 = tpu.matmul %23, %81, %cst_58 {dimension_numbers = #tpu.dot_dimension_numbers<[1], [0], [0], [1], [0, 0, 1, 1], [], []>} : vector<8x32xf32>, vector<32x8xf32>, vector<8x8xf32> -> vector<8x8xf32>
    %c2_59 = arith.constant 2 : index
    %c0_60 = arith.constant 0 : index
    %c0_61 = arith.constant 0 : index
    %83 = vector.load %arg6[%c2_59, %c0_60, %c0_61] : memref<4x32x8xf32, #tpu.memory_space<vmem>>, vector<1x32x8xf32>
    %84 = vector.shape_cast %83 : vector<1x32x8xf32> to vector<32x8xf32>
    %cst_62 = arith.constant dense<0.000000e+00> : vector<8x8xf32>
    %85 = tpu.matmul %23, %84, %cst_62 {dimension_numbers = #tpu.dot_dimension_numbers<[1], [0], [0], [1], [0, 0, 1, 1], [], []>} : vector<8x32xf32>, vector<32x8xf32>, vector<8x8xf32> -> vector<8x8xf32>
    %cst_63 = arith.constant dense<0.000000e+00> : vector<8x8xf32>
    %86 = tpu.matmul %79, %82, %cst_63 {dimension_numbers = #tpu.dot_dimension_numbers<[1], [1], [0], [0], [0, 0, 1, 0], [], []>} : vector<8x8xf32>, vector<8x8xf32>, vector<8x8xf32> -> vector<8x8xf32>
    %cst_64 = arith.constant 0.353553385 : f32
    %87 = vector.broadcast %cst_64 : f32 to vector<8x8xf32>
    %88 = arith.mulf %86, %87 : vector<8x8xf32>
    %cst_65 = arith.constant dense<0xFF800000> : vector<8xf32>
    %89 = vector.multi_reduction <maximumf>, %88, %cst_65 [1] : vector<8x8xf32> to vector<8xf32>
    %90 = vector.shape_cast %89 : vector<8xf32> to vector<8x1xf32>
    %91 = vector.broadcast %90 : vector<8x1xf32> to vector<8x8xf32>
    %92 = arith.subf %88, %91 : vector<8x8xf32>
    %93 = math.exp %92 : vector<8x8xf32>
    %cst_66 = arith.constant dense<0.000000e+00> : vector<8xf32>
    %94 = vector.multi_reduction <add>, %93, %cst_66 [1] : vector<8x8xf32> to vector<8xf32>
    %95 = vector.shape_cast %94 : vector<8xf32> to vector<8x1xf32>
    %96 = vector.broadcast %95 : vector<8x1xf32> to vector<8x8xf32>
    %97 = arith.divf %93, %96 : vector<8x8xf32>
    %cst_67 = arith.constant dense<0.000000e+00> : vector<8x8xf32>
    %98 = tpu.matmul %97, %85, %cst_67 {dimension_numbers = #tpu.dot_dimension_numbers<[1], [0], [0], [1], [0, 0, 1, 1], [], []>} : vector<8x8xf32>, vector<8x8xf32>, vector<8x8xf32> -> vector<8x8xf32>
    %c2_68 = arith.constant 2 : index
    %c0_69 = arith.constant 0 : index
    %c0_70 = arith.constant 0 : index
    %99 = vector.load %arg7[%c2_68, %c0_69, %c0_70] : memref<4x8x32xf32, #tpu.memory_space<vmem>>, vector<1x8x32xf32>
    %100 = vector.shape_cast %99 : vector<1x8x32xf32> to vector<8x32xf32>
    %cst_71 = arith.constant dense<0.000000e+00> : vector<8x32xf32>
    %101 = tpu.matmul %98, %100, %cst_71 {dimension_numbers = #tpu.dot_dimension_numbers<[1], [0], [0], [1], [0, 0, 1, 1], [], []>} : vector<8x8xf32>, vector<8x32xf32>, vector<8x32xf32> -> vector<8x32xf32>
    %102 = arith.addf %76, %101 : vector<8x32xf32>
    %c3 = arith.constant 3 : index
    %c0_72 = arith.constant 0 : index
    %c0_73 = arith.constant 0 : index
    %103 = vector.load %arg4[%c3, %c0_72, %c0_73] : memref<4x32x8xf32, #tpu.memory_space<vmem>>, vector<1x32x8xf32>
    %104 = vector.shape_cast %103 : vector<1x32x8xf32> to vector<32x8xf32>
    %cst_74 = arith.constant dense<0.000000e+00> : vector<8x8xf32>
    %105 = tpu.matmul %23, %104, %cst_74 {dimension_numbers = #tpu.dot_dimension_numbers<[1], [0], [0], [1], [0, 0, 1, 1], [], []>} : vector<8x32xf32>, vector<32x8xf32>, vector<8x8xf32> -> vector<8x8xf32>
    %c3_75 = arith.constant 3 : index
    %c0_76 = arith.constant 0 : index
    %c0_77 = arith.constant 0 : index
    %106 = vector.load %arg5[%c3_75, %c0_76, %c0_77] : memref<4x32x8xf32, #tpu.memory_space<vmem>>, vector<1x32x8xf32>
    %107 = vector.shape_cast %106 : vector<1x32x8xf32> to vector<32x8xf32>
    %cst_78 = arith.constant dense<0.000000e+00> : vector<8x8xf32>
    %108 = tpu.matmul %23, %107, %cst_78 {dimension_numbers = #tpu.dot_dimension_numbers<[1], [0], [0], [1], [0, 0, 1, 1], [], []>} : vector<8x32xf32>, vector<32x8xf32>, vector<8x8xf32> -> vector<8x8xf32>
    %c3_79 = arith.constant 3 : index
    %c0_80 = arith.constant 0 : index
    %c0_81 = arith.constant 0 : index
    %109 = vector.load %arg6[%c3_79, %c0_80, %c0_81] : memref<4x32x8xf32, #tpu.memory_space<vmem>>, vector<1x32x8xf32>
    %110 = vector.shape_cast %109 : vector<1x32x8xf32> to vector<32x8xf32>
    %cst_82 = arith.constant dense<0.000000e+00> : vector<8x8xf32>
    %111 = tpu.matmul %23, %110, %cst_82 {dimension_numbers = #tpu.dot_dimension_numbers<[1], [0], [0], [1], [0, 0, 1, 1], [], []>} : vector<8x32xf32>, vector<32x8xf32>, vector<8x8xf32> -> vector<8x8xf32>
    %cst_83 = arith.constant dense<0.000000e+00> : vector<8x8xf32>
    %112 = tpu.matmul %105, %108, %cst_83 {dimension_numbers = #tpu.dot_dimension_numbers<[1], [1], [0], [0], [0, 0, 1, 0], [], []>} : vector<8x8xf32>, vector<8x8xf32>, vector<8x8xf32> -> vector<8x8xf32>
    %cst_84 = arith.constant 0.353553385 : f32
    %113 = vector.broadcast %cst_84 : f32 to vector<8x8xf32>
    %114 = arith.mulf %112, %113 : vector<8x8xf32>
    %cst_85 = arith.constant dense<0xFF800000> : vector<8xf32>
    %115 = vector.multi_reduction <maximumf>, %114, %cst_85 [1] : vector<8x8xf32> to vector<8xf32>
    %116 = vector.shape_cast %115 : vector<8xf32> to vector<8x1xf32>
    %117 = vector.broadcast %116 : vector<8x1xf32> to vector<8x8xf32>
    %118 = arith.subf %114, %117 : vector<8x8xf32>
    %119 = math.exp %118 : vector<8x8xf32>
    %cst_86 = arith.constant dense<0.000000e+00> : vector<8xf32>
    %120 = vector.multi_reduction <add>, %119, %cst_86 [1] : vector<8x8xf32> to vector<8xf32>
    %121 = vector.shape_cast %120 : vector<8xf32> to vector<8x1xf32>
    %122 = vector.broadcast %121 : vector<8x1xf32> to vector<8x8xf32>
    %123 = arith.divf %119, %122 : vector<8x8xf32>
    %cst_87 = arith.constant dense<0.000000e+00> : vector<8x8xf32>
    %124 = tpu.matmul %123, %111, %cst_87 {dimension_numbers = #tpu.dot_dimension_numbers<[1], [0], [0], [1], [0, 0, 1, 1], [], []>} : vector<8x8xf32>, vector<8x8xf32>, vector<8x8xf32> -> vector<8x8xf32>
    %c3_88 = arith.constant 3 : index
    %c0_89 = arith.constant 0 : index
    %c0_90 = arith.constant 0 : index
    %125 = vector.load %arg7[%c3_88, %c0_89, %c0_90] : memref<4x8x32xf32, #tpu.memory_space<vmem>>, vector<1x8x32xf32>
    %126 = vector.shape_cast %125 : vector<1x8x32xf32> to vector<8x32xf32>
    %cst_91 = arith.constant dense<0.000000e+00> : vector<8x32xf32>
    %127 = tpu.matmul %124, %126, %cst_91 {dimension_numbers = #tpu.dot_dimension_numbers<[1], [0], [0], [1], [0, 0, 1, 1], [], []>} : vector<8x8xf32>, vector<8x32xf32>, vector<8x32xf32> -> vector<8x32xf32>
    %128 = arith.addf %102, %127 : vector<8x32xf32>
    %129 = arith.addf %128, %1 : vector<8x32xf32>
    %c0_92 = arith.constant 0 : index
    %c0_93 = arith.constant 0 : index
    %130 = vector.load %arg8[%c0_92, %c0_93] : memref<1x32xf32, #tpu.memory_space<vmem>>, vector<1x32xf32>
    %c0_94 = arith.constant 0 : index
    %c0_95 = arith.constant 0 : index
    %131 = vector.load %arg9[%c0_94, %c0_95] : memref<1x32xf32, #tpu.memory_space<vmem>>, vector<1x32xf32>
    %c0_96 = arith.constant 0 : index
    %c0_97 = arith.constant 0 : index
    %132 = vector.load %arg10[%c0_96, %c0_97] : memref<32x128xf32, #tpu.memory_space<vmem>>, vector<32x128xf32>
    %c0_98 = arith.constant 0 : index
    %c0_99 = arith.constant 0 : index
    %133 = vector.load %arg11[%c0_98, %c0_99] : memref<128x32xf32, #tpu.memory_space<vmem>>, vector<128x32xf32>
    %cst_100 = arith.constant dense<0.000000e+00> : vector<8xf32>
    %134 = vector.multi_reduction <add>, %129, %cst_100 [1] : vector<8x32xf32> to vector<8xf32>
    %135 = vector.shape_cast %134 : vector<8xf32> to vector<8x1xf32>
    %cst_101 = arith.constant 3.200000e+01 : f32
    %136 = vector.broadcast %cst_101 : f32 to vector<8x1xf32>
    %137 = arith.divf %135, %136 : vector<8x1xf32>
    %138 = vector.broadcast %137 : vector<8x1xf32> to vector<8x32xf32>
    %139 = arith.subf %129, %138 : vector<8x32xf32>
    %140 = arith.mulf %139, %139 : vector<8x32xf32>
    %cst_102 = arith.constant dense<0.000000e+00> : vector<8xf32>
    %141 = vector.multi_reduction <add>, %140, %cst_102 [1] : vector<8x32xf32> to vector<8xf32>
    %142 = vector.shape_cast %141 : vector<8xf32> to vector<8x1xf32>
    %cst_103 = arith.constant 3.200000e+01 : f32
    %143 = vector.broadcast %cst_103 : f32 to vector<8x1xf32>
    %144 = arith.divf %142, %143 : vector<8x1xf32>
    %cst_104 = arith.constant 9.99999974E-6 : f32
    %145 = vector.broadcast %cst_104 : f32 to vector<8x1xf32>
    %146 = arith.addf %144, %145 : vector<8x1xf32>
    %147 = math.rsqrt %146 : vector<8x1xf32>
    %148 = vector.broadcast %147 : vector<8x1xf32> to vector<8x32xf32>
    %149 = arith.mulf %139, %148 : vector<8x32xf32>
    %150 = vector.broadcast %130 : vector<1x32xf32> to vector<8x32xf32>
    %151 = arith.mulf %149, %150 : vector<8x32xf32>
    %152 = vector.broadcast %131 : vector<1x32xf32> to vector<8x32xf32>
    %153 = arith.addf %151, %152 : vector<8x32xf32>
    %cst_105 = arith.constant dense<0.000000e+00> : vector<8x128xf32>
    %154 = tpu.matmul %153, %132, %cst_105 {dimension_numbers = #tpu.dot_dimension_numbers<[1], [0], [0], [1], [0, 0, 1, 1], [], []>} : vector<8x32xf32>, vector<32x128xf32>, vector<8x128xf32> -> vector<8x128xf32>
    %cst_106 = arith.constant 5.000000e-01 : f32
    %155 = vector.broadcast %cst_106 : f32 to vector<8x128xf32>
    %156 = arith.mulf %155, %154 : vector<8x128xf32>
    %cst_107 = arith.constant 4.471500e-02 : f32
    %157 = vector.broadcast %cst_107 : f32 to vector<8x128xf32>
    %158 = arith.mulf %157, %154 : vector<8x128xf32>
    %159 = arith.mulf %158, %154 : vector<8x128xf32>
    %160 = arith.mulf %159, %154 : vector<8x128xf32>
    %161 = arith.addf %154, %160 : vector<8x128xf32>
    %cst_108 = arith.constant 0.797884583 : f32
    %162 = vector.broadcast %cst_108 : f32 to vector<8x128xf32>
    %163 = arith.mulf %162, %161 : vector<8x128xf32>
    %164 = math.tanh %163 : vector<8x128xf32>
    %cst_109 = arith.constant 1.000000e+00 : f32
    %165 = vector.broadcast %cst_109 : f32 to vector<8x128xf32>
    %166 = arith.addf %165, %164 : vector<8x128xf32>
    %167 = arith.mulf %156, %166 : vector<8x128xf32>
    %cst_110 = arith.constant dense<0.000000e+00> : vector<8x32xf32>
    %168 = tpu.matmul %167, %133, %cst_110 {dimension_numbers = #tpu.dot_dimension_numbers<[1], [0], [0], [1], [0, 0, 1, 1], [], []>} : vector<8x128xf32>, vector<128x32xf32>, vector<8x32xf32> -> vector<8x32xf32>
    %169 = arith.addf %168, %129 : vector<8x32xf32>
    %c0_111 = arith.constant 0 : index
    %c0_112 = arith.constant 0 : index
    %c0_113 = arith.constant 0 : index
    %170 = vector.load %arg12[%c0_111, %c0_112, %c0_113] : memref<1x8x32xf32, #tpu.memory_space<vmem>>, vector<1x8x32xf32>
    %171 = vector.shape_cast %170 : vector<1x8x32xf32> to vector<8x32xf32>
    %172 = vector.shape_cast %169 : vector<8x32xf32> to vector<1x8x32xf32>
    tpu.vector_store %arg12[%c0_111, %c0_112, %c0_113], %172 {strides = array<i32>} : memref<1x8x32xf32, #tpu.memory_space<vmem>>, vector<1x8x32xf32>,
    return
  }
  func.func @transform_0(%arg0: i32) -> (i32, i32, i32) {
    %c0_i32 = arith.constant 0 : i32
    %c0_i32_0 = arith.constant 0 : i32
    %c0_i32_1 = arith.constant 0 : i32
    return %arg0, %c0_i32, %c0_i32_0 : i32, i32, i32
  }
  func.func @transform_1(%arg0: i32) -> (i32, i32) {
    %c0_i32 = arith.constant 0 : i32
    %c0_i32_0 = arith.constant 0 : i32
    %c0_i32_1 = arith.constant 0 : i32
    return %c0_i32, %c0_i32_0 : i32, i32
  }
  func.func @transform_2(%arg0: i32) -> (i32, i32) {
    %c0_i32 = arith.constant 0 : i32
    %c0_i32_0 = arith.constant 0 : i32
    %c0_i32_1 = arith.constant 0 : i32
    return %c0_i32, %c0_i32_0 : i32, i32
  }
  func.func @transform_3(%arg0: i32) -> (i32, i32, i32) {
    %c0_i32 = arith.constant 0 : i32
    %c0_i32_0 = arith.constant 0 : i32
    %c0_i32_1 = arith.constant 0 : i32
    %c0_i32_2 = arith.constant 0 : i32
    return %c0_i32, %c0_i32_0, %c0_i32_1 : i32, i32, i32
  }
  func.func @transform_4(%arg0: i32) -> (i32, i32, i32) {
    %c0_i32 = arith.constant 0 : i32
    %c0_i32_0 = arith.constant 0 : i32
    %c0_i32_1 = arith.constant 0 : i32
    %c0_i32_2 = arith.constant 0 : i32
    return %c0_i32, %c0_i32_0, %c0_i32_1 : i32, i32, i32
  }
  func.func @transform_5(%arg0: i32) -> (i32, i32, i32) {
    %c0_i32 = arith.constant 0 : i32
    %c0_i32_0 = arith.constant 0 : i32
    %c0_i32_1 = arith.constant 0 : i32
    %c0_i32_2 = arith.constant 0 : i32
    return %c0_i32, %c0_i32_0, %c0_i32_1 : i32, i32, i32
  }
  func.func @transform_6(%arg0: i32) -> (i32, i32, i32) {
    %c0_i32 = arith.constant 0 : i32
    %c0_i32_0 = arith.constant 0 : i32
    %c0_i32_1 = arith.constant 0 : i32
    %c0_i32_2 = arith.constant 0 : i32
    return %c0_i32, %c0_i32_0, %c0_i32_1 : i32, i32, i32
  }
  func.func @transform_7(%arg0: i32) -> (i32, i32) {
    %c0_i32 = arith.constant 0 : i32
    %c0_i32_0 = arith.constant 0 : i32
    %c0_i32_1 = arith.constant 0 : i32
    return %c0_i32, %c0_i32_0 : i32, i32
  }
  func.func @transform_8(%arg0: i32) -> (i32, i32) {
    %c0_i32 = arith.constant 0 : i32
    %c0_i32_0 = arith.constant 0 : i32
    %c0_i32_1 = arith.constant 0 : i32
    return %c0_i32, %c0_i32_0 : i32, i32
  }
  func.func @transform_9(%arg0: i32) -> (i32, i32) {
    %c0_i32 = arith.constant 0 : i32
    %c0_i32_0 = arith.constant 0 : i32
    %c0_i32_1 = arith.constant 0 : i32
    return %c0_i32, %c0_i32_0 : i32, i32
  }
  func.func @transform_10(%arg0: i32) -> (i32, i32) {
    %c0_i32 = arith.constant 0 : i32
    %c0_i32_0 = arith.constant 0 : i32
    %c0_i32_1 = arith.constant 0 : i32
    return %c0_i32, %c0_i32_0 : i32, i32
  }
  func.func @transform_11(%arg0: i32) -> (i32, i32, i32) {
    %c0_i32 = arith.constant 0 : i32
    %c0_i32_0 = arith.constant 0 : i32
    %c0_i32_1 = arith.constant 0 : i32
    return %arg0, %c0_i32, %c0_i32_0 : i32, i32, i32
  }
}

module attributes {stable_mosaic.version = 11 : i64} {
  func.func @_layer_self_kernel(%arg0: i32, %arg1: memref<1x8x32xf32, #tpu.memory_space<vmem>>, %arg2: memref<1x32xf32, #tpu.memory_space<vmem>>, %arg3: memref<1x32xf32, #tpu.memory_space<vmem>>, %arg4: memref<4x32x8xf32, #tpu.memory_space<vmem>>, %arg5: memref<4x32x8xf32, #tpu.memory_space<vmem>>, %arg6: memref<4x32x8xf32, #tpu.memory_space<vmem>>, %arg7: memref<4x8x32xf32, #tpu.memory_space<vmem>>, %arg8: memref<1x32xf32, #tpu.memory_space<vmem>>, %arg9: memref<1x32xf32, #tpu.memory_space<vmem>>, %arg10: memref<32x128xf32, #tpu.memory_space<vmem>>, %arg11: memref<128x32xf32, #tpu.memory_space<vmem>>, %arg12: memref<1x8x32xf32, #tpu.memory_space<vmem>>) attributes {dimension_semantics = [#tpu.dimension_semantics<parallel>], iteration_bounds = array<i64: 2>, scalar_prefetch = 0 : i64, scratch_operands = 0 : i64, tpu.core_type = #tpu.core_type<tc>, window_params = [{transform_indices = @transform_0, window_bounds = array<i64: 1, 8, 32>}, {pipeline_mode = #tpu.pipeline_mode<synchronous>, transform_indices = @transform_1, window_bounds = array<i64: 1, 32>}, {pipeline_mode = #tpu.pipeline_mode<synchronous>, transform_indices = @transform_2, window_bounds = array<i64: 1, 32>}, {pipeline_mode = #tpu.pipeline_mode<synchronous>, transform_indices = @transform_3, window_bounds = array<i64: 4, 32, 8>}, {pipeline_mode = #tpu.pipeline_mode<synchronous>, transform_indices = @transform_4, window_bounds = array<i64: 4, 32, 8>}, {pipeline_mode = #tpu.pipeline_mode<synchronous>, transform_indices = @transform_5, window_bounds = array<i64: 4, 32, 8>}, {pipeline_mode = #tpu.pipeline_mode<synchronous>, transform_indices = @transform_6, window_bounds = array<i64: 4, 8, 32>}, {pipeline_mode = #tpu.pipeline_mode<synchronous>, transform_indices = @transform_7, window_bounds = array<i64: 1, 32>}, {pipeline_mode = #tpu.pipeline_mode<synchronous>, transform_indices = @transform_8, window_bounds = array<i64: 1, 32>}, {pipeline_mode = #tpu.pipeline_mode<synchronous>, transform_indices = @transform_9, window_bounds = array<i64: 32, 128>}, {pipeline_mode = #tpu.pipeline_mode<synchronous>, transform_indices = @transform_10, window_bounds = array<i64: 128, 32>}, {transform_indices = @transform_11, window_bounds = array<i64: 1, 8, 32>}]} {
    %c0 = arith.constant 0 : index
    %c0_0 = arith.constant 0 : index
    %c0_1 = arith.constant 0 : index
    %0 = vector.load %arg1[%c0, %c0_0, %c0_1] : memref<1x8x32xf32, #tpu.memory_space<vmem>>, vector<1x8x32xf32>
    %1 = vector.shape_cast %0 : vector<1x8x32xf32> to vector<8x32xf32>
    %c0_2 = arith.constant 0 : index
    %c0_3 = arith.constant 0 : index
    %2 = vector.load %arg2[%c0_2, %c0_3] : memref<1x32xf32, #tpu.memory_space<vmem>>, vector<1x32xf32>
    %c0_4 = arith.constant 0 : index
    %c0_5 = arith.constant 0 : index
    %3 = vector.load %arg3[%c0_4, %c0_5] : memref<1x32xf32, #tpu.memory_space<vmem>>, vector<1x32xf32>
    %cst = arith.constant dense<0.000000e+00> : vector<8xf32>
    %4 = vector.multi_reduction <add>, %1, %cst [1] : vector<8x32xf32> to vector<8xf32>
    %5 = vector.shape_cast %4 : vector<8xf32> to vector<8x1xf32>
    %cst_6 = arith.constant 3.200000e+01 : f32
    %6 = vector.broadcast %cst_6 : f32 to vector<8x1xf32>
    %7 = arith.divf %5, %6 : vector<8x1xf32>
    %8 = vector.broadcast %7 : vector<8x1xf32> to vector<8x32xf32>
    %9 = arith.subf %1, %8 : vector<8x32xf32>
    %10 = arith.mulf %9, %9 : vector<8x32xf32>
    %cst_7 = arith.constant dense<0.000000e+00> : vector<8xf32>
    %11 = vector.multi_reduction <add>, %10, %cst_7 [1] : vector<8x32xf32> to vector<8xf32>
    %12 = vector.shape_cast %11 : vector<8xf32> to vector<8x1xf32>
    %cst_8 = arith.constant 3.200000e+01 : f32
    %13 = vector.broadcast %cst_8 : f32 to vector<8x1xf32>
    %14 = arith.divf %12, %13 : vector<8x1xf32>
    %cst_9 = arith.constant 9.99999974E-6 : f32
    %15 = vector.broadcast %cst_9 : f32 to vector<8x1xf32>
    %16 = arith.addf %14, %15 : vector<8x1xf32>
    %17 = math.rsqrt %16 : vector<8x1xf32>
    %18 = vector.broadcast %17 : vector<8x1xf32> to vector<8x32xf32>
    %19 = arith.mulf %9, %18 : vector<8x32xf32>
    %20 = vector.broadcast %2 : vector<1x32xf32> to vector<8x32xf32>
    %21 = arith.mulf %19, %20 : vector<8x32xf32>
    %22 = vector.broadcast %3 : vector<1x32xf32> to vector<8x32xf32>
    %23 = arith.addf %21, %22 : vector<8x32xf32>
    %cst_10 = arith.constant 0.000000e+00 : f32
    %24 = vector.broadcast %cst_10 : f32 to vector<8x32xf32>
    %c0_11 = arith.constant 0 : index
    %c0_12 = arith.constant 0 : index
    %c0_13 = arith.constant 0 : index
    %25 = vector.load %arg4[%c0_11, %c0_12, %c0_13] : memref<4x32x8xf32, #tpu.memory_space<vmem>>, vector<1x32x8xf32>
    %26 = vector.shape_cast %25 : vector<1x32x8xf32> to vector<32x8xf32>
    %cst_14 = arith.constant dense<0.000000e+00> : vector<8x8xf32>
    %27 = tpu.matmul %23, %26, %cst_14 {dimension_numbers = #tpu.dot_dimension_numbers<[1], [0], [0], [1], [0, 0, 1, 1], [], []>} : vector<8x32xf32>, vector<32x8xf32>, vector<8x8xf32> -> vector<8x8xf32>
    %c0_15 = arith.constant 0 : index
    %c0_16 = arith.constant 0 : index
    %c0_17 = arith.constant 0 : index
    %28 = vector.load %arg5[%c0_15, %c0_16, %c0_17] : memref<4x32x8xf32, #tpu.memory_space<vmem>>, vector<1x32x8xf32>
    %29 = vector.shape_cast %28 : vector<1x32x8xf32> to vector<32x8xf32>
    %cst_18 = arith.constant dense<0.000000e+00> : vector<8x8xf32>
    %30 = tpu.matmul %23, %29, %cst_18 {dimension_numbers = #tpu.dot_dimension_numbers<[1], [0], [0], [1], [0, 0, 1, 1], [], []>} : vector<8x32xf32>, vector<32x8xf32>, vector<8x8xf32> -> vector<8x8xf32>
    %c0_19 = arith.constant 0 : index
    %c0_20 = arith.constant 0 : index
    %c0_21 = arith.constant 0 : index
    %31 = vector.load %arg6[%c0_19, %c0_20, %c0_21] : memref<4x32x8xf32, #tpu.memory_space<vmem>>, vector<1x32x8xf32>
    %32 = vector.shape_cast %31 : vector<1x32x8xf32> to vector<32x8xf32>
    %cst_22 = arith.constant dense<0.000000e+00> : vector<8x8xf32>
    %33 = tpu.matmul %23, %32, %cst_22 {dimension_numbers = #tpu.dot_dimension_numbers<[1], [0], [0], [1], [0, 0, 1, 1], [], []>} : vector<8x32xf32>, vector<32x8xf32>, vector<8x8xf32> -> vector<8x8xf32>
    %cst_23 = arith.constant dense<0.000000e+00> : vector<8x8xf32>
    %34 = tpu.matmul %27, %30, %cst_23 {dimension_numbers = #tpu.dot_dimension_numbers<[1], [1], [0], [0], [0, 0, 1, 0], [], []>} : vector<8x8xf32>, vector<8x8xf32>, vector<8x8xf32> -> vector<8x8xf32>
    %cst_24 = arith.constant 0.353553385 : f32
    %35 = vector.broadcast %cst_24 : f32 to vector<8x8xf32>
    %36 = arith.mulf %34, %35 : vector<8x8xf32>
    %cst_25 = arith.constant dense<0xFF800000> : vector<8xf32>
    %37 = vector.multi_reduction <maximumf>, %36, %cst_25 [1] : vector<8x8xf32> to vector<8xf32>
    %38 = vector.shape_cast %37 : vector<8xf32> to vector<8x1xf32>
    %39 = vector.broadcast %38 : vector<8x1xf32> to vector<8x8xf32>
    %40 = arith.subf %36, %39 : vector<8x8xf32>
    %41 = math.exp %40 : vector<8x8xf32>
    %cst_26 = arith.constant dense<0.000000e+00> : vector<8xf32>
    %42 = vector.multi_reduction <add>, %41, %cst_26 [1] : vector<8x8xf32> to vector<8xf32>
    %43 = vector.shape_cast %42 : vector<8xf32> to vector<8x1xf32>
    %44 = vector.broadcast %43 : vector<8x1xf32> to vector<8x8xf32>
    %45 = arith.divf %41, %44 : vector<8x8xf32>
    %cst_27 = arith.constant dense<0.000000e+00> : vector<8x8xf32>
    %46 = tpu.matmul %45, %33, %cst_27 {dimension_numbers = #tpu.dot_dimension_numbers<[1], [0], [0], [1], [0, 0, 1, 1], [], []>} : vector<8x8xf32>, vector<8x8xf32>, vector<8x8xf32> -> vector<8x8xf32>
    %c0_28 = arith.constant 0 : index
    %c0_29 = arith.constant 0 : index
    %c0_30 = arith.constant 0 : index
    %47 = vector.load %arg7[%c0_28, %c0_29, %c0_30] : memref<4x8x32xf32, #tpu.memory_space<vmem>>, vector<1x8x32xf32>
    %48 = vector.shape_cast %47 : vector<1x8x32xf32> to vector<8x32xf32>
    %cst_31 = arith.constant dense<0.000000e+00> : vector<8x32xf32>
    %49 = tpu.matmul %46, %48, %cst_31 {dimension_numbers = #tpu.dot_dimension_numbers<[1], [0], [0], [1], [0, 0, 1, 1], [], []>} : vector<8x8xf32>, vector<8x32xf32>, vector<8x32xf32> -> vector<8x32xf32>
    %50 = arith.addf %24, %49 : vector<8x32xf32>
    %c1 = arith.constant 1 : index
    %c0_32 = arith.constant 0 : index
    %c0_33 = arith.constant 0 : index
    %51 = vector.load %arg4[%c1, %c0_32, %c0_33] : memref<4x32x8xf32, #tpu.memory_space<vmem>>, vector<1x32x8xf32>
    %52 = vector.shape_cast %51 : vector<1x32x8xf32> to vector<32x8xf32>
    %cst_34 = arith.constant dense<0.000000e+00> : vector<8x8xf32>
    %53 = tpu.matmul %23, %52, %cst_34 {dimension_numbers = #tpu.dot_dimension_numbers<[1], [0], [0], [1], [0, 0, 1, 1], [], []>} : vector<8x32xf32>, vector<32x8xf32>, vector<8x8xf32> -> vector<8x8xf32>
    %c1_35 = arith.constant 1 : index
    %c0_36 = arith.constant 0 : index
    %c0_37 = arith.constant 0 : index
    %54 = vector.load %arg5[%c1_35, %c0_36, %c0_37] : memref<4x32x8xf32, #tpu.memory_space<vmem>>, vector<1x32x8xf32>
    %55 = vector.shape_cast %54 : vector<1x32x8xf32> to vector<32x8xf32>
    %cst_38 = arith.constant dense<0.000000e+00> : vector<8x8xf32>
    %56 = tpu.matmul %23, %55, %cst_38 {dimension_numbers = #tpu.dot_dimension_numbers<[1], [0], [0], [1], [0, 0, 1, 1], [], []>} : vector<8x32xf32>, vector<32x8xf32>, vector<8x8xf32> -> vector<8x8xf32>
    %c1_39 = arith.constant 1 : index
    %c0_40 = arith.constant 0 : index
    %c0_41 = arith.constant 0 : index
    %57 = vector.load %arg6[%c1_39, %c0_40, %c0_41] : memref<4x32x8xf32, #tpu.memory_space<vmem>>, vector<1x32x8xf32>
    %58 = vector.shape_cast %57 : vector<1x32x8xf32> to vector<32x8xf32>
    %cst_42 = arith.constant dense<0.000000e+00> : vector<8x8xf32>
    %59 = tpu.matmul %23, %58, %cst_42 {dimension_numbers = #tpu.dot_dimension_numbers<[1], [0], [0], [1], [0, 0, 1, 1], [], []>} : vector<8x32xf32>, vector<32x8xf32>, vector<8x8xf32> -> vector<8x8xf32>
    %cst_43 = arith.constant dense<0.000000e+00> : vector<8x8xf32>
    %60 = tpu.matmul %53, %56, %cst_43 {dimension_numbers = #tpu.dot_dimension_numbers<[1], [1], [0], [0], [0, 0, 1, 0], [], []>} : vector<8x8xf32>, vector<8x8xf32>, vector<8x8xf32> -> vector<8x8xf32>
    %cst_44 = arith.constant 0.353553385 : f32
    %61 = vector.broadcast %cst_44 : f32 to vector<8x8xf32>
    %62 = arith.mulf %60, %61 : vector<8x8xf32>
    %cst_45 = arith.constant dense<0xFF800000> : vector<8xf32>
    %63 = vector.multi_reduction <maximumf>, %62, %cst_45 [1] : vector<8x8xf32> to vector<8xf32>
    %64 = vector.shape_cast %63 : vector<8xf32> to vector<8x1xf32>
    %65 = vector.broadcast %64 : vector<8x1xf32> to vector<8x8xf32>
    %66 = arith.subf %62, %65 : vector<8x8xf32>
    %67 = math.exp %66 : vector<8x8xf32>
    %cst_46 = arith.constant dense<0.000000e+00> : vector<8xf32>
    %68 = vector.multi_reduction <add>, %67, %cst_46 [1] : vector<8x8xf32> to vector<8xf32>
    %69 = vector.shape_cast %68 : vector<8xf32> to vector<8x1xf32>
    %70 = vector.broadcast %69 : vector<8x1xf32> to vector<8x8xf32>
    %71 = arith.divf %67, %70 : vector<8x8xf32>
    %cst_47 = arith.constant dense<0.000000e+00> : vector<8x8xf32>
    %72 = tpu.matmul %71, %59, %cst_47 {dimension_numbers = #tpu.dot_dimension_numbers<[1], [0], [0], [1], [0, 0, 1, 1], [], []>} : vector<8x8xf32>, vector<8x8xf32>, vector<8x8xf32> -> vector<8x8xf32>
    %c1_48 = arith.constant 1 : index
    %c0_49 = arith.constant 0 : index
    %c0_50 = arith.constant 0 : index
    %73 = vector.load %arg7[%c1_48, %c0_49, %c0_50] : memref<4x8x32xf32, #tpu.memory_space<vmem>>, vector<1x8x32xf32>
    %74 = vector.shape_cast %73 : vector<1x8x32xf32> to vector<8x32xf32>
    %cst_51 = arith.constant dense<0.000000e+00> : vector<8x32xf32>
    %75 = tpu.matmul %72, %74, %cst_51 {dimension_numbers = #tpu.dot_dimension_numbers<[1], [0], [0], [1], [0, 0, 1, 1], [], []>} : vector<8x8xf32>, vector<8x32xf32>, vector<8x32xf32> -> vector<8x32xf32>
    %76 = arith.addf %50, %75 : vector<8x32xf32>
    %c2 = arith.constant 2 : index
    %c0_52 = arith.constant 0 : index
    %c0_53 = arith.constant 0 : index
    %77 = vector.load %arg4[%c2, %c0_52, %c0_53] : memref<4x32x8xf32, #tpu.memory_space<vmem>>, vector<1x32x8xf32>
    %78 = vector.shape_cast %77 : vector<1x32x8xf32> to vector<32x8xf32>
    %cst_54 = arith.constant dense<0.000000e+00> : vector<8x8xf32>
    %79 = tpu.matmul %23, %78, %cst_54 {dimension_numbers = #tpu.dot_dimension_numbers<[1], [0], [0], [1], [0, 0, 1, 1], [], []>} : vector<8x32xf32>, vector<32x8xf32>, vector<8x8xf32> -> vector<8x8xf32>
    %c2_55 = arith.constant 2 : index
    %c0_56 = arith.constant 0 : index
    %c0_57 = arith.constant 0 : index
    %80 = vector.load %arg5[%c2_55, %c0_56, %c0_57] : memref<4x32x8xf32, #tpu.memory_space<vmem>>, vector<1x32x8xf32>
    %81 = vector.shape_cast %80 : vector<1x32x8xf32> to vector<32x8xf32>
    %cst_58 = arith.constant dense<0.000000e+00> : vector<8x8xf32>
    %82 = tpu.matmul %23, %81, %cst_58 {dimension_numbers = #tpu.dot_dimension_numbers<[1], [0], [0], [1], [0, 0, 1, 1], [], []>} : vector<8x32xf32>, vector<32x8xf32>, vector<8x8xf32> -> vector<8x8xf32>
    %c2_59 = arith.constant 2 : index
    %c0_60 = arith.constant 0 : index
    %c0_61 = arith.constant 0 : index
    %83 = vector.load %arg6[%c2_59, %c0_60, %c0_61] : memref<4x32x8xf32, #tpu.memory_space<vmem>>, vector<1x32x8xf32>
    %84 = vector.shape_cast %83 : vector<1x32x8xf32> to vector<32x8xf32>
    %cst_62 = arith.constant dense<0.000000e+00> : vector<8x8xf32>
    %85 = tpu.matmul %23, %84, %cst_62 {dimension_numbers = #tpu.dot_dimension_numbers<[1], [0], [0], [1], [0, 0, 1, 1], [], []>} : vector<8x32xf32>, vector<32x8xf32>, vector<8x8xf32> -> vector<8x8xf32>
    %cst_63 = arith.constant dense<0.000000e+00> : vector<8x8xf32>
    %86 = tpu.matmul %79, %82, %cst_63 {dimension_numbers = #tpu.dot_dimension_numbers<[1], [1], [0], [0], [0, 0, 1, 0], [], []>} : vector<8x8xf32>, vector<8x8xf32>, vector<8x8xf32> -> vector<8x8xf32>
    %cst_64 = arith.constant 0.353553385 : f32
    %87 = vector.broadcast %cst_64 : f32 to vector<8x8xf32>
    %88 = arith.mulf %86, %87 : vector<8x8xf32>
    %cst_65 = arith.constant dense<0xFF800000> : vector<8xf32>
    %89 = vector.multi_reduction <maximumf>, %88, %cst_65 [1] : vector<8x8xf32> to vector<8xf32>
    %90 = vector.shape_cast %89 : vector<8xf32> to vector<8x1xf32>
    %91 = vector.broadcast %90 : vector<8x1xf32> to vector<8x8xf32>
    %92 = arith.subf %88, %91 : vector<8x8xf32>
    %93 = math.exp %92 : vector<8x8xf32>
    %cst_66 = arith.constant dense<0.000000e+00> : vector<8xf32>
    %94 = vector.multi_reduction <add>, %93, %cst_66 [1] : vector<8x8xf32> to vector<8xf32>
    %95 = vector.shape_cast %94 : vector<8xf32> to vector<8x1xf32>
    %96 = vector.broadcast %95 : vector<8x1xf32> to vector<8x8xf32>
    %97 = arith.divf %93, %96 : vector<8x8xf32>
    %cst_67 = arith.constant dense<0.000000e+00> : vector<8x8xf32>
    %98 = tpu.matmul %97, %85, %cst_67 {dimension_numbers = #tpu.dot_dimension_numbers<[1], [0], [0], [1], [0, 0, 1, 1], [], []>} : vector<8x8xf32>, vector<8x8xf32>, vector<8x8xf32> -> vector<8x8xf32>
    %c2_68 = arith.constant 2 : index
    %c0_69 = arith.constant 0 : index
    %c0_70 = arith.constant 0 : index
    %99 = vector.load %arg7[%c2_68, %c0_69, %c0_70] : memref<4x8x32xf32, #tpu.memory_space<vmem>>, vector<1x8x32xf32>
    %100 = vector.shape_cast %99 : vector<1x8x32xf32> to vector<8x32xf32>
    %cst_71 = arith.constant dense<0.000000e+00> : vector<8x32xf32>
    %101 = tpu.matmul %98, %100, %cst_71 {dimension_numbers = #tpu.dot_dimension_numbers<[1], [0], [0], [1], [0, 0, 1, 1], [], []>} : vector<8x8xf32>, vector<8x32xf32>, vector<8x32xf32> -> vector<8x32xf32>
    %102 = arith.addf %76, %101 : vector<8x32xf32>
    %c3 = arith.constant 3 : index
    %c0_72 = arith.constant 0 : index
    %c0_73 = arith.constant 0 : index
    %103 = vector.load %arg4[%c3, %c0_72, %c0_73] : memref<4x32x8xf32, #tpu.memory_space<vmem>>, vector<1x32x8xf32>
    %104 = vector.shape_cast %103 : vector<1x32x8xf32> to vector<32x8xf32>
    %cst_74 = arith.constant dense<0.000000e+00> : vector<8x8xf32>
    %105 = tpu.matmul %23, %104, %cst_74 {dimension_numbers = #tpu.dot_dimension_numbers<[1], [0], [0], [1], [0, 0, 1, 1], [], []>} : vector<8x32xf32>, vector<32x8xf32>, vector<8x8xf32> -> vector<8x8xf32>
    %c3_75 = arith.constant 3 : index
    %c0_76 = arith.constant 0 : index
    %c0_77 = arith.constant 0 : index
    %106 = vector.load %arg5[%c3_75, %c0_76, %c0_77] : memref<4x32x8xf32, #tpu.memory_space<vmem>>, vector<1x32x8xf32>
    %107 = vector.shape_cast %106 : vector<1x32x8xf32> to vector<32x8xf32>
    %cst_78 = arith.constant dense<0.000000e+00> : vector<8x8xf32>
    %108 = tpu.matmul %23, %107, %cst_78 {dimension_numbers = #tpu.dot_dimension_numbers<[1], [0], [0], [1], [0, 0, 1, 1], [], []>} : vector<8x32xf32>, vector<32x8xf32>, vector<8x8xf32> -> vector<8x8xf32>
    %c3_79 = arith.constant 3 : index
    %c0_80 = arith.constant 0 : index
    %c0_81 = arith.constant 0 : index
    %109 = vector.load %arg6[%c3_79, %c0_80, %c0_81] : memref<4x32x8xf32, #tpu.memory_space<vmem>>, vector<1x32x8xf32>
    %110 = vector.shape_cast %109 : vector<1x32x8xf32> to vector<32x8xf32>
    %cst_82 = arith.constant dense<0.000000e+00> : vector<8x8xf32>
    %111 = tpu.matmul %23, %110, %cst_82 {dimension_numbers = #tpu.dot_dimension_numbers<[1], [0], [0], [1], [0, 0, 1, 1], [], []>} : vector<8x32xf32>, vector<32x8xf32>, vector<8x8xf32> -> vector<8x8xf32>
    %cst_83 = arith.constant dense<0.000000e+00> : vector<8x8xf32>
    %112 = tpu.matmul %105, %108, %cst_83 {dimension_numbers = #tpu.dot_dimension_numbers<[1], [1], [0], [0], [0, 0, 1, 0], [], []>} : vector<8x8xf32>, vector<8x8xf32>, vector<8x8xf32> -> vector<8x8xf32>
    %cst_84 = arith.constant 0.353553385 : f32
    %113 = vector.broadcast %cst_84 : f32 to vector<8x8xf32>
    %114 = arith.mulf %112, %113 : vector<8x8xf32>
    %cst_85 = arith.constant dense<0xFF800000> : vector<8xf32>
    %115 = vector.multi_reduction <maximumf>, %114, %cst_85 [1] : vector<8x8xf32> to vector<8xf32>
    %116 = vector.shape_cast %115 : vector<8xf32> to vector<8x1xf32>
    %117 = vector.broadcast %116 : vector<8x1xf32> to vector<8x8xf32>
    %118 = arith.subf %114, %117 : vector<8x8xf32>
    %119 = math.exp %118 : vector<8x8xf32>
    %cst_86 = arith.constant dense<0.000000e+00> : vector<8xf32>
    %120 = vector.multi_reduction <add>, %119, %cst_86 [1] : vector<8x8xf32> to vector<8xf32>
    %121 = vector.shape_cast %120 : vector<8xf32> to vector<8x1xf32>
    %122 = vector.broadcast %121 : vector<8x1xf32> to vector<8x8xf32>
    %123 = arith.divf %119, %122 : vector<8x8xf32>
    %cst_87 = arith.constant dense<0.000000e+00> : vector<8x8xf32>
    %124 = tpu.matmul %123, %111, %cst_87 {dimension_numbers = #tpu.dot_dimension_numbers<[1], [0], [0], [1], [0, 0, 1, 1], [], []>} : vector<8x8xf32>, vector<8x8xf32>, vector<8x8xf32> -> vector<8x8xf32>
    %c3_88 = arith.constant 3 : index
    %c0_89 = arith.constant 0 : index
    %c0_90 = arith.constant 0 : index
    %125 = vector.load %arg7[%c3_88, %c0_89, %c0_90] : memref<4x8x32xf32, #tpu.memory_space<vmem>>, vector<1x8x32xf32>
    %126 = vector.shape_cast %125 : vector<1x8x32xf32> to vector<8x32xf32>
    %cst_91 = arith.constant dense<0.000000e+00> : vector<8x32xf32>
    %127 = tpu.matmul %124, %126, %cst_91 {dimension_numbers = #tpu.dot_dimension_numbers<[1], [0], [0], [1], [0, 0, 1, 1], [], []>} : vector<8x8xf32>, vector<8x32xf32>, vector<8x32xf32> -> vector<8x32xf32>
    %128 = arith.addf %102, %127 : vector<8x32xf32>
    %129 = arith.addf %128, %1 : vector<8x32xf32>
    %c0_92 = arith.constant 0 : index
    %c0_93 = arith.constant 0 : index
    %130 = vector.load %arg8[%c0_92, %c0_93] : memref<1x32xf32, #tpu.memory_space<vmem>>, vector<1x32xf32>
    %c0_94 = arith.constant 0 : index
    %c0_95 = arith.constant 0 : index
    %131 = vector.load %arg9[%c0_94, %c0_95] : memref<1x32xf32, #tpu.memory_space<vmem>>, vector<1x32xf32>
    %c0_96 = arith.constant 0 : index
    %c0_97 = arith.constant 0 : index
    %132 = vector.load %arg10[%c0_96, %c0_97] : memref<32x128xf32, #tpu.memory_space<vmem>>, vector<32x128xf32>
    %c0_98 = arith.constant 0 : index
    %c0_99 = arith.constant 0 : index
    %133 = vector.load %arg11[%c0_98, %c0_99] : memref<128x32xf32, #tpu.memory_space<vmem>>, vector<128x32xf32>
    %cst_100 = arith.constant dense<0.000000e+00> : vector<8xf32>
    %134 = vector.multi_reduction <add>, %129, %cst_100 [1] : vector<8x32xf32> to vector<8xf32>
    %135 = vector.shape_cast %134 : vector<8xf32> to vector<8x1xf32>
    %cst_101 = arith.constant 3.200000e+01 : f32
    %136 = vector.broadcast %cst_101 : f32 to vector<8x1xf32>
    %137 = arith.divf %135, %136 : vector<8x1xf32>
    %138 = vector.broadcast %137 : vector<8x1xf32> to vector<8x32xf32>
    %139 = arith.subf %129, %138 : vector<8x32xf32>
    %140 = arith.mulf %139, %139 : vector<8x32xf32>
    %cst_102 = arith.constant dense<0.000000e+00> : vector<8xf32>
    %141 = vector.multi_reduction <add>, %140, %cst_102 [1] : vector<8x32xf32> to vector<8xf32>
    %142 = vector.shape_cast %141 : vector<8xf32> to vector<8x1xf32>
    %cst_103 = arith.constant 3.200000e+01 : f32
    %143 = vector.broadcast %cst_103 : f32 to vector<8x1xf32>
    %144 = arith.divf %142, %143 : vector<8x1xf32>
    %cst_104 = arith.constant 9.99999974E-6 : f32
    %145 = vector.broadcast %cst_104 : f32 to vector<8x1xf32>
    %146 = arith.addf %144, %145 : vector<8x1xf32>
    %147 = math.rsqrt %146 : vector<8x1xf32>
    %148 = vector.broadcast %147 : vector<8x1xf32> to vector<8x32xf32>
    %149 = arith.mulf %139, %148 : vector<8x32xf32>
    %150 = vector.broadcast %130 : vector<1x32xf32> to vector<8x32xf32>
    %151 = arith.mulf %149, %150 : vector<8x32xf32>
    %152 = vector.broadcast %131 : vector<1x32xf32> to vector<8x32xf32>
    %153 = arith.addf %151, %152 : vector<8x32xf32>
    %cst_105 = arith.constant dense<0.000000e+00> : vector<8x128xf32>
    %154 = tpu.matmul %153, %132, %cst_105 {dimension_numbers = #tpu.dot_dimension_numbers<[1], [0], [0], [1], [0, 0, 1, 1], [], []>} : vector<8x32xf32>, vector<32x128xf32>, vector<8x128xf32> -> vector<8x128xf32>
    %cst_106 = arith.constant 5.000000e-01 : f32
    %155 = vector.broadcast %cst_106 : f32 to vector<8x128xf32>
    %156 = arith.mulf %155, %154 : vector<8x128xf32>
    %cst_107 = arith.constant 4.471500e-02 : f32
    %157 = vector.broadcast %cst_107 : f32 to vector<8x128xf32>
    %158 = arith.mulf %157, %154 : vector<8x128xf32>
    %159 = arith.mulf %158, %154 : vector<8x128xf32>
    %160 = arith.mulf %159, %154 : vector<8x128xf32>
    %161 = arith.addf %154, %160 : vector<8x128xf32>
    %cst_108 = arith.constant 0.797884583 : f32
    %162 = vector.broadcast %cst_108 : f32 to vector<8x128xf32>
    %163 = arith.mulf %162, %161 : vector<8x128xf32>
    %164 = math.tanh %163 : vector<8x128xf32>
    %cst_109 = arith.constant 1.000000e+00 : f32
    %165 = vector.broadcast %cst_109 : f32 to vector<8x128xf32>
    %166 = arith.addf %165, %164 : vector<8x128xf32>
    %167 = arith.mulf %156, %166 : vector<8x128xf32>
    %cst_110 = arith.constant dense<0.000000e+00> : vector<8x32xf32>
    %168 = tpu.matmul %167, %133, %cst_110 {dimension_numbers = #tpu.dot_dimension_numbers<[1], [0], [0], [1], [0, 0, 1, 1], [], []>} : vector<8x128xf32>, vector<128x32xf32>, vector<8x32xf32> -> vector<8x32xf32>
    %169 = arith.addf %168, %129 : vector<8x32xf32>
    %c0_111 = arith.constant 0 : index
    %c0_112 = arith.constant 0 : index
    %c0_113 = arith.constant 0 : index
    %170 = vector.load %arg12[%c0_111, %c0_112, %c0_113] : memref<1x8x32xf32, #tpu.memory_space<vmem>>, vector<1x8x32xf32>
    %171 = vector.shape_cast %170 : vector<1x8x32xf32> to vector<8x32xf32>
    %172 = vector.shape_cast %169 : vector<8x32xf32> to vector<1x8x32xf32>
    tpu.vector_store %arg12[%c0_111, %c0_112, %c0_113], %172 {strides = array<i32>} : memref<1x8x32xf32, #tpu.memory_space<vmem>>, vector<1x8x32xf32>,
    return
  }
  func.func @transform_0(%arg0: i32) -> (i32, i32, i32) {
    %c0_i32 = arith.constant 0 : i32
    %c0_i32_0 = arith.constant 0 : i32
    %c0_i32_1 = arith.constant 0 : i32
    return %arg0, %c0_i32, %c0_i32_0 : i32, i32, i32
  }
  func.func @transform_1(%arg0: i32) -> (i32, i32) {
    %c0_i32 = arith.constant 0 : i32
    %c0_i32_0 = arith.constant 0 : i32
    %c0_i32_1 = arith.constant 0 : i32
    return %c0_i32, %c0_i32_0 : i32, i32
  }
  func.func @transform_2(%arg0: i32) -> (i32, i32) {
    %c0_i32 = arith.constant 0 : i32
    %c0_i32_0 = arith.constant 0 : i32
    %c0_i32_1 = arith.constant 0 : i32
    return %c0_i32, %c0_i32_0 : i32, i32
  }
  func.func @transform_3(%arg0: i32) -> (i32, i32, i32) {
    %c0_i32 = arith.constant 0 : i32
    %c0_i32_0 = arith.constant 0 : i32
    %c0_i32_1 = arith.constant 0 : i32
    %c0_i32_2 = arith.constant 0 : i32
    return %c0_i32, %c0_i32_0, %c0_i32_1 : i32, i32, i32
  }
  func.func @transform_4(%arg0: i32) -> (i32, i32, i32) {
    %c0_i32 = arith.constant 0 : i32
    %c0_i32_0 = arith.constant 0 : i32
    %c0_i32_1 = arith.constant 0 : i32
    %c0_i32_2 = arith.constant 0 : i32
    return %c0_i32, %c0_i32_0, %c0_i32_1 : i32, i32, i32
  }
  func.func @transform_5(%arg0: i32) -> (i32, i32, i32) {
    %c0_i32 = arith.constant 0 : i32
    %c0_i32_0 = arith.constant 0 : i32
    %c0_i32_1 = arith.constant 0 : i32
    %c0_i32_2 = arith.constant 0 : i32
    return %c0_i32, %c0_i32_0, %c0_i32_1 : i32, i32, i32
  }
  func.func @transform_6(%arg0: i32) -> (i32, i32, i32) {
    %c0_i32 = arith.constant 0 : i32
    %c0_i32_0 = arith.constant 0 : i32
    %c0_i32_1 = arith.constant 0 : i32
    %c0_i32_2 = arith.constant 0 : i32
    return %c0_i32, %c0_i32_0, %c0_i32_1 : i32, i32, i32
  }
  func.func @transform_7(%arg0: i32) -> (i32, i32) {
    %c0_i32 = arith.constant 0 : i32
    %c0_i32_0 = arith.constant 0 : i32
    %c0_i32_1 = arith.constant 0 : i32
    return %c0_i32, %c0_i32_0 : i32, i32
  }
  func.func @transform_8(%arg0: i32) -> (i32, i32) {
    %c0_i32 = arith.constant 0 : i32
    %c0_i32_0 = arith.constant 0 : i32
    %c0_i32_1 = arith.constant 0 : i32
    return %c0_i32, %c0_i32_0 : i32, i32
  }
  func.func @transform_9(%arg0: i32) -> (i32, i32) {
    %c0_i32 = arith.constant 0 : i32
    %c0_i32_0 = arith.constant 0 : i32
    %c0_i32_1 = arith.constant 0 : i32
    return %c0_i32, %c0_i32_0 : i32, i32
  }
  func.func @transform_10(%arg0: i32) -> (i32, i32) {
    %c0_i32 = arith.constant 0 : i32
    %c0_i32_0 = arith.constant 0 : i32
    %c0_i32_1 = arith.constant 0 : i32
    return %c0_i32, %c0_i32_0 : i32, i32
  }
  func.func @transform_11(%arg0: i32) -> (i32, i32, i32) {
    %c0_i32 = arith.constant 0 : i32
    %c0_i32_0 = arith.constant 0 : i32
    %c0_i32_1 = arith.constant 0 : i32
    return %arg0, %c0_i32, %c0_i32_0 : i32, i32, i32
  }
}

</mosaic_0001>

<bundles_post_ra>
// kernel: sma_encoder_forward.5
= control target key start
LH: loop header
LB: loop body
LE: loop exit
PB: predicated region body
PF: predicated region fallthrough
CT: control target
= control target key end

     0   :  { %s2138_s21 = smov 0   ;;  %s2489_s0 = inlined_call_operand.vmem [shape: f32[2,8,32], index: 0, kind: input, shape index: {}]   ;;  %s2490_s1 = inlined_call_operand.vmem [shape: f32[2,16,64], index: 1, kind: input, shape index: {}]   ;;  %s2491_s2 = inlined_call_operand.vmem [shape: f32[1,32], index: 2, kind: input, shape index: {}]   ;;  %s2492_s3 = inlined_call_operand.vmem [shape: f32[1,32], index: 3, kind: input, shape index: {}]   ;;  %s2493_s4 = inlined_call_operand.vmem [shape: f32[2,32,16], index: 4, kind: input, shape index: {}]   ;;  %s2494_s5 = inlined_call_operand.vmem [shape: f32[2,64,16], index: 5, kind: input, shape index: {}]   ;;  %s2495_s6 = inlined_call_operand.vmem [shape: f32[2,64,16], index: 6, kind: input, shape index: {}]   ;;  %s2496_s7 = inlined_call_operand.vmem [shape: f32[2,16,32], index: 7, kind: input, shape index: {}]   ;;  %s2497_s8 = inlined_call_operand.vmem [shape: f32[1,32], index: 8, kind: input, shape index: {}]   ;;  %s2498_s9 = inlined_call_operand.vmem [shape: f32[1,32], index: 9, kind: input, shape index: {}]   ;;  %s2499_s10 = inlined_call_operand.vmem [shape: f32[32,128], index: 10, kind: input, shape index: {}]   ;;  %s2500_s11 = inlined_call_operand.vmem [shape: f32[128,32], index: 11, kind: input, shape index: {}]   ;;  %s2501_s12 = inlined_call_operand.vmem [shape: f32[2,8,32], index: 12, kind: output, shape index: {}]  }
   0x1 LB: > { %s1704_s22 = sadd.s32 4294967295, %s2069_s21   ;;  %p1708_p0 = scmp.ge.s32.totalorder %s2069_s21, 1  ;;  %s2069_s21 = sphi %s2138_s21, %s22_s21  }
   0x2   : > { %p371_p1 = scmp.lt.s32.totalorder %s2069_s21, 3 }
   0x4   : > { %p372_p2 = pnand %p1708_p0, %p371_p1 }
   0x5   : > { %p416_p3 = scmp.lt.s32.totalorder (!%p372_p2), %s1704_s22, 1 }
   0x6   : > { %375 = sbr.rel (%p372_p2) target bundleno = 2869 (0xb35), region = 68 }
   0xb   : > { %s2503_s22 = smov (!%p416_p3, %s1704_s22), 1  ;;  %vm434_vm0 = vcmask 261120   ;;  %v466_v7 = vld [vmem:[%s2493_s4 + $0x18] sm:$0xff]  ;;  %v2071_v8 = vmov 0.0   ;;  %v465_v9 = vld [vmem:[%s2493_s4 + $0x10] sm:$0xff]  ;;  %vm2072_vm1 = vmmov 0  }
   0xc   : > { %s1709_s23 = sshll.u32 %s2503_s22, 3  ;;  %1853 = vmatprep.subr.mxu0 %v2071_v8  ;;  %1861 = vmatprep.mubr.msk.f32.mxu0 %vm2072_vm1, %v2071_v8  ;;  %v464_v10 = vld [vmem:[%s2493_s4 + $0x8] sm:$0xff]  ;;  %v463_v11 = vld [vmem:[%s2493_s4] sm:$0xff]  ;;  %v547_v12 = vld [vmem:[%s2494_s5 + $0x38] sm:$0xff]  ;;  %s1762_s19 = sshll.u32 %s2503_s22, 4  ;;  %vm548_vm2 = vcmask 523264  }
   0xd   : > { %s419_s26 = scalar_lea.vmem %s2489_s0, %s1709_s23  ;;  %1854 = vmatpush3.msra.mxu0 %v466_v7  ;;  %1902 = vmatprep.subr.mxu1 %v2071_v8  ;;  %v1713_v17 = vld [vmem:[%s2491_s2] ss:$0 sm:$0xff]  ;;  %s424_s29 = scalar_lea.vmem %s2490_s1, %s1762_s19  ;;  %v546_v23 = vld [vmem:[%s2494_s5 + $0x30] sm:$0xff]  ;;  %v545_v24 = vld [vmem:[%s2494_s5 + $0x28] sm:$0xff]  ;;  %vm713_vm3 = vcmask 130048  }
   0xe   : > { %v2154_v0 = vld [vmem:[%s419_s26] sm:$0xff]  ;;  %1855 = vmatprep.subr.mxu0 %v2071_v8  ;;  %1906 = vmatprep.mubr.msk.f32.mxu1 %vm2072_vm1, %v2071_v8  ;;  %v543_v26 = vld [vmem:[%s2494_s5 + $0x18] sm:$0xff]  ;;  %v542_v27 = vld [vmem:[%s2494_s5 + $0x10] sm:$0xff]  ;;  %s428_s16 = scalar_lea.vmem %s2501_s12, %s1709_s23 }
   0xf   : > { %v435_v1 = vsel %vm434_vm0, %v2154_v0, 0.0  ;;  %1856 = vmatpush3.msra.mxu0 %v465_v9  ;;  %v1714_v19 = vld [vmem:[%s2492_s3] ss:$0 sm:$0xff]  ;;  %v541_v28 = vld [vmem:[%s2494_s5 + $0x8] sm:$0xff]  ;;  %v637_v35 = vld [vmem:[%s2495_s6 + $0x38] sm:$0xff] }
  0x10   : > { %436 = vadd.xlane.f32.xlu0 %v435_v1  ;;  %1857 = vmatprep.subr.mxu0 %v2071_v8  ;;  %v2196_v22 = vld [vmem:[%s424_s29] sm:$0xff]  ;;  %v2223_v30 = vld [vmem:[%s424_s29 + $0x8] sm:$0xff]  ;;  %v636_v36 = vld [vmem:[%s2495_s6 + $0x30] sm:$0xff] }
  0x11   : > { %1858 = vmatpush3.msra.mxu0 %v464_v10  ;;  %v544_v25 = vld [vmem:[%s2494_s5 + $0x20] sm:$0xff]  ;;  %v635_v37 = vld [vmem:[%s2495_s6 + $0x28] sm:$0xff]  ;;  %v633_v39 = vld [vmem:[%s2495_s6 + $0x18] sm:$0xff] }
  0x12   : > { %1859 = vmatprep.subr.mxu0 %v2071_v8  ;;  %v540_v29 = vld [vmem:[%s2494_s5] sm:$0xff]  ;;  %v632_v40 = vld [vmem:[%s2495_s6 + $0x10] sm:$0xff]  ;;  %v631_v41 = vld [vmem:[%s2495_s6 + $0x8] sm:$0xff] }
  0x13   : > { %1860 = vmatpush3.msra.mxu0 %v463_v11  ;;  %v634_v38 = vld [vmem:[%s2495_s6 + $0x20] sm:$0xff]  ;;  %v1736_v47 = vld [vmem:[%s2494_s5 + $0x78] sm:$0xff]  ;;  %v1735_v48 = vld [vmem:[%s2494_s5 + $0x70] sm:$0xff] }
  0x14   : > { %1864 = vmatprep.subr.mxu0 %v547_v12  ;;  %v630_v42 = vld [vmem:[%s2495_s6] sm:$0xff]  ;;  %v1734_v54 = vld [vmem:[%s2494_s5 + $0x68] sm:$0xff]  ;;  %v1732_v57 = vld [vmem:[%s2494_s5 + $0x58] sm:$0xff] }
  0x15   : > { %v1733_v55 = vld [vmem:[%s2494_s5 + $0x60] sm:$0xff]  ;;  %v1731_v59 = vld [vmem:[%s2494_s5 + $0x50] sm:$0xff]  ;;  %v1730_v60 = vld [vmem:[%s2494_s5 + $0x48] sm:$0xff] }
  0x16   : > { %v1729_v61 = vld [vmem:[%s2494_s5 + $0x40] sm:$0xff] }
  0x99   : > { %v437_v2 = vpop.xlane.xlu0 %436 }
  0x9a   : > { %v439_v3 = vmul.f32 0.03125, %v437_v2  ;;  %v1727_v2 = vld [vmem:[%s2493_s4 + $0x38] sm:$0xff] }
  0x9c   : > { %v440_v4 = vsub.f32 %v2154_v0, %v439_v3  ;;  %v1726_v3 = vld [vmem:[%s2493_s4 + $0x30] sm:$0xff] }
  0x9e   : > { %v441_v5 = vmul.f32 %v440_v4, %v440_v4 }
  0xa0   : > { %v442_v6 = vsel %vm434_vm0, %v441_v5, 0.0  ;;  %v1724_v5 = vld [vmem:[%s2493_s4 + $0x20] sm:$0xff] }
  0xa1   : > { %443 = vadd.xlane.f32.xlu0 %v442_v6 }
 0x12a   : > { %v444_v13 = vpop.xlane.xlu0 %443 }
 0x12b   : > { %v445_v14 = vmul.f32 0.03125, %v444_v13  ;;  %v1746_v13 = vld [vmem:[%s2495_s6 + $0x78] sm:$0xff] }
 0x12d   : > { %v446_v15 = vadd.f32 1e-05, %v445_v14  ;;  %v1745_v14 = vld [vmem:[%s2495_s6 + $0x70] sm:$0xff] }
 0x12f   : > { %2049 = vrsqrt.f32 %v446_v15  ;;  %v1744_v15 = vld [vmem:[%s2495_s6 + $0x68] sm:$0xff] }
 0x13c   : > { %v2050_v16 = vpop.eup %2049 }
 0x13d   : > { %v448_v18 = vmul.f32 %v2050_v16, %v440_v4  ;;  %v1725_v4 = vld [vmem:[%s2493_s4 + $0x28] sm:$0xff]  ;;  %v1743_v16 = vld [vmem:[%s2495_s6 + $0x60] sm:$0xff] }
 0x13f   : > { %v455_v20 = vmul.f32 %v1713_v17, %v448_v18  ;;  %v1742_v17 = vld [vmem:[%s2495_s6 + $0x58] sm:$0xff]  ;;  %v1741_v18 = vld [vmem:[%s2495_s6 + $0x50] sm:$0xff] }
 0x141   : > { %v2194_v21 = vadd.f32 %v1714_v19, %v455_v20  ;;  %v1740_v19 = vld [vmem:[%s2495_s6 + $0x48] sm:$0xff]  ;;  %v1739_v20 = vld [vmem:[%s2495_s6 + $0x40] sm:$0xff] }
 0x143   : > { %1862 = vmatmul.mubr.msk.f32.vlgmr.msra.gmra.mxu0 %vm434_vm0, %v2194_v21 }
 0x144   : > { %1865 = vmatpush3.msra.mxu0 %v547_v12  ;;  %1880 = vmatprep.mubr.msk.f32.mxu0 %vm548_vm2, %v2196_v22 }
 0x145   : > { %1866 = vmatprep.subr.mxu0 %v546_v23 }
 0x146   : > { %1867 = vmatpush3.msra.mxu0 %v546_v23 }
 0x147   : > { %1868 = vmatprep.subr.mxu0 %v545_v24 }
 0x148   : > { %1869 = vmatpush3.msra.mxu0 %v545_v24 }
 0x149   : > { %1870 = vmatprep.subr.mxu0 %v544_v25 }
 0x14a   : > { %1871 = vmatpush3.msra.mxu0 %v544_v25 }
 0x14b   : > { %1872 = vmatprep.subr.mxu0 %v543_v26 }
 0x14c   : > { %1873 = vmatpush3.msra.mxu0 %v543_v26 }
 0x14d   : > { %1874 = vmatprep.subr.mxu0 %v542_v27 }
 0x14e   : > { %1875 = vmatpush3.msra.mxu0 %v542_v27 }
 0x14f   : > { %1876 = vmatprep.subr.mxu0 %v541_v28 }
 0x150   : > { %1877 = vmatpush3.msra.mxu0 %v541_v28 }
 0x151   : > { %1878 = vmatprep.subr.mxu0 %v540_v29 }
 0x152   : > { %1879 = vmatpush3.msra.mxu0 %v540_v29 }
 0x153   : > { %1881 = vmatmul.mubr.msk.f32.vlgmr.msra.gmra.mxu0 %vm548_vm2, %v2223_v30  ;;  %1883 = vmatprep.subr.mxu0 %v637_v35 }
 0x154   : > { %1899 = vmatprep.mubr.msk.f32.mxu0 %vm548_vm2, %v2196_v22  ;;  %1884 = vmatpush3.msra.mxu0 %v637_v35 }
 0x155   : > { %1885 = vmatprep.subr.mxu0 %v636_v36 }
 0x156   : > { %1886 = vmatpush3.msra.mxu0 %v636_v36 }
 0x157   : > { %1887 = vmatprep.subr.mxu0 %v635_v37 }
 0x158   : > { %1888 = vmatpush3.msra.mxu0 %v635_v37  ;;  %v879_v37 = vld [vmem:[%s2496_s7 + $0x8] sm:$0xff] }
 0x159   : > { %1889 = vmatprep.subr.mxu0 %v634_v38 }
 0x15a   : > { %1890 = vmatpush3.msra.mxu0 %v634_v38  ;;  %v878_v38 = vld [vmem:[%s2496_s7] sm:$0xff] }
 0x15b   : > { %1891 = vmatprep.subr.mxu0 %v633_v39 }
 0x15c   : > { %1892 = vmatpush3.msra.mxu0 %v633_v39 }
 0x15d   : > { %1893 = vmatprep.subr.mxu0 %v632_v40 }
 0x15e   : > { %1894 = vmatpush3.msra.mxu0 %v632_v40 }
 0x15f   : > { %1895 = vmatprep.subr.mxu0 %v631_v41 }
 0x160   : > { %1896 = vmatpush3.msra.mxu0 %v631_v41 }
 0x161   : > { %1897 = vmatprep.subr.mxu0 %v630_v42 }
 0x162   : > { %1898 = vmatpush3.msra.mxu0 %v630_v42 }
 0x163   : > { %1900 = vmatmul.mubr.msk.f32.vlgmr.msra.gmra.mxu0 %vm548_vm2, %v2223_v30  ;;  %1927 = vmatprep.subr.mxu0 %v1736_v47 }
 0x164   : > { %1943 = vmatprep.mubr.msk.f32.mxu0 %vm548_vm2, %v2196_v22  ;;  %1928 = vmatpush3.msra.mxu0 %v1736_v47 }
 0x165   : > { %1929 = vmatprep.subr.mxu0 %v1735_v48 }
 0x166   : > { %1930 = vmatpush3.msra.mxu0 %v1735_v48 }
 0x167   : > { %1931 = vmatprep.subr.mxu0 %v1734_v54 }
 0x168   : > { %1932 = vmatpush3.msra.mxu0 %v1734_v54  ;;  %v1440_v54 = vld [vmem:[%s2499_s10 + $0x8] sm:$0xff] }
 0x169   : > { %1933 = vmatprep.subr.mxu0 %v1733_v55 }
 0x16a   : > { %1934 = vmatpush3.msra.mxu0 %v1733_v55  ;;  %v1439_v55 = vld [vmem:[%s2499_s10] sm:$0xff] }
 0x16b   : > { %1935 = vmatprep.subr.mxu0 %v1732_v57 }
 0x16c   : > { %1936 = vmatpush3.msra.mxu0 %v1732_v57 }
 0x16d   : > { %1937 = vmatprep.subr.mxu0 %v1731_v59 }
 0x16e   : > { %1938 = vmatpush3.msra.mxu0 %v1731_v59 }
 0x16f   : > { %1939 = vmatprep.subr.mxu0 %v1730_v60 }
 0x170   : > { %1940 = vmatpush3.msra.mxu0 %v1730_v60 }
 0x171   : > { %1941 = vmatprep.subr.mxu0 %v1729_v61 }
 0x172   : > { %1942 = vmatpush3.msra.mxu0 %v1729_v61  ;;  %v1757_v61 = vld [vmem:[%s2497_s8] ss:$0 sm:$0xff] }
 0x173   : > { %1944 = vmatmul.mubr.msk.f32.vlgmr.msra.gmra.mxu0 %vm548_vm2, %v2223_v30  ;;  %1965 = vmatprep.subr.mxu0 %v2071_v8 }
 0x174   : > { %1969 = vmatprep.mubr.msk.f32.mxu0 %vm2072_vm1, %v2071_v8 }
 0x203   : > { %v536_v31 = vpop.f32.mrf.mxu0 }
 0x205   : > { %v1863_v32 = vpop.f32.mrf.mxu0 }
 0x206   : > { %v1754_v32 = vld [vmem:[%s2496_s7 + $0x18] sm:$0xff] }
 0x213   : > { %v1882_v33 = vpop.f32.mrf.mxu0 }
 0x214   : > { %1903 = vmatpush3.xpose.msk.msra.mxu1 %vm713_vm3, %v1882_v33  ;;  %v1753_v33 = vld [vmem:[%s2496_s7 + $0x10] sm:$0xff] }
 0x215   : > { %1904 = vmatprep.subr.mxu1 %v2071_v8  ;;  %v621_v34 = vpop.f32.mrf.mxu0 }
 0x218   : > { %1905 = vmatpush3.xpose.msk.msra.mxu1 %vm713_vm3, %v621_v34 }
 0x219   : > { %1909 = vmatprep.subr.mxu1 %v2071_v8 }
 0x21b   : > { %1907 = vmatmul.mubr.msk.f32.vlgmr.msra.gmra.mxu1 %vm713_vm3, %v536_v31 }
 0x21c   : > { %1913 = vmatprep.mubr.msk.f32.mxu1 %vm2072_vm1, %v2071_v8 }
 0x223   : > { %v1901_v56 = vpop.f32.mrf.mxu0 }
 0x224   : > { %1910 = vmatpush3.msra.mxu1 %v1901_v56  ;;  %v1458_v56 = vld [vmem:[%s2500_s11 + $0x78] sm:$0xff] }
 0x225   : > { %v704_v58 = vpop.f32.mrf.mxu0  ;;  %1911 = vmatprep.subr.mxu1 %v2071_v8 }
 0x226   : > { %1912 = vmatpush3.msra.mxu1 %v704_v58 }
 0x227   : > { %1916 = vmatprep.subr.mxu1 %v2071_v8 }
 0x233   : > { %v1945_v6 = vpop.f32.mrf.mxu0 }
 0x234   : > { %1966 = vmatpush3.xpose.msk.msra.mxu0 %vm713_vm3, %v1945_v6  ;;  %v1454_v6 = vld [vmem:[%s2500_s11 + $0x58] sm:$0xff] }
 0x235   : > { %1967 = vmatprep.subr.mxu0 %v2071_v8  ;;  %v1030_v7 = vpop.f32.mrf.mxu0 }
 0x238   : > { %1968 = vmatpush3.xpose.msk.msra.mxu0 %vm713_vm3, %v1030_v7  ;;  %v1453_v7 = vld [vmem:[%s2500_s11 + $0x50] sm:$0xff] }
 0x239   : > { %1979 = vmatprep.subr.mxu0 %v2071_v8 }
 0x2db   : > { %v789_v43 = vpop.f32.mrf.mxu1 }
 0x2dc   : > { %v793_v44 = vmul.f32 0.25, %v789_v43 }
 0x2dd   : > { %v1908_v45 = vpop.f32.mrf.mxu1 }
 0x2de   : > { %v794_v46 = vsel %vm713_vm3, %v793_v44, -inf }
 0x2df   : > { %795 = vmax.xlane.f32.xlu1 %v794_v46 }
 0x368   : > { %v796_v49 = vpop.xlane.xlu1 %795 }
 0x369   : > { %v797_v50 = vsub.f32 %v793_v44, %v796_v49 }
 0x36b   : > { %v798_v51 = vmul.f32 1.442695, %v797_v50 }
 0x36d   : > { %2051 = vpow2.f32 %v798_v51 }
 0x37a   : > { %v2052_v52 = vpop.eup %2051 }
 0x37b   : > { %v800_v53 = vsel %vm713_vm3, %v2052_v52, 0.0 }
 0x37c   : > { %801 = vadd.xlane.f32.xlu1 %v800_v53  ;;  %v1442_v53 = vld [vmem:[%s2499_s10 + $0x18] sm:$0xff] }
 0x405   : > { %v802_v62 = vpop.xlane.xlu1 %801 }
 0x406   : > { %2053 = vrcp.f32 %v802_v62 }
 0x413   : > { %v2054_v63 = vpop.eup %2053 }
 0x414   : > { %v804_v1 = vmul.f32 %v2054_v63, %v2052_v52  ;;  %v1758_v63 = vld [vmem:[%s2498_s9] ss:$0 sm:$0xff] }
 0x416   : > { %1914 = vmatmul.mubr.msk.f32.vlgmr.msra.gmra.mxu1 %vm713_vm3, %v804_v1 }
 0x417   : > { %1917 = vmatpush3.msra.mxu1 %v1727_v2  ;;  %1924 = vmatprep.mubr.msk.f32.mxu1 %vm2072_vm1, %v2071_v8 }
 0x418   : > { %1918 = vmatprep.subr.mxu1 %v2071_v8 }
 0x419   : > { %1919 = vmatpush3.msra.mxu1 %v1726_v3  ;;  %v1457_v3 = vld [vmem:[%s2500_s11 + $0x70] sm:$0xff] }
 0x41a   : > { %1920 = vmatprep.subr.mxu1 %v2071_v8 }
 0x41b   : > { %1921 = vmatpush3.msra.mxu1 %v1725_v4  ;;  %v1456_v4 = vld [vmem:[%s2500_s11 + $0x68] sm:$0xff] }
 0x41c   : > { %1922 = vmatprep.subr.mxu1 %v2071_v8 }
 0x41d   : > { %1923 = vmatpush3.msra.mxu1 %v1724_v5  ;;  %v1455_v5 = vld [vmem:[%s2500_s11 + $0x60] sm:$0xff] }
 0x41e   : > { %1925 = vmatmul.mubr.msk.f32.vlgmr.msra.gmra.mxu1 %vm434_vm0, %v2194_v21  ;;  %1946 = vmatprep.subr.mxu1 %v1746_v13 }
 0x41f   : > { %1962 = vmatprep.mubr.msk.f32.mxu1 %vm548_vm2, %v2196_v22  ;;  %1947 = vmatpush3.msra.mxu1 %v1746_v13  ;;  %v1448_v13 = vld [vmem:[%s2500_s11 + $0x28] sm:$0xff] }
 0x420   : > { %1948 = vmatprep.subr.mxu1 %v1745_v14 }
 0x421   : > { %1949 = vmatpush3.msra.mxu1 %v1745_v14  ;;  %v1447_v14 = vld [vmem:[%s2500_s11 + $0x20] sm:$0xff] }
 0x422   : > { %1950 = vmatprep.subr.mxu1 %v1744_v15 }
 0x423   : > { %1951 = vmatpush3.msra.mxu1 %v1744_v15  ;;  %v1446_v15 = vld [vmem:[%s2500_s11 + $0x18] sm:$0xff] }
 0x424   : > { %1952 = vmatprep.subr.mxu1 %v1743_v16 }
 0x425   : > { %1953 = vmatpush3.msra.mxu1 %v1743_v16  ;;  %v1445_v16 = vld [vmem:[%s2500_s11 + $0x10] sm:$0xff] }
 0x426   : > { %1954 = vmatprep.subr.mxu1 %v1742_v17 }
 0x427   : > { %1955 = vmatpush3.msra.mxu1 %v1742_v17  ;;  %v1444_v17 = vld [vmem:[%s2500_s11 + $0x8] sm:$0xff] }
 0x428   : > { %1956 = vmatprep.subr.mxu1 %v1741_v18 }
 0x429   : > { %1957 = vmatpush3.msra.mxu1 %v1741_v18  ;;  %v1443_v18 = vld [vmem:[%s2500_s11] sm:$0xff] }
 0x42a   : > { %1958 = vmatprep.subr.mxu1 %v1740_v19 }
 0x42b   : > { %1959 = vmatpush3.msra.mxu1 %v1740_v19 }
 0x42c   : > { %1960 = vmatprep.subr.mxu1 %v1739_v20 }
 0x42d   : > { %1961 = vmatpush3.msra.mxu1 %v1739_v20 }
 0x42e   : > { %1963 = vmatmul.mubr.msk.f32.vlgmr.msra.gmra.mxu1 %vm548_vm2, %v2223_v30  ;;  %1972 = vmatprep.subr.mxu1 %v2071_v8 }
 0x42f   : > { %1976 = vmatprep.mubr.msk.f32.mxu1 %vm2072_vm1, %v2071_v8 }
 0x4d6   : > { %v2323_v9 = vpop.f32.mrf.mxu1 }
 0x4d8   : > { %v1915_v10 = vpop.f32.mrf.mxu1 }
 0x4d9   : > { %v1451_v10 = vld [vmem:[%s2500_s11 + $0x40] sm:$0xff] }
 0x4de   : > { %v951_v11 = vpop.f32.mrf.mxu1 }
 0x4df   : > { %1970 = vmatmul.mubr.msk.f32.vlgmr.msra.gmra.mxu0 %vm713_vm3, %v951_v11  ;;  %v1450_v11 = vld [vmem:[%s2500_s11 + $0x38] sm:$0xff] }
 0x4e0   : > { %v1926_v12 = vpop.f32.mrf.mxu1  ;;  %1983 = vmatprep.mubr.msk.f32.mxu0 %vm2072_vm1, %v2071_v8  ;;  %1980 = vmatpush3.msra.mxu0 %v1754_v32 }
 0x4e1   : > { %1981 = vmatprep.subr.mxu0 %v2071_v8  ;;  %v1449_v12 = vld [vmem:[%s2500_s11 + $0x30] sm:$0xff] }
 0x4e2   : > { %1982 = vmatpush3.msra.mxu0 %v1753_v33 }
 0x4e3   : > { %1993 = vmatprep.subr.mxu0 %v2071_v8 }
 0x4ee   : > { %v1964_v30 = vpop.f32.mrf.mxu1 }
 0x4ef   : > { %1973 = vmatpush3.msra.mxu1 %v1964_v30 }
 0x4f0   : > { %v1114_v31 = vpop.f32.mrf.mxu1  ;;  %1974 = vmatprep.subr.mxu1 %v2071_v8 }
 0x4f1   : > { %1975 = vmatpush3.msra.mxu1 %v1114_v31 }
 0x4f2   : > { %1986 = vmatprep.subr.mxu1 %v2071_v8 }
 0x59f   : > { %v1198_v21 = vpop.f32.mrf.mxu0 }
 0x5a0   : > { %v1202_v22 = vmul.f32 0.25, %v1198_v21 }
 0x5a1   : > { %v1971_v23 = vpop.f32.mrf.mxu0 }
 0x5a2   : > { %v1203_v24 = vsel %vm713_vm3, %v1202_v22, -inf }
 0x5a3   : > { %1204 = vmax.xlane.f32.xlu0 %v1203_v24 }
 0x62c   : > { %v1205_v25 = vpop.xlane.xlu0 %1204 }
 0x62d   : > { %v1206_v26 = vsub.f32 %v1202_v22, %v1205_v25 }
 0x62f   : > { %v1207_v27 = vmul.f32 1.442695, %v1206_v26 }
 0x631   : > { %2055 = vpow2.f32 %v1207_v27 }
 0x63e   : > { %v2056_v28 = vpop.eup %2055 }
 0x63f   : > { %v1209_v29 = vsel %vm713_vm3, %v2056_v28, 0.0 }
 0x640   : > { %1210 = vadd.xlane.f32.xlu1 %v1209_v29 }
 0x6c9   : > { %v1211_v34 = vpop.xlane.xlu1 %1210 }
 0x6ca   : > { %2057 = vrcp.f32 %v1211_v34 }
 0x6d7   : > { %v2058_v35 = vpop.eup %2057 }
 0x6d8   : > { %v1213_v36 = vmul.f32 %v2058_v35, %v2056_v28 }
 0x6da   : > { %1977 = vmatmul.mubr.msk.f32.vlgmr.msra.gmra.mxu1 %vm713_vm3, %v1213_v36 }
 0x6db   : > { %1987 = vmatpush3.msra.mxu1 %v879_v37  ;;  %1990 = vmatprep.mubr.msk.f32.mxu1 %vm2072_vm1, %v2071_v8 }
 0x6dc   : > { %1988 = vmatprep.subr.mxu1 %v2071_v8 }
 0x6dd   : > { %1989 = vmatpush3.msra.mxu1 %v878_v38 }
 0x6de   : > { %1991 = vmatmul.mubr.msk.f32.vlgmr.msra.gmra.mxu1 %vm713_vm3, %v2323_v9  ;;  %2004 = vmatprep.subr.mxu1 %v2071_v8  ;;  %v1452_v9 = vld [vmem:[%s2500_s11 + $0x48] sm:$0xff] }
 0x6df   : > { %2036 = vmatprep.mubr.msk.f32.mxu1 %vm2072_vm1, %v2071_v8  ;;  %2005 = vmatpush3.msra.mxu1 %v1458_v56 }
 0x6e0   : > { %2006 = vmatprep.subr.mxu1 %v2071_v8 }
 0x6e1   : > { %2007 = vmatpush3.msra.mxu1 %v1457_v3 }
 0x6e2   : > { %2008 = vmatprep.subr.mxu1 %v2071_v8 }
 0x6e3   : > { %2009 = vmatpush3.msra.mxu1 %v1456_v4 }
 0x6e4   : > { %2010 = vmatprep.subr.mxu1 %v2071_v8 }
 0x6e5   : > { %2011 = vmatpush3.msra.mxu1 %v1455_v5 }
 0x6e6   : > { %2012 = vmatprep.subr.mxu1 %v2071_v8 }
 0x6e7   : > { %2013 = vmatpush3.msra.mxu1 %v1454_v6 }
 0x6e8   : > { %2014 = vmatprep.subr.mxu1 %v2071_v8 }
 0x6e9   : > { %2015 = vmatpush3.msra.mxu1 %v1453_v7 }
 0x6ea   : > { %2016 = vmatprep.subr.mxu1 %v2071_v8 }
 0x6eb   : > { %2017 = vmatpush3.msra.mxu1 %v1452_v9 }
 0x6ec   : > { %2018 = vmatprep.subr.mxu1 %v2071_v8 }
 0x6ed   : > { %2019 = vmatpush3.msra.mxu1 %v1451_v10 }
 0x6ee   : > { %2020 = vmatprep.subr.mxu1 %v2071_v8 }
 0x6ef   : > { %2021 = vmatpush3.msra.mxu1 %v1450_v11 }
 0x6f0   : > { %2022 = vmatprep.subr.mxu1 %v2071_v8 }
 0x6f1   : > { %2023 = vmatpush3.msra.mxu1 %v1449_v12 }
 0x6f2   : > { %2024 = vmatprep.subr.mxu1 %v2071_v8 }
 0x6f3   : > { %2025 = vmatpush3.msra.mxu1 %v1448_v13 }
 0x6f4   : > { %2026 = vmatprep.subr.mxu1 %v2071_v8 }
 0x6f5   : > { %2027 = vmatpush3.msra.mxu1 %v1447_v14 }
 0x6f6   : > { %2028 = vmatprep.subr.mxu1 %v2071_v8 }
 0x6f7   : > { %2029 = vmatpush3.msra.mxu1 %v1446_v15 }
 0x6f8   : > { %2030 = vmatprep.subr.mxu1 %v2071_v8 }
 0x6f9   : > { %2031 = vmatpush3.msra.mxu1 %v1445_v16 }
 0x6fa   : > { %2032 = vmatprep.subr.mxu1 %v2071_v8 }
 0x6fb   : > { %2033 = vmatpush3.msra.mxu1 %v1444_v17 }
 0x6fc   : > { %2034 = vmatprep.subr.mxu1 %v2071_v8 }
 0x6fd   : > { %2035 = vmatpush3.msra.mxu1 %v1443_v18 }
 0x79a   : > { %v1283_v39 = vpop.f32.mrf.mxu1 }
 0x79b   : > { %1984 = vmatmul.mubr.msk.f32.vlgmr.msra.gmra.mxu0 %vm713_vm3, %v1283_v39 }
 0x79c   : > { %v1978_v40 = vpop.f32.mrf.mxu1  ;;  %2001 = vmatprep.mubr.msk.f32.mxu0 %vm2072_vm1, %v2071_v8  ;;  %1994 = vmatpush3.msra.mxu0 %v1442_v53 }
 0x79d   : > { %1995 = vmatprep.subr.mxu0 %v2071_v8 }
 0x79e   : > { %v1432_v41 = vpop.f32.mrf.mxu1 }
 0x7a0   : > { %v1992_v42 = vpop.f32.mrf.mxu1 }
 0x85b   : > { %v1359_v43 = vpop.f32.mrf.mxu0 }
 0x85c   : > { %v1433_v44 = vadd.f32 %v1432_v41, %v1359_v43 }
 0x85d   : > { %v1985_v45 = vpop.f32.mrf.mxu0 }
 0x85e   : > { %v2388_v46 = vadd.f32 %v1433_v44, %v2154_v0  ;;  %v1441_v0 = vld [vmem:[%s2499_s10 + $0x10] sm:$0xff] }
 0x85f   : > { %1996 = vmatpush3.msra.mxu0 %v1441_v0 }
 0x860   : > { %v1459_v47 = vsel %vm434_vm0, %v2388_v46, 0.0  ;;  %1997 = vmatprep.subr.mxu0 %v2071_v8 }
 0x861   : > { %1460 = vadd.xlane.f32.xlu0 %v1459_v47  ;;  %1998 = vmatpush3.msra.mxu0 %v1440_v54 }
 0x862   : > { %1999 = vmatprep.subr.mxu0 %v2071_v8 }
 0x863   : > { %2000 = vmatpush3.msra.mxu0 %v1439_v55 }
 0x8ea   : > { %v1461_v48 = vpop.xlane.xlu0 %1460 }
 0x8eb   : > { %v1462_v49 = vmul.f32 0.03125, %v1461_v48 }
 0x8ed   : > { %v1463_v50 = vsub.f32 %v2388_v46, %v1462_v49 }
 0x8ef   : > { %v1464_v51 = vmul.f32 %v1463_v50, %v1463_v50 }
 0x8f1   : > { %v1465_v52 = vsel %vm434_vm0, %v1464_v51, 0.0 }
 0x8f2   : > { %1466 = vadd.xlane.f32.xlu1 %v1465_v52 }
 0x97b   : > { %v1467_v57 = vpop.xlane.xlu1 %1466 }
 0x97c   : > { %v1468_v58 = vmul.f32 0.03125, %v1467_v57 }
 0x97e   : > { %v1469_v59 = vadd.f32 1e-05, %v1468_v58 }
 0x980   : > { %2059 = vrsqrt.f32 %v1469_v59 }
 0x98d   : > { %v2060_v60 = vpop.eup %2059 }
 0x98e   : > { %v1471_v62 = vmul.f32 %v2060_v60, %v1463_v50 }
 0x990   : > { %v1478_v1 = vmul.f32 %v1757_v61, %v1471_v62 }
 0x992   : > { %v1485_v2 = vadd.f32 %v1758_v63, %v1478_v1 }
 0x994   : > { %2002 = vmatmul.mubr.msk.f32.vlgmr.msra.gmra.mxu0 %vm434_vm0, %v1485_v2 }
 0xa54   : > { %v1555_v19 = vpop.f32.mrf.mxu0 }
 0xa55   : > { %v1560_v20 = vmul.f32 0.044715, %v1555_v19  ;;  %v1559_v27 = vmul.f32 0.5, %v1555_v19 }
 0xa56   : > { %v2003_v21 = vpop.f32.mrf.mxu0 }
 0xa57   : > { %v1561_v22 = vmul.f32 %v1560_v20, %v1555_v19 }
 0xa59   : > { %v1562_v23 = vmul.f32 %v1561_v22, %v1555_v19 }
 0xa5b   : > { %v1563_v24 = vadd.f32 %v1562_v23, %v1555_v19 }
 0xa5d   : > { %v1564_v25 = vmul.f32 0.7978846, %v1563_v24 }
 0xa5f   : > { %2061 = vtanh.f32 %v1564_v25 }
 0xa6c   : > { %v2062_v26 = vpop.eup %2061 }
 0xa6d   : > { %v1566_v28 = vadd.f32 1.0, %v2062_v26 }
 0xa6f   : > { %v1567_v29 = vmul.f32 %v1566_v28, %v1559_v27 }
 0xa71   : > { %2037 = vmatmul.mubr.f32.vlgmr.msra.gmra.mxu1 %v1567_v29 }
 0xb31   : > { %v1634_v8 = vpop.f32.mrf.mxu1 }
 0xb32   : > { %v1635_v30 = vadd.f32 %v1634_v8, %v2388_v46 }
 0xb33   : > { %v2038_v31 = vpop.f32.mrf.mxu1 }
 0xb34   : > { %1638 = vst.msk [vmem:[%s428_s16] sm:$0xff] %vm434_vm0, %v1635_v30 }
 0xb35 PF: > { %s22_s21 = sadd.s32 1, %s2069_s21  }
 0xb36   : > { %p19_p4 = scmp.ge.s32.totalorder %s22_s21, 4  }
 0xb38   :  { %21 = sbr.rel (!%p19_p4) target bundleno = 1 (0x1), region = 105 }

// kernel: sma_encoder_forward.6
= control target key start
LH: loop header
LB: loop body
LE: loop exit
PB: predicated region body
PF: predicated region fallthrough
CT: control target
= control target key end

     0   :  { %s3043_s17 = smov 0   ;;  %s3499_s0 = inlined_call_operand.vmem [shape: f32[2,8,32], index: 0, kind: input, shape index: {}]   ;;  %s3500_s1 = inlined_call_operand.vmem [shape: f32[1,32], index: 1, kind: input, shape index: {}]   ;;  %s3501_s2 = inlined_call_operand.vmem [shape: f32[1,32], index: 2, kind: input, shape index: {}]   ;;  %s3502_s3 = inlined_call_operand.vmem [shape: f32[4,32,8], index: 3, kind: input, shape index: {}]   ;;  %s3503_s4 = inlined_call_operand.vmem [shape: f32[4,32,8], index: 4, kind: input, shape index: {}]   ;;  %s3504_s5 = inlined_call_operand.vmem [shape: f32[4,32,8], index: 5, kind: input, shape index: {}]   ;;  %s3505_s6 = inlined_call_operand.vmem [shape: f32[4,8,32], index: 6, kind: input, shape index: {}]   ;;  %s3506_s7 = inlined_call_operand.vmem [shape: f32[1,32], index: 7, kind: input, shape index: {}]   ;;  %s3507_s8 = inlined_call_operand.vmem [shape: f32[1,32], index: 8, kind: input, shape index: {}]   ;;  %s3508_s9 = inlined_call_operand.vmem [shape: f32[32,128], index: 9, kind: input, shape index: {}]   ;;  %s3509_s10 = inlined_call_operand.vmem [shape: f32[128,32], index: 10, kind: input, shape index: {}]   ;;  %s3510_s11 = inlined_call_operand.vmem [shape: f32[2,8,32], index: 11, kind: output, shape index: {}]  }
   0x1 LB: > { %s2516_s18 = sadd.s32 4294967295, %s2979_s17   ;;  %p2520_p0 = scmp.ge.s32.totalorder %s2979_s17, 1  ;;  %s2979_s17 = sphi %s3043_s17, %s21_s17  }
   0x2   : > { %p336_p1 = scmp.lt.s32.totalorder %s2979_s17, 3 }
   0x4   : > { %p337_p2 = pnand %p2520_p0, %p336_p1 }
   0x5   : > { %p374_p3 = scmp.lt.s32.totalorder (!%p337_p2), %s2516_s18, 1 }
   0x6   : > { %340 = sbr.rel (%p337_p2) target bundleno = 4665 (0x1239), region = 64 }
   0xb   : > { %s3512_s18 = smov (!%p374_p3, %s2516_s18), 1  ;;  %vm385_vm0 = vcmask 261120   ;;  %v2981_v7 = vmov 0.0   ;;  %v417_v8 = vld [vmem:[%s3502_s3 + $0x18] sm:$0xff]  ;;  %v416_v9 = vld [vmem:[%s3502_s3 + $0x10] sm:$0xff]  ;;  %v415_v10 = vld [vmem:[%s3502_s3 + $0x8] sm:$0xff] }
   0xc   : > { %s2521_s19 = sshll.u32 %s3512_s18, 3  ;;  %2703 = vmatprep.subr.mxu0 %v2981_v7  ;;  %2741 = vmatprep.subr.mxu1 %v2981_v7  ;;  %v414_v11 = vld [vmem:[%s3502_s3] sm:$0xff]  ;;  %vm2982_vm1 = vmmov 0   ;;  %v494_v21 = vld [vmem:[%s3503_s4 + $0x18] sm:$0xff]  ;;  %v493_v22 = vld [vmem:[%s3503_s4 + $0x10] sm:$0xff]  ;;  %vm639_vm2 = vcmask 64512  }
   0xd   : > { %s377_s22 = scalar_lea.vmem %s3499_s0, %s2521_s19  ;;  %2704 = vmatpush3.msra.mxu0 %v417_v8  ;;  %2711 = vmatprep.mubr.msk.f32.mxu0 %vm2982_vm1, %v2981_v7  ;;  %v2523_v16 = vld [vmem:[%s3500_s1] ss:$0 sm:$0xff]  ;;  %v492_v23 = vld [vmem:[%s3503_s4 + $0x8] sm:$0xff]  ;;  %v568_v25 = vld [vmem:[%s3504_s5 + $0x18] sm:$0xff]  ;;  %s381_s14 = scalar_lea.vmem %s3510_s11, %s2521_s19 }
   0xe   : > { %v3059_v0 = vld [vmem:[%s377_s22] sm:$0xff]  ;;  %2705 = vmatprep.subr.mxu0 %v2981_v7  ;;  %2743 = vmatprep.mubr.msk.f32.mxu1 %vm2982_vm1, %v2981_v7  ;;  %v567_v26 = vld [vmem:[%s3504_s5 + $0x10] sm:$0xff]  ;;  %v566_v27 = vld [vmem:[%s3504_s5 + $0x8] sm:$0xff] }
   0xf   : > { %v386_v1 = vsel %vm385_vm0, %v3059_v0, 0.0  ;;  %2706 = vmatpush3.msra.mxu0 %v416_v9  ;;  %v2524_v18 = vld [vmem:[%s3501_s2] ss:$0 sm:$0xff]  ;;  %v2534_v33 = vld [vmem:[%s3502_s3 + $0x38] sm:$0xff]  ;;  %v2533_v34 = vld [vmem:[%s3502_s3 + $0x30] sm:$0xff] }
  0x10   : > { %387 = vadd.xlane.f32.xlu0 %v386_v1  ;;  %2707 = vmatprep.subr.mxu0 %v2981_v7  ;;  %v491_v24 = vld [vmem:[%s3503_s4] sm:$0xff]  ;;  %v2532_v35 = vld [vmem:[%s3502_s3 + $0x28] sm:$0xff]  ;;  %v2544_v39 = vld [vmem:[%s3504_s5 + $0x38] sm:$0xff] }
  0x11   : > { %2708 = vmatpush3.msra.mxu0 %v415_v10  ;;  %v565_v28 = vld [vmem:[%s3504_s5] sm:$0xff]  ;;  %v2543_v40 = vld [vmem:[%s3504_s5 + $0x30] sm:$0xff]  ;;  %v2542_v41 = vld [vmem:[%s3504_s5 + $0x28] sm:$0xff] }
  0x12   : > { %2709 = vmatprep.subr.mxu0 %v2981_v7  ;;  %v2531_v37 = vld [vmem:[%s3502_s3 + $0x20] sm:$0xff]  ;;  %v2539_v59 = vld [vmem:[%s3503_s4 + $0x38] sm:$0xff]  ;;  %v2538_v60 = vld [vmem:[%s3503_s4 + $0x30] sm:$0xff] }
  0x13   : > { %2710 = vmatpush3.msra.mxu0 %v414_v11  ;;  %v2541_v42 = vld [vmem:[%s3504_s5 + $0x20] sm:$0xff]  ;;  %v2537_v61 = vld [vmem:[%s3503_s4 + $0x28] sm:$0xff] }
  0x14   : > { %2714 = vmatprep.subr.mxu0 %v2981_v7  ;;  %v2536_v62 = vld [vmem:[%s3503_s4 + $0x20] sm:$0xff] }
  0x99   : > { %v388_v2 = vpop.xlane.xlu0 %387 }
  0x9a   : > { %v390_v3 = vmul.f32 0.03125, %v388_v2 }
  0x9c   : > { %v391_v4 = vsub.f32 %v3059_v0, %v390_v3 }
  0x9e   : > { %v392_v5 = vmul.f32 %v391_v4, %v391_v4 }
  0xa0   : > { %v393_v6 = vsel %vm385_vm0, %v392_v5, 0.0 }
  0xa1   : > { %394 = vadd.xlane.f32.xlu0 %v393_v6 }
 0x12a   : > { %v395_v12 = vpop.xlane.xlu0 %394 }
 0x12b   : > { %v396_v13 = vmul.f32 0.03125, %v395_v12 }
 0x12d   : > { %v397_v14 = vadd.f32 1e-05, %v396_v13 }
 0x12f   : > { %2951 = vrsqrt.f32 %v397_v14  ;;  %v2549_v14 = vld [vmem:[%s3505_s6 + $0x8] sm:$0xff] }
 0x13c   : > { %v2952_v15 = vpop.eup %2951 }
 0x13d   : > { %v399_v17 = vmul.f32 %v2952_v15, %v391_v4 }
 0x13f   : > { %v406_v19 = vmul.f32 %v2523_v16, %v399_v17 }
 0x141   : > { %v3093_v20 = vadd.f32 %v2524_v18, %v406_v19  ;;  %v801_v18 = vld [vmem:[%s3505_s6] sm:$0xff]  ;;  %v2560_v19 = vld [vmem:[%s3503_s4 + $0x58] sm:$0xff] }
 0x143   : > { %2712 = vmatmul.mubr.msk.f32.vlgmr.msra.gmra.mxu0 %vm385_vm0, %v3093_v20 }
 0x144   : > { %2715 = vmatpush3.msra.mxu0 %v494_v21  ;;  %2722 = vmatprep.mubr.msk.f32.mxu0 %vm2982_vm1, %v2981_v7  ;;  %v2559_v21 = vld [vmem:[%s3503_s4 + $0x50] sm:$0xff] }
 0x145   : > { %2716 = vmatprep.subr.mxu0 %v2981_v7 }
 0x146   : > { %2717 = vmatpush3.msra.mxu0 %v493_v22  ;;  %v2558_v22 = vld [vmem:[%s3503_s4 + $0x48] sm:$0xff] }
 0x147   : > { %2718 = vmatprep.subr.mxu0 %v2981_v7 }
 0x148   : > { %2719 = vmatpush3.msra.mxu0 %v492_v23  ;;  %v2557_v23 = vld [vmem:[%s3503_s4 + $0x40] sm:$0xff] }
 0x149   : > { %2720 = vmatprep.subr.mxu0 %v2981_v7 }
 0x14a   : > { %2721 = vmatpush3.msra.mxu0 %v491_v24  ;;  %v2555_v24 = vld [vmem:[%s3502_s3 + $0x58] sm:$0xff] }
 0x14b   : > { %2723 = vmatmul.mubr.msk.f32.vlgmr.msra.gmra.mxu0 %vm385_vm0, %v3093_v20  ;;  %2725 = vmatprep.subr.mxu0 %v2981_v7 }
 0x14c   : > { %2726 = vmatpush3.msra.mxu0 %v568_v25  ;;  %2733 = vmatprep.mubr.msk.f32.mxu0 %vm2982_vm1, %v2981_v7 }
 0x14d   : > { %2727 = vmatprep.subr.mxu0 %v2981_v7 }
 0x14e   : > { %2728 = vmatpush3.msra.mxu0 %v567_v26  ;;  %v2554_v26 = vld [vmem:[%s3502_s3 + $0x50] sm:$0xff] }
 0x14f   : > { %2729 = vmatprep.subr.mxu0 %v2981_v7 }
 0x150   : > { %2730 = vmatpush3.msra.mxu0 %v566_v27 }
 0x151   : > { %2731 = vmatprep.subr.mxu0 %v2981_v7 }
 0x152   : > { %2732 = vmatpush3.msra.mxu0 %v565_v28  ;;  %v2553_v28 = vld [vmem:[%s3502_s3 + $0x48] sm:$0xff] }
 0x153   : > { %2734 = vmatmul.mubr.msk.f32.vlgmr.msra.gmra.mxu0 %vm385_vm0, %v3093_v20  ;;  %2736 = vmatprep.subr.mxu0 %v2981_v7 }
 0x154   : > { %2738 = vmatprep.mubr.msk.f32.mxu0 %vm2982_vm1, %v2981_v7 }
 0x203   : > { %v487_v29 = vpop.f32.mrf.mxu0 }
 0x205   : > { %v2713_v30 = vpop.f32.mrf.mxu0 }
 0x206   : > { %v2552_v30 = vld [vmem:[%s3502_s3 + $0x40] sm:$0xff] }
 0x20b   : > { %v561_v31 = vpop.f32.mrf.mxu0 }
 0x20c   : > { %2737 = vmatpush3.xpose.msk.msra.mxu0 %vm639_vm2, %v561_v31 }
 0x20d   : > { %v2724_v32 = vpop.f32.mrf.mxu0  ;;  %2746 = vmatprep.subr.mxu0 %v2981_v7 }
 0x20e   : > { %v2565_v32 = vld [vmem:[%s3504_s5 + $0x58] sm:$0xff] }
 0x20f   : > { %2739 = vmatmul.mubr.msk.f32.vlgmr.msra.gmra.mxu0 %vm639_vm2, %v487_v29 }
 0x210   : > { %2747 = vmatpush3.msra.mxu0 %v2534_v33  ;;  %2754 = vmatprep.mubr.msk.f32.mxu0 %vm2982_vm1, %v2981_v7  ;;  %v2564_v33 = vld [vmem:[%s3504_s5 + $0x50] sm:$0xff] }
 0x211   : > { %2748 = vmatprep.subr.mxu0 %v2981_v7 }
 0x212   : > { %2749 = vmatpush3.msra.mxu0 %v2533_v34  ;;  %v2563_v34 = vld [vmem:[%s3504_s5 + $0x48] sm:$0xff] }
 0x213   : > { %v635_v36 = vpop.f32.mrf.mxu0  ;;  %2750 = vmatprep.subr.mxu0 %v2981_v7 }
 0x214   : > { %2742 = vmatpush3.msra.mxu1 %v635_v36  ;;  %2751 = vmatpush3.msra.mxu0 %v2532_v35  ;;  %v2562_v36 = vld [vmem:[%s3504_s5 + $0x40] sm:$0xff] }
 0x215   : > { %v2735_v38 = vpop.f32.mrf.mxu0  ;;  %2752 = vmatprep.subr.mxu0 %v2981_v7  ;;  %2757 = vmatprep.subr.mxu1 %v2981_v7 }
 0x216   : > { %2753 = vmatpush3.msra.mxu0 %v2531_v37 }
 0x217   : > { %2755 = vmatmul.mubr.msk.f32.vlgmr.msra.gmra.mxu0 %vm385_vm0, %v3093_v20  ;;  %2768 = vmatprep.subr.mxu0 %v2981_v7 }
 0x218   : > { %2769 = vmatpush3.msra.mxu0 %v2544_v39  ;;  %2776 = vmatprep.mubr.msk.f32.mxu0 %vm2982_vm1, %v2981_v7 }
 0x219   : > { %2770 = vmatprep.subr.mxu0 %v2981_v7 }
 0x21a   : > { %2771 = vmatpush3.msra.mxu0 %v2543_v40 }
 0x21b   : > { %2772 = vmatprep.subr.mxu0 %v2981_v7 }
 0x21c   : > { %2773 = vmatpush3.msra.mxu0 %v2542_v41 }
 0x21d   : > { %2774 = vmatprep.subr.mxu0 %v2981_v7 }
 0x21e   : > { %2775 = vmatpush3.msra.mxu0 %v2541_v42 }
 0x21f   : > { %2777 = vmatmul.mubr.msk.f32.vlgmr.msra.gmra.mxu0 %vm385_vm0, %v3093_v20  ;;  %2789 = vmatprep.subr.mxu0 %v2981_v7 }
 0x220   : > { %2791 = vmatprep.mubr.msk.f32.mxu0 %vm2982_vm1, %v2981_v7  ;;  %2790 = vmatpush3.msra.mxu0 %v2549_v14 }
 0x221   : > { %2799 = vmatprep.subr.mxu0 %v2981_v7 }
 0x2cf   : > { %v712_v43 = vpop.f32.mrf.mxu0 }
 0x2d0   : > { %v716_v44 = vmul.f32 0.35355338, %v712_v43 }
 0x2d1   : > { %v2740_v45 = vpop.f32.mrf.mxu0 }
 0x2d2   : > { %v717_v46 = vsel %vm639_vm2, %v716_v44, -inf }
 0x2d3   : > { %718 = vmax.xlane.f32.xlu1 %v717_v46 }
 0x2d7   : > { %v873_v47 = vpop.f32.mrf.mxu0 }
 0x2d9   : > { %v2756_v48 = vpop.f32.mrf.mxu0 }
 0x2df   : > { %v1023_v49 = vpop.f32.mrf.mxu0 }
 0x2e1   : > { %v2778_v50 = vpop.f32.mrf.mxu0 }
 0x35c   : > { %v719_v51 = vpop.xlane.xlu1 %718 }
 0x35d   : > { %v720_v52 = vsub.f32 %v716_v44, %v719_v51 }
 0x35f   : > { %v721_v53 = vmul.f32 1.442695, %v720_v52 }
 0x361   : > { %2953 = vpow2.f32 %v721_v53  ;;  %v2570_v53 = vld [vmem:[%s3505_s6 + $0x10] sm:$0xff] }
 0x36e   : > { %v2954_v54 = vpop.eup %2953 }
 0x36f   : > { %v723_v55 = vsel %vm639_vm2, %v2954_v54, 0.0 }
 0x370   : > { %724 = vadd.xlane.f32.xlu1 %v723_v55 }
 0x3f9   : > { %v725_v56 = vpop.xlane.xlu1 %724 }
 0x3fa   : > { %2955 = vrcp.f32 %v725_v56 }
 0x407   : > { %v2956_v57 = vpop.eup %2955 }
 0x408   : > { %v727_v58 = vmul.f32 %v2956_v57, %v2954_v54  ;;  %v2575_v57 = vld [vmem:[%s3502_s3 + $0x78] sm:$0xff] }
 0x40a   : > { %2744 = vmatmul.mubr.msk.f32.vlgmr.msra.gmra.mxu1 %vm639_vm2, %v727_v58  ;;  %v2574_v58 = vld [vmem:[%s3502_s3 + $0x70] sm:$0xff] }
 0x40b   : > { %2758 = vmatpush3.msra.mxu1 %v2539_v59  ;;  %2765 = vmatprep.mubr.msk.f32.mxu1 %vm2982_vm1, %v2981_v7  ;;  %v2573_v59 = vld [vmem:[%s3502_s3 + $0x68] sm:$0xff] }
 0x40c   : > { %2759 = vmatprep.subr.mxu1 %v2981_v7 }
 0x40d   : > { %2760 = vmatpush3.msra.mxu1 %v2538_v60  ;;  %v2572_v60 = vld [vmem:[%s3502_s3 + $0x60] sm:$0xff] }
 0x40e   : > { %2761 = vmatprep.subr.mxu1 %v2981_v7 }
 0x40f   : > { %2762 = vmatpush3.msra.mxu1 %v2537_v61  ;;  %v2585_v61 = vld [vmem:[%s3504_s5 + $0x78] sm:$0xff] }
 0x410   : > { %2763 = vmatprep.subr.mxu1 %v2981_v7 }
 0x411   : > { %2764 = vmatpush3.msra.mxu1 %v2536_v62  ;;  %v2584_v62 = vld [vmem:[%s3504_s5 + $0x70] sm:$0xff] }
 0x412   : > { %2766 = vmatmul.mubr.msk.f32.vlgmr.msra.gmra.mxu1 %vm385_vm0, %v3093_v20  ;;  %2779 = vmatprep.subr.mxu1 %v2981_v7 }
 0x413   : > { %2781 = vmatprep.mubr.msk.f32.mxu1 %vm2982_vm1, %v2981_v7 }
 0x4ca   : > { %v797_v63 = vpop.f32.mrf.mxu1 }
 0x4cc   : > { %v2745_v1 = vpop.f32.mrf.mxu1 }
 0x4cd   : > { %v2582_v1 = vld [vmem:[%s3504_s5 + $0x60] sm:$0xff] }
 0x4d2   : > { %v948_v2 = vpop.f32.mrf.mxu1 }
 0x4d3   : > { %2780 = vmatpush3.xpose.msk.msra.mxu1 %vm639_vm2, %v948_v2  ;;  %v2580_v2 = vld [vmem:[%s3503_s4 + $0x78] sm:$0xff] }
 0x4d4   : > { %v2767_v3 = vpop.f32.mrf.mxu1  ;;  %2784 = vmatprep.subr.mxu1 %v2981_v7 }
 0x4d6   : > { %2782 = vmatmul.mubr.msk.f32.vlgmr.msra.gmra.mxu1 %vm639_vm2, %v873_v47 }
 0x4d7   : > { %2785 = vmatpush3.msra.mxu1 %v1023_v49  ;;  %2786 = vmatprep.mubr.msk.f32.mxu1 %vm2982_vm1, %v2981_v7 }
 0x4d8   : > { %2794 = vmatprep.subr.mxu1 %v2981_v7 }
 0x596   : > { %v1099_v4 = vpop.f32.mrf.mxu1 }
 0x597   : > { %v1103_v5 = vmul.f32 0.35355338, %v1099_v4  ;;  %v2579_v4 = vld [vmem:[%s3503_s4 + $0x70] sm:$0xff] }
 0x598   : > { %v2783_v6 = vpop.f32.mrf.mxu1 }
 0x599   : > { %v1104_v8 = vsel %vm639_vm2, %v1103_v5, -inf  ;;  %v2578_v6 = vld [vmem:[%s3503_s4 + $0x68] sm:$0xff] }
 0x59a   : > { %1105 = vmax.xlane.f32.xlu0 %v1104_v8  ;;  %v2577_v8 = vld [vmem:[%s3503_s4 + $0x60] sm:$0xff] }
 0x623   : > { %v1106_v9 = vpop.xlane.xlu0 %1105 }
 0x624   : > { %v1107_v10 = vsub.f32 %v1103_v5, %v1106_v9 }
 0x626   : > { %v1108_v11 = vmul.f32 1.442695, %v1107_v10 }
 0x628   : > { %2957 = vpow2.f32 %v1108_v11 }
 0x635   : > { %v2958_v12 = vpop.eup %2957 }
 0x636   : > { %v1110_v13 = vsel %vm639_vm2, %v2958_v12, 0.0 }
 0x637   : > { %1111 = vadd.xlane.f32.xlu1 %v1110_v13 }
 0x6c0   : > { %v1112_v15 = vpop.xlane.xlu1 %1111 }
 0x6c1   : > { %2959 = vrcp.f32 %v1112_v15 }
 0x6ce   : > { %v2960_v16 = vpop.eup %2959 }
 0x6cf   : > { %v1114_v17 = vmul.f32 %v2960_v16, %v2958_v12 }
 0x6d1   : > { %2787 = vmatmul.mubr.msk.f32.vlgmr.msra.gmra.mxu1 %vm639_vm2, %v1114_v17 }
 0x6d2   : > { %2795 = vmatpush3.msra.mxu1 %v801_v18  ;;  %2796 = vmatprep.mubr.msk.f32.mxu1 %vm2982_vm1, %v2981_v7 }
 0x6d3   : > { %2810 = vmatprep.subr.mxu1 %v2981_v7 }
 0x6d5   : > { %2797 = vmatmul.mubr.msk.f32.vlgmr.msra.gmra.mxu1 %vm639_vm2, %v797_v63  ;;  %v2583_v63 = vld [vmem:[%s3504_s5 + $0x68] sm:$0xff] }
 0x6d6   : > { %2811 = vmatpush3.msra.mxu1 %v2560_v19  ;;  %2818 = vmatprep.mubr.msk.f32.mxu1 %vm2982_vm1, %v2981_v7 }
 0x6d7   : > { %2812 = vmatprep.subr.mxu1 %v2981_v7 }
 0x6d8   : > { %2813 = vmatpush3.msra.mxu1 %v2559_v21 }
 0x6d9   : > { %2814 = vmatprep.subr.mxu1 %v2981_v7 }
 0x6da   : > { %2815 = vmatpush3.msra.mxu1 %v2558_v22 }
 0x6db   : > { %2816 = vmatprep.subr.mxu1 %v2981_v7 }
 0x6dc   : > { %2817 = vmatpush3.msra.mxu1 %v2557_v23 }
 0x6dd   : > { %2819 = vmatmul.mubr.msk.f32.vlgmr.msra.gmra.mxu1 %vm385_vm0, %v3093_v20  ;;  %2832 = vmatprep.subr.mxu1 %v2981_v7 }
 0x6de   : > { %2834 = vmatprep.mubr.msk.f32.mxu1 %vm2982_vm1, %v2981_v7 }
 0x791   : > { %v1184_v25 = vpop.f32.mrf.mxu1 }
 0x792   : > { %2792 = vmatmul.mubr.msk.f32.vlgmr.msra.gmra.mxu0 %vm639_vm2, %v1184_v25 }
 0x793   : > { %2800 = vmatpush3.msra.mxu0 %v2555_v24  ;;  %v2788_v27 = vpop.f32.mrf.mxu1  ;;  %2807 = vmatprep.mubr.msk.f32.mxu0 %vm2982_vm1, %v2981_v7 }
 0x794   : > { %2801 = vmatprep.subr.mxu0 %v2981_v7 }
 0x795   : > { %2802 = vmatpush3.msra.mxu0 %v2554_v26  ;;  %v3265_v29 = vpop.f32.mrf.mxu1 }
 0x796   : > { %2803 = vmatprep.subr.mxu0 %v2981_v7 }
 0x797   : > { %2804 = vmatpush3.msra.mxu0 %v2553_v28  ;;  %v2798_v31 = vpop.f32.mrf.mxu1  ;;  %v2590_v28 = vld [vmem:[%s3505_s6 + $0x18] sm:$0xff] }
 0x798   : > { %2805 = vmatprep.subr.mxu0 %v2981_v7 }
 0x799   : > { %2806 = vmatpush3.msra.mxu0 %v2552_v30 }
 0x79a   : > { %2808 = vmatmul.mubr.msk.f32.vlgmr.msra.gmra.mxu0 %vm385_vm0, %v3093_v20  ;;  %2821 = vmatprep.subr.mxu0 %v2981_v7 }
 0x79b   : > { %2822 = vmatpush3.msra.mxu0 %v2565_v32  ;;  %2829 = vmatprep.mubr.msk.f32.mxu0 %vm2982_vm1, %v2981_v7 }
 0x79c   : > { %2823 = vmatprep.subr.mxu0 %v2981_v7 }
 0x79d   : > { %v1482_v35 = vpop.f32.mrf.mxu1  ;;  %2824 = vmatpush3.msra.mxu0 %v2564_v33 }
 0x79e   : > { %2825 = vmatprep.subr.mxu0 %v2981_v7  ;;  %2833 = vmatpush3.xpose.msk.msra.mxu1 %vm639_vm2, %v1482_v35 }
 0x79f   : > { %v2820_v37 = vpop.f32.mrf.mxu1  ;;  %2826 = vmatpush3.msra.mxu0 %v2563_v34  ;;  %2837 = vmatprep.subr.mxu1 %v2981_v7 }
 0x7a0   : > { %2827 = vmatprep.subr.mxu0 %v2981_v7 }
 0x7a1   : > { %2828 = vmatpush3.msra.mxu0 %v2562_v36 }
 0x7a2   : > { %2830 = vmatmul.mubr.msk.f32.vlgmr.msra.gmra.mxu0 %vm385_vm0, %v3093_v20  ;;  %2842 = vmatprep.subr.mxu0 %v2981_v7 }
 0x7a3   : > { %2844 = vmatprep.mubr.msk.f32.mxu0 %vm2982_vm1, %v2981_v7  ;;  %2843 = vmatpush3.msra.mxu0 %v2570_v53 }
 0x7a4   : > { %2858 = vmatprep.subr.mxu0 %v2981_v7 }
 0x852   : > { %v3299_v38 = vpop.f32.mrf.mxu0 }
 0x853   : > { %v1333_v13 = vadd.f32 %v3265_v29, %v3299_v38 }
 0x854   : > { %v2793_v39 = vpop.f32.mrf.mxu0 }
 0x85a   : > { %v1407_v40 = vpop.f32.mrf.mxu0 }
 0x85b   : > { %2835 = vmatmul.mubr.msk.f32.vlgmr.msra.gmra.mxu1 %vm639_vm2, %v1407_v40 }
 0x85c   : > { %v2809_v41 = vpop.f32.mrf.mxu0  ;;  %2839 = vmatprep.mubr.msk.f32.mxu1 %vm2982_vm1, %v2981_v7 }
 0x862   : > { %v1557_v42 = vpop.f32.mrf.mxu0 }
 0x863   : > { %2838 = vmatpush3.msra.mxu1 %v1557_v42 }
 0x864   : > { %v2831_v43 = vpop.f32.mrf.mxu0  ;;  %2847 = vmatprep.subr.mxu1 %v2981_v7 }
 0x91b   : > { %v1633_v44 = vpop.f32.mrf.mxu1 }
 0x91c   : > { %v1637_v45 = vmul.f32 0.35355338, %v1633_v44  ;;  %v2266_v44 = vld [vmem:[%s3508_s9 + $0x18] sm:$0xff] }
 0x91d   : > { %v2836_v46 = vpop.f32.mrf.mxu1 }
 0x91e   : > { %v1638_v47 = vsel %vm639_vm2, %v1637_v45, -inf  ;;  %v2263_v46 = vld [vmem:[%s3508_s9] sm:$0xff] }
 0x91f   : > { %1639 = vmax.xlane.f32.xlu0 %v1638_v47  ;;  %v2282_v47 = vld [vmem:[%s3509_s10 + $0x78] sm:$0xff] }
 0x9a8   : > { %v1640_v48 = vpop.xlane.xlu0 %1639 }
 0x9a9   : > { %v1641_v49 = vsub.f32 %v1637_v45, %v1640_v48  ;;  %v2264_v45 = vld [vmem:[%s3508_s9 + $0x8] sm:$0xff] }
 0x9ab   : > { %v1642_v50 = vmul.f32 1.442695, %v1641_v49 }
 0x9ad   : > { %2961 = vpow2.f32 %v1642_v50 }
 0x9ba   : > { %v2962_v51 = vpop.eup %2961 }
 0x9bb   : > { %v1644_v52 = vsel %vm639_vm2, %v2962_v51, 0.0 }
 0x9bc   : > { %1645 = vadd.xlane.f32.xlu1 %v1644_v52  ;;  %v2592_v52 = vld [vmem:[%s3506_s7] ss:$0 sm:$0xff] }
 0xa45   : > { %v1646_v54 = vpop.xlane.xlu1 %1645 }
 0xa46   : > { %2963 = vrcp.f32 %v1646_v54  ;;  %v2593_v54 = vld [vmem:[%s3507_s8] ss:$0 sm:$0xff] }
 0xa53   : > { %v2964_v55 = vpop.eup %2963 }
 0xa54   : > { %v1648_v56 = vmul.f32 %v2964_v55, %v2962_v51 }
 0xa56   : > { %2840 = vmatmul.mubr.msk.f32.vlgmr.msra.gmra.mxu1 %vm639_vm2, %v1648_v56 }
 0xa57   : > { %2848 = vmatpush3.msra.mxu1 %v2575_v57  ;;  %2855 = vmatprep.mubr.msk.f32.mxu1 %vm2982_vm1, %v2981_v7  ;;  %v2281_v57 = vld [vmem:[%s3509_s10 + $0x70] sm:$0xff] }
 0xa58   : > { %2849 = vmatprep.subr.mxu1 %v2981_v7 }
 0xa59   : > { %2850 = vmatpush3.msra.mxu1 %v2574_v58  ;;  %v2280_v58 = vld [vmem:[%s3509_s10 + $0x68] sm:$0xff] }
 0xa5a   : > { %2851 = vmatprep.subr.mxu1 %v2981_v7 }
 0xa5b   : > { %2852 = vmatpush3.msra.mxu1 %v2573_v59  ;;  %v2279_v59 = vld [vmem:[%s3509_s10 + $0x60] sm:$0xff] }
 0xa5c   : > { %2853 = vmatprep.subr.mxu1 %v2981_v7 }
 0xa5d   : > { %2854 = vmatpush3.msra.mxu1 %v2572_v60  ;;  %v2278_v60 = vld [vmem:[%s3509_s10 + $0x58] sm:$0xff] }
 0xa5e   : > { %2856 = vmatmul.mubr.msk.f32.vlgmr.msra.gmra.mxu1 %vm385_vm0, %v3093_v20  ;;  %2869 = vmatprep.subr.mxu1 %v2981_v7 }
 0xa5f   : > { %2870 = vmatpush3.msra.mxu1 %v2585_v61  ;;  %2877 = vmatprep.mubr.msk.f32.mxu1 %vm2982_vm1, %v2981_v7  ;;  %v2277_v61 = vld [vmem:[%s3509_s10 + $0x50] sm:$0xff] }
 0xa60   : > { %2871 = vmatprep.subr.mxu1 %v2981_v7 }
 0xa61   : > { %2872 = vmatpush3.msra.mxu1 %v2584_v62  ;;  %v2276_v62 = vld [vmem:[%s3509_s10 + $0x48] sm:$0xff] }
 0xa62   : > { %2873 = vmatprep.subr.mxu1 %v2981_v7 }
 0xa63   : > { %2874 = vmatpush3.msra.mxu1 %v2583_v63  ;;  %v2275_v63 = vld [vmem:[%s3509_s10 + $0x40] sm:$0xff] }
 0xa64   : > { %2875 = vmatprep.subr.mxu1 %v2981_v7 }
 0xa65   : > { %2876 = vmatpush3.msra.mxu1 %v2582_v1  ;;  %v2274_v1 = vld [vmem:[%s3509_s10 + $0x38] sm:$0xff] }
 0xa66   : > { %2878 = vmatmul.mubr.msk.f32.vlgmr.msra.gmra.mxu1 %vm385_vm0, %v3093_v20  ;;  %2890 = vmatprep.subr.mxu1 %v2981_v7 }
 0xa67   : > { %2892 = vmatprep.mubr.msk.f32.mxu1 %vm2982_vm1, %v2981_v7  ;;  %2891 = vmatpush3.msra.mxu1 %v2590_v28 }
 0xa68   : > { %2906 = vmatprep.subr.mxu1 %v2981_v7 }
 0xb16   : > { %v1718_v3 = vpop.f32.mrf.mxu1 }
 0xb17   : > { %2845 = vmatmul.mubr.msk.f32.vlgmr.msra.gmra.mxu0 %vm639_vm2, %v1718_v3  ;;  %v2272_v3 = vld [vmem:[%s3509_s10 + $0x28] sm:$0xff] }
 0xb18   : > { %2859 = vmatpush3.msra.mxu0 %v2580_v2  ;;  %v2841_v5 = vpop.f32.mrf.mxu1  ;;  %2866 = vmatprep.mubr.msk.f32.mxu0 %vm2982_vm1, %v2981_v7  ;;  %v2273_v2 = vld [vmem:[%s3509_s10 + $0x30] sm:$0xff] }
 0xb19   : > { %2860 = vmatprep.subr.mxu0 %v2981_v7  ;;  %v2270_v5 = vld [vmem:[%s3509_s10 + $0x18] sm:$0xff] }
 0xb1a   : > { %2861 = vmatpush3.msra.mxu0 %v2579_v4  ;;  %v2271_v4 = vld [vmem:[%s3509_s10 + $0x20] sm:$0xff] }
 0xb1b   : > { %2862 = vmatprep.subr.mxu0 %v2981_v7 }
 0xb1c   : > { %2863 = vmatpush3.msra.mxu0 %v2578_v6  ;;  %v2269_v6 = vld [vmem:[%s3509_s10 + $0x10] sm:$0xff] }
 0xb1d   : > { %2864 = vmatprep.subr.mxu0 %v2981_v7 }
 0xb1e   : > { %v1869_v9 = vpop.f32.mrf.mxu1  ;;  %2865 = vmatpush3.msra.mxu0 %v2577_v8  ;;  %v2268_v8 = vld [vmem:[%s3509_s10 + $0x8] sm:$0xff] }
 0xb1f   : > { %2867 = vmatmul.mubr.msk.f32.vlgmr.msra.gmra.mxu0 %vm385_vm0, %v3093_v20  ;;  %2880 = vmatprep.subr.mxu0 %v2981_v7 }
 0xb20   : > { %v2857_v10 = vpop.f32.mrf.mxu1  ;;  %2882 = vmatprep.mubr.msk.f32.mxu0 %vm2982_vm1, %v2981_v7 }
 0xb26   : > { %v2019_v11 = vpop.f32.mrf.mxu1 }
 0xb28   : > { %v2879_v12 = vpop.f32.mrf.mxu1 }
 0xbd7   : > { %v1793_v14 = vpop.f32.mrf.mxu0 }
 0xbd8   : > { %v1797_v15 = vadd.f32 %v1793_v14, %v1333_v13 }
 0xbd9   : > { %v2846_v16 = vpop.f32.mrf.mxu0 }
 0xbdf   : > { %v1944_v17 = vpop.f32.mrf.mxu0 }
 0xbe0   : > { %2881 = vmatpush3.xpose.msk.msra.mxu0 %vm639_vm2, %v1944_v17 }
 0xbe1   : > { %v2868_v18 = vpop.f32.mrf.mxu0  ;;  %2885 = vmatprep.subr.mxu0 %v2981_v7 }
 0xbe3   : > { %2883 = vmatmul.mubr.msk.f32.vlgmr.msra.gmra.mxu0 %vm639_vm2, %v1869_v9  ;;  %v2267_v9 = vld [vmem:[%s3509_s10] sm:$0xff] }
 0xbe4   : > { %2886 = vmatpush3.msra.mxu0 %v2019_v11  ;;  %2887 = vmatprep.mubr.msk.f32.mxu0 %vm2982_vm1, %v2981_v7 }
 0xbe5   : > { %2895 = vmatprep.subr.mxu0 %v2981_v7 }
 0xca3   : > { %v2095_v20 = vpop.f32.mrf.mxu0 }
 0xca4   : > { %v2099_v19 = vmul.f32 0.35355338, %v2095_v20 }
 0xca5   : > { %v2884_v21 = vpop.f32.mrf.mxu0 }
 0xca6   : > { %v2100_v22 = vsel %vm639_vm2, %v2099_v19, -inf }
 0xca7   : > { %2101 = vmax.xlane.f32.xlu0 %v2100_v22 }
 0xd30   : > { %v2102_v23 = vpop.xlane.xlu0 %2101 }
 0xd31   : > { %v2103_v24 = vsub.f32 %v2099_v19, %v2102_v23 }
 0xd33   : > { %v2104_v25 = vmul.f32 1.442695, %v2103_v24 }
 0xd35   : > { %2965 = vpow2.f32 %v2104_v25 }
 0xd42   : > { %v2966_v26 = vpop.eup %2965 }
 0xd43   : > { %v2106_v27 = vsel %vm639_vm2, %v2966_v26, 0.0 }
 0xd44   : > { %2107 = vadd.xlane.f32.xlu1 %v2106_v27 }
 0xdcd   : > { %v2108_v29 = vpop.xlane.xlu1 %2107 }
 0xdce   : > { %2967 = vrcp.f32 %v2108_v29 }
 0xddb   : > { %v2968_v30 = vpop.eup %2967 }
 0xddc   : > { %v2110_v31 = vmul.f32 %v2968_v30, %v2966_v26 }
 0xdde   : > { %2888 = vmatmul.mubr.msk.f32.vlgmr.msra.gmra.mxu0 %vm639_vm2, %v2110_v31 }
 0xddf   : > { %2903 = vmatprep.mubr.msk.f32.mxu0 %vm2982_vm1, %v2981_v7  ;;  %2896 = vmatpush3.msra.mxu0 %v2266_v44 }
 0xde0   : > { %2897 = vmatprep.subr.mxu0 %v2981_v7 }
 0xe9e   : > { %v2180_v32 = vpop.f32.mrf.mxu0 }
 0xe9f   : > { %2893 = vmatmul.mubr.msk.f32.vlgmr.msra.gmra.mxu1 %vm639_vm2, %v2180_v32 }
 0xea0   : > { %v2889_v33 = vpop.f32.mrf.mxu0  ;;  %2938 = vmatprep.mubr.msk.f32.mxu1 %vm2982_vm1, %v2981_v7  ;;  %2907 = vmatpush3.msra.mxu1 %v2282_v47 }
 0xea1   : > { %2908 = vmatprep.subr.mxu1 %v2981_v7 }
 0xea2   : > { %2909 = vmatpush3.msra.mxu1 %v2281_v57 }
 0xea3   : > { %2910 = vmatprep.subr.mxu1 %v2981_v7 }
 0xea4   : > { %2911 = vmatpush3.msra.mxu1 %v2280_v58 }
 0xea5   : > { %2912 = vmatprep.subr.mxu1 %v2981_v7 }
 0xea6   : > { %2913 = vmatpush3.msra.mxu1 %v2279_v59 }
 0xea7   : > { %2914 = vmatprep.subr.mxu1 %v2981_v7 }
 0xea8   : > { %2915 = vmatpush3.msra.mxu1 %v2278_v60 }
 0xea9   : > { %2916 = vmatprep.subr.mxu1 %v2981_v7 }
 0xeaa   : > { %2917 = vmatpush3.msra.mxu1 %v2277_v61 }
 0xeab   : > { %2918 = vmatprep.subr.mxu1 %v2981_v7 }
 0xeac   : > { %2919 = vmatpush3.msra.mxu1 %v2276_v62 }
 0xead   : > { %2920 = vmatprep.subr.mxu1 %v2981_v7 }
 0xeae   : > { %2921 = vmatpush3.msra.mxu1 %v2275_v63 }
 0xeaf   : > { %2922 = vmatprep.subr.mxu1 %v2981_v7 }
 0xeb0   : > { %2923 = vmatpush3.msra.mxu1 %v2274_v1 }
 0xeb1   : > { %2924 = vmatprep.subr.mxu1 %v2981_v7 }
 0xeb2   : > { %2925 = vmatpush3.msra.mxu1 %v2273_v2 }
 0xeb3   : > { %2926 = vmatprep.subr.mxu1 %v2981_v7 }
 0xeb4   : > { %2927 = vmatpush3.msra.mxu1 %v2272_v3 }
 0xeb5   : > { %2928 = vmatprep.subr.mxu1 %v2981_v7 }
 0xeb6   : > { %2929 = vmatpush3.msra.mxu1 %v2271_v4 }
 0xeb7   : > { %2930 = vmatprep.subr.mxu1 %v2981_v7 }
 0xeb8   : > { %2931 = vmatpush3.msra.mxu1 %v2270_v5 }
 0xeb9   : > { %2932 = vmatprep.subr.mxu1 %v2981_v7 }
 0xeba   : > { %2933 = vmatpush3.msra.mxu1 %v2269_v6 }
 0xebb   : > { %2934 = vmatprep.subr.mxu1 %v2981_v7 }
 0xebc   : > { %2935 = vmatpush3.msra.mxu1 %v2268_v8 }
 0xebd   : > { %2936 = vmatprep.subr.mxu1 %v2981_v7 }
 0xebe   : > { %2937 = vmatpush3.msra.mxu1 %v2267_v9 }
 0xf5f   : > { %v2255_v34 = vpop.f32.mrf.mxu1 }
 0xf60   : > { %v2259_v35 = vadd.f32 %v2255_v34, %v1797_v15 }
 0xf61   : > { %v2894_v36 = vpop.f32.mrf.mxu1 }
 0xf62   : > { %v3398_v37 = vadd.f32 %v2259_v35, %v3059_v0  ;;  %v2265_v0 = vld [vmem:[%s3508_s9 + $0x10] sm:$0xff] }
 0xf63   : > { %2898 = vmatpush3.msra.mxu0 %v2265_v0 }
 0xf64   : > { %v2283_v38 = vsel %vm385_vm0, %v3398_v37, 0.0  ;;  %2899 = vmatprep.subr.mxu0 %v2981_v7 }
 0xf65   : > { %2284 = vadd.xlane.f32.xlu0 %v2283_v38  ;;  %2900 = vmatpush3.msra.mxu0 %v2264_v45 }
 0xf66   : > { %2901 = vmatprep.subr.mxu0 %v2981_v7 }
 0xf67   : > { %2902 = vmatpush3.msra.mxu0 %v2263_v46 }
 0xfee   : > { %v2285_v39 = vpop.xlane.xlu0 %2284 }
 0xfef   : > { %v2286_v40 = vmul.f32 0.03125, %v2285_v39 }
 0xff1   : > { %v2287_v41 = vsub.f32 %v3398_v37, %v2286_v40 }
 0xff3   : > { %v2288_v42 = vmul.f32 %v2287_v41, %v2287_v41 }
 0xff5   : > { %v2289_v43 = vsel %vm385_vm0, %v2288_v42, 0.0 }
 0xff6   : > { %2290 = vadd.xlane.f32.xlu1 %v2289_v43 }
0x107f   : > { %v2291_v48 = vpop.xlane.xlu1 %2290 }
0x1080   : > { %v2292_v49 = vmul.f32 0.03125, %v2291_v48 }
0x1082   : > { %v2293_v50 = vadd.f32 1e-05, %v2292_v49 }
0x1084   : > { %2969 = vrsqrt.f32 %v2293_v50 }
0x1091   : > { %v2970_v51 = vpop.eup %2969 }
0x1092   : > { %v2295_v53 = vmul.f32 %v2970_v51, %v2287_v41 }
0x1094   : > { %v2302_v55 = vmul.f32 %v2592_v52, %v2295_v53 }
0x1096   : > { %v2309_v56 = vadd.f32 %v2593_v54, %v2302_v55 }
0x1098   : > { %2904 = vmatmul.mubr.msk.f32.vlgmr.msra.gmra.mxu0 %vm385_vm0, %v2309_v56 }
0x1158   : > { %v2379_v10 = vpop.f32.mrf.mxu0 }
0x1159   : > { %v2384_v11 = vmul.f32 0.044715, %v2379_v10  ;;  %v2383_v18 = vmul.f32 0.5, %v2379_v10 }
0x115a   : > { %v2905_v12 = vpop.f32.mrf.mxu0 }
0x115b   : > { %v2385_v13 = vmul.f32 %v2384_v11, %v2379_v10 }
0x115d   : > { %v2386_v14 = vmul.f32 %v2385_v13, %v2379_v10 }
0x115f   : > { %v2387_v15 = vadd.f32 %v2386_v14, %v2379_v10 }
0x1161   : > { %v2388_v16 = vmul.f32 0.7978846, %v2387_v15 }
0x1163   : > { %2971 = vtanh.f32 %v2388_v16 }
0x1170   : > { %v2972_v17 = vpop.eup %2971 }
0x1171   : > { %v2390_v20 = vadd.f32 1.0, %v2972_v17 }
0x1173   : > { %v2391_v19 = vmul.f32 %v2390_v20, %v2383_v18 }
0x1175   : > { %2939 = vmatmul.mubr.f32.vlgmr.msra.gmra.mxu1 %v2391_v19 }
0x1235   : > { %v2458_v7 = vpop.f32.mrf.mxu1 }
0x1236   : > { %v2459_v21 = vadd.f32 %v2458_v7, %v3398_v37 }
0x1237   : > { %v2940_v22 = vpop.f32.mrf.mxu1 }
0x1238   : > { %2462 = vst.msk [vmem:[%s381_s14] sm:$0xff] %vm385_vm0, %v2459_v21 }
0x1239 PF: > { %s21_s17 = sadd.s32 1, %s2979_s17  }
0x123a   : > { %p18_p4 = scmp.ge.s32.totalorder %s21_s17, 4  }
0x123c   :  { %20 = sbr.rel (!%p18_p4) target bundleno = 1 (0x1), region = 106 }

// kernel: sma_encoder_forward.9
= control target key start
LH: loop header
LB: loop body
LE: loop exit
PB: predicated region body
PF: predicated region fallthrough
CT: control target
= control target key end

     0   :  { %s3675_s0 = inlined_call_operand.vmem [shape: f32[2,8,32], index: 0, kind: input, shape index: {}]   ;;  %s3676_s1 = inlined_call_operand.vmem [shape: f32[1,32], index: 1, kind: input, shape index: {}]   ;;  %s3677_s2 = inlined_call_operand.vmem [shape: f32[1,32], index: 2, kind: input, shape index: {}]   ;;  %s3678_s3 = inlined_call_operand.vmem [shape: f32[4,32,8], index: 3, kind: input, shape index: {}]   ;;  %s3679_s4 = inlined_call_operand.vmem [shape: f32[4,32,8], index: 4, kind: input, shape index: {}]   ;;  %s3680_s5 = inlined_call_operand.vmem [shape: f32[4,32,8], index: 5, kind: input, shape index: {}]   ;;  %s3681_s6 = inlined_call_operand.vmem [shape: f32[4,8,32], index: 6, kind: input, shape index: {}]   ;;  %s3682_s7 = inlined_call_operand.vmem [shape: f32[1,32], index: 7, kind: input, shape index: {}]   ;;  %s3683_s8 = inlined_call_operand.vmem [shape: f32[1,32], index: 8, kind: input, shape index: {}]   ;;  %s3684_s9 = inlined_call_operand.vmem [shape: f32[32,128], index: 9, kind: input, shape index: {}]   ;;  %s3685_s10 = inlined_call_operand.vmem [shape: f32[128,32], index: 10, kind: input, shape index: {}]   ;;  %s3686_s11 = inlined_call_operand.hbm [shape: f32[2,8,32], index: 11, kind: output, shape index: {}]  }
   0x1   :  { %3687 = sst [smem:[#allocation5_spill]] %s3675_s0 }
   0x2   :  { %16 = vsyncpa [#allocation3], 0 }
   0x3   :  { %18 = vsyncpa [#allocation3 + $0x1], 0  ;;  %s3150_s17 = smov 0   ;;  %s3152_s18 = smov 0  }
   0x4   :  { %s3154_s19 = smov 0   ;;  %s3156_s20 = smov 0  }
   0x5 LB: > { %s3171_s21 = sadd.s32 4294967295, %s3085_s20   ;;  %s2536_s22 = sadd.s32 4294967294, %s3085_s20   ;;  %s3085_s20 = sphi %s3156_s20, %s3694_s20   ;;  %s3081_s19 = sphi %s3154_s19, %s3693_s19   ;;  %s3077_s18 = sphi %s3152_s18, %s3692_s18   ;;  %s3073_s17 = sphi %s3150_s17, %s3691_s17  }
   0x6   : > { %s3175_s23 = sadd.s32 1, %s3085_s20   ;;  %s267_s24 = sadd.s32 1, %s3081_s19 }
   0x7   : > { %s264_s25 = ssub.s32 %s3085_s20, %s3175_s23  ;;  %p277_p0 = scmp.ne.s32.totalorder %s3081_s19, %s3077_s18 }
   0x8   : > { %p265_p1 = scmp.eq.s32.totalorder %s264_s25, 0  ;;  %p278_p2 = scmp.eq.s32.totalorder %s3171_s21, 1 }
   0x9   : > { %p283_p3 = scmp.ne.s32.totalorder %s3077_s18, %s3073_s17  ;;  %p284_p4 = scmp.eq.s32.totalorder %s2536_s22, 1 }
   0xa   : > { %s3186_s26 = scalar_select %p265_p1, %s3081_s19, %s267_s24  }
   0xb   : > { %p3188_p5 = por %p278_p2, %p277_p0  ;;  %p3192_p6 = por %p284_p4, %p283_p3 }
   0xc   : > { %p2539_p7 = scmp.ge.s32.totalorder %s3085_s20, 1  ;;  %p339_p8 = scmp.lt.s32.totalorder %s3085_s20, 3 }
   0xe   : > { %p340_p9 = pnand %p2539_p7, %p339_p8 }
   0xf   : > { %p378_p10 = scmp.lt.s32.totalorder (!%p340_p9), %s3171_s21, 1  ;;  %s3690_s0 = sld [smem:[#allocation5_spill]] (!%p340_p9) }
  0x10   : > { %343 = sbr.rel (%p340_p9) target bundleno = 4688 (0x1250), region = 64  ;;  %s375_s22 = sand.u32 (!%p340_p9), 1, %s3077_s18  }
  0x11   : > { %s2540_s24 = sshll.u32 (!%p340_p9), %s375_s22, 3  ;;  %s2615_s25 = sshll.u32 (!%p340_p9), %s3171_s21, 7 }
  0x12   : > { %s2464_s15 = scalar_lea.sflag (!%p340_p9), [#allocation3], %s375_s22 }
  0x15   : > { %s379_s29 = scalar_select %p378_p10, %s3171_s21, 1  ;;  %vm385_vm0 = vcmask 261120   ;;  %v3087_v7 = vmov 0.0   ;;  %v417_v8 = vld [vmem:[%s3678_s3 + $0x18] sm:$0xff]  ;;  %v416_v9 = vld [vmem:[%s3678_s3 + $0x10] sm:$0xff]  ;;  %v415_v10 = vld [vmem:[%s3678_s3 + $0x8] sm:$0xff] }
  0x16   : > { %2724 = vmatprep.subr.mxu0 %v3087_v7  ;;  %2762 = vmatprep.subr.mxu1 %v3087_v7  ;;  %v414_v11 = vld [vmem:[%s3678_s3] sm:$0xff]  ;;  %vm3088_vm1 = vmmov 0   ;;  %v494_v21 = vld [vmem:[%s3679_s4 + $0x18] sm:$0xff]  ;;  %v493_v22 = vld [vmem:[%s3679_s4 + $0x10] sm:$0xff]  ;;  %vm639_vm2 = vcmask 64512   ;;  %s3089_s21 = smov [#allocation2]  }
  0x17   : > { %s2541_s30 = sshll.u32 %s379_s29, 3  ;;  %2725 = vmatpush3.msra.mxu0 %v417_v8  ;;  %2732 = vmatprep.mubr.msk.f32.mxu0 %vm3088_vm1, %v3087_v7  ;;  %v2542_v16 = vld [vmem:[%s3676_s1] ss:$0 sm:$0xff]  ;;  %v492_v23 = vld [vmem:[%s3679_s4 + $0x8] sm:$0xff]  ;;  %v568_v25 = vld [vmem:[%s3680_s5 + $0x18] sm:$0xff]  ;;  %s377_s29 = scalar_lea.vmem [#allocation2], %s2540_s24 }
  0x18   : > { %s381_s14 = scalar_lea.vmem %s3690_s0, %s2541_s30  ;;  %2726 = vmatprep.subr.mxu0 %v3087_v7  ;;  %2764 = vmatprep.mubr.msk.f32.mxu1 %vm3088_vm1, %v3087_v7  ;;  %v2543_v18 = vld [vmem:[%s3677_s2] ss:$0 sm:$0xff]  ;;  %v567_v26 = vld [vmem:[%s3680_s5 + $0x10] sm:$0xff]  ;;  %v566_v27 = vld [vmem:[%s3680_s5 + $0x8] sm:$0xff]  ;;  %s2477_s30 = sshll.u32 %s377_s29, 4  ;;  %s2478_s30 = int_to_ptr.vmem [resolvable:$true] %s2477_s30 }
  0x19   : > { %v3203_v0 = vld [vmem:[%s381_s14] sm:$0xff]  ;;  %2727 = vmatpush3.msra.mxu0 %v416_v9  ;;  %v2553_v33 = vld [vmem:[%s3678_s3 + $0x38] sm:$0xff]  ;;  %v2552_v34 = vld [vmem:[%s3678_s3 + $0x30] sm:$0xff]  ;;  %s3639_s14 = scalar_lea.hbm %s3686_s11, %s2615_s25  ;;  %s3025_s16 = scalar_lea.vmem %s2478_s30, 128 }
  0x1a   : > { %v386_v1 = vsel %vm385_vm0, %v3203_v0, 0.0  ;;  %2728 = vmatprep.subr.mxu0 %v3087_v7  ;;  %v491_v24 = vld [vmem:[%s3679_s4] sm:$0xff]  ;;  %v2551_v35 = vld [vmem:[%s3678_s3 + $0x28] sm:$0xff]  ;;  %v2563_v39 = vld [vmem:[%s3680_s5 + $0x38] sm:$0xff]  ;;  %p3026_p11 = scmp.ne.s32.totalorder %s2478_s30, %s3025_s16  ;;  %s3029_s24 = sshll.u32 %s3089_s21, 4  ;;  %s3030_s24 = int_to_ptr.vmem [resolvable:$false] %s3029_s24 }
  0x1b   : > { %387 = vadd.xlane.f32.xlu0 %v386_v1  ;;  %2729 = vmatpush3.msra.mxu0 %v415_v10  ;;  %v565_v28 = vld [vmem:[%s3680_s5] sm:$0xff]  ;;  %v2562_v40 = vld [vmem:[%s3680_s5 + $0x30] sm:$0xff]  ;;  %v2561_v41 = vld [vmem:[%s3680_s5 + $0x28] sm:$0xff]  ;;  %s3031_s0 = scalar_lea.vmem %s3030_s24, 256  ;;  %p3032_p0 = scmp.lt.s32.totalorder %s2478_s30, %s3030_s24 }
  0x1c   : > { %2730 = vmatprep.subr.mxu0 %v3087_v7  ;;  %v2550_v37 = vld [vmem:[%s3678_s3 + $0x20] sm:$0xff]  ;;  %v2558_v59 = vld [vmem:[%s3679_s4 + $0x38] sm:$0xff]  ;;  %v2557_v60 = vld [vmem:[%s3679_s4 + $0x30] sm:$0xff]  ;;  %p3027_p12 = pnand %p3026_p11, %p3188_p5  ;;  %p3033_p1 = scmp.lt.s32.totalorder %s3031_s0, %s3025_s16 }
  0x1d   : > { %2731 = vmatpush3.msra.mxu0 %v414_v11  ;;  %v2560_v42 = vld [vmem:[%s3680_s5 + $0x20] sm:$0xff]  ;;  %v2556_v61 = vld [vmem:[%s3679_s4 + $0x28] sm:$0xff] }
  0x1e   : > { %2735 = vmatprep.subr.mxu0 %v3087_v7  ;;  %v2555_v62 = vld [vmem:[%s3679_s4 + $0x20] sm:$0xff]  ;;  %p3028_p13 = pneg %p3027_p12  ;;  %p3034_p2 = por %p3033_p1, %p3032_p0 }
  0x20   : > { %p3035_p3 = pnand %p3034_p2, %p3028_p13 }
  0xa4   : > { %v388_v2 = vpop.xlane.xlu0 %387 }
  0xa5   : > { %v390_v3 = vmul.f32 0.03125, %v388_v2 }
  0xa7   : > { %v391_v4 = vsub.f32 %v3203_v0, %v390_v3 }
  0xa9   : > { %v392_v5 = vmul.f32 %v391_v4, %v391_v4 }
  0xab   : > { %v393_v6 = vsel %vm385_vm0, %v392_v5, 0.0 }
  0xac   : > { %394 = vadd.xlane.f32.xlu0 %v393_v6 }
 0x135   : > { %v395_v12 = vpop.xlane.xlu0 %394 }
 0x136   : > { %v396_v13 = vmul.f32 0.03125, %v395_v12 }
 0x138   : > { %v397_v14 = vadd.f32 1e-05, %v396_v13 }
 0x13a   : > { %3003 = vrsqrt.f32 %v397_v14  ;;  %v2568_v14 = vld [vmem:[%s3681_s6 + $0x8] sm:$0xff] }
 0x147   : > { %v3004_v15 = vpop.eup %3003 }
 0x148   : > { %v399_v17 = vmul.f32 %v3004_v15, %v391_v4 }
 0x14a   : > { %v406_v19 = vmul.f32 %v2542_v16, %v399_v17 }
 0x14c   : > { %v3237_v20 = vadd.f32 %v2543_v18, %v406_v19  ;;  %v801_v18 = vld [vmem:[%s3681_s6] sm:$0xff]  ;;  %v2579_v19 = vld [vmem:[%s3679_s4 + $0x58] sm:$0xff] }
 0x14e   : > { %2733 = vmatmul.mubr.msk.f32.vlgmr.msra.gmra.mxu0 %vm385_vm0, %v3237_v20 }
 0x14f   : > { %2736 = vmatpush3.msra.mxu0 %v494_v21  ;;  %2743 = vmatprep.mubr.msk.f32.mxu0 %vm3088_vm1, %v3087_v7  ;;  %v2578_v21 = vld [vmem:[%s3679_s4 + $0x50] sm:$0xff] }
 0x150   : > { %2737 = vmatprep.subr.mxu0 %v3087_v7 }
 0x151   : > { %2738 = vmatpush3.msra.mxu0 %v493_v22  ;;  %v2577_v22 = vld [vmem:[%s3679_s4 + $0x48] sm:$0xff] }
 0x152   : > { %2739 = vmatprep.subr.mxu0 %v3087_v7 }
 0x153   : > { %2740 = vmatpush3.msra.mxu0 %v492_v23  ;;  %v2576_v23 = vld [vmem:[%s3679_s4 + $0x40] sm:$0xff] }
 0x154   : > { %2741 = vmatprep.subr.mxu0 %v3087_v7 }
 0x155   : > { %2742 = vmatpush3.msra.mxu0 %v491_v24  ;;  %v2574_v24 = vld [vmem:[%s3678_s3 + $0x58] sm:$0xff] }
 0x156   : > { %2744 = vmatmul.mubr.msk.f32.vlgmr.msra.gmra.mxu0 %vm385_vm0, %v3237_v20  ;;  %2746 = vmatprep.subr.mxu0 %v3087_v7 }
 0x157   : > { %2747 = vmatpush3.msra.mxu0 %v568_v25  ;;  %2754 = vmatprep.mubr.msk.f32.mxu0 %vm3088_vm1, %v3087_v7 }
 0x158   : > { %2748 = vmatprep.subr.mxu0 %v3087_v7 }
 0x159   : > { %2749 = vmatpush3.msra.mxu0 %v567_v26  ;;  %v2573_v26 = vld [vmem:[%s3678_s3 + $0x50] sm:$0xff] }
 0x15a   : > { %2750 = vmatprep.subr.mxu0 %v3087_v7 }
 0x15b   : > { %2751 = vmatpush3.msra.mxu0 %v566_v27 }
 0x15c   : > { %2752 = vmatprep.subr.mxu0 %v3087_v7 }
 0x15d   : > { %2753 = vmatpush3.msra.mxu0 %v565_v28  ;;  %v2572_v28 = vld [vmem:[%s3678_s3 + $0x48] sm:$0xff] }
 0x15e   : > { %2755 = vmatmul.mubr.msk.f32.vlgmr.msra.gmra.mxu0 %vm385_vm0, %v3237_v20  ;;  %2757 = vmatprep.subr.mxu0 %v3087_v7 }
 0x15f   : > { %2759 = vmatprep.mubr.msk.f32.mxu0 %vm3088_vm1, %v3087_v7 }
 0x20e   : > { %v487_v29 = vpop.f32.mrf.mxu0 }
 0x210   : > { %v2734_v30 = vpop.f32.mrf.mxu0 }
 0x211   : > { %v2571_v30 = vld [vmem:[%s3678_s3 + $0x40] sm:$0xff] }
 0x216   : > { %v561_v31 = vpop.f32.mrf.mxu0 }
 0x217   : > { %2758 = vmatpush3.xpose.msk.msra.mxu0 %vm639_vm2, %v561_v31 }
 0x218   : > { %v2745_v32 = vpop.f32.mrf.mxu0  ;;  %2767 = vmatprep.subr.mxu0 %v3087_v7 }
 0x219   : > { %v2584_v32 = vld [vmem:[%s3680_s5 + $0x58] sm:$0xff] }
 0x21a   : > { %2760 = vmatmul.mubr.msk.f32.vlgmr.msra.gmra.mxu0 %vm639_vm2, %v487_v29 }
 0x21b   : > { %2768 = vmatpush3.msra.mxu0 %v2553_v33  ;;  %2775 = vmatprep.mubr.msk.f32.mxu0 %vm3088_vm1, %v3087_v7  ;;  %v2583_v33 = vld [vmem:[%s3680_s5 + $0x50] sm:$0xff] }
 0x21c   : > { %2769 = vmatprep.subr.mxu0 %v3087_v7 }
 0x21d   : > { %2770 = vmatpush3.msra.mxu0 %v2552_v34  ;;  %v2582_v34 = vld [vmem:[%s3680_s5 + $0x48] sm:$0xff] }
 0x21e   : > { %v635_v36 = vpop.f32.mrf.mxu0  ;;  %2771 = vmatprep.subr.mxu0 %v3087_v7 }
 0x21f   : > { %2763 = vmatpush3.msra.mxu1 %v635_v36  ;;  %2772 = vmatpush3.msra.mxu0 %v2551_v35  ;;  %v2581_v36 = vld [vmem:[%s3680_s5 + $0x40] sm:$0xff] }
 0x220   : > { %v2756_v38 = vpop.f32.mrf.mxu0  ;;  %2773 = vmatprep.subr.mxu0 %v3087_v7  ;;  %2778 = vmatprep.subr.mxu1 %v3087_v7 }
 0x221   : > { %2774 = vmatpush3.msra.mxu0 %v2550_v37 }
 0x222   : > { %2776 = vmatmul.mubr.msk.f32.vlgmr.msra.gmra.mxu0 %vm385_vm0, %v3237_v20  ;;  %2789 = vmatprep.subr.mxu0 %v3087_v7 }
 0x223   : > { %2790 = vmatpush3.msra.mxu0 %v2563_v39  ;;  %2797 = vmatprep.mubr.msk.f32.mxu0 %vm3088_vm1, %v3087_v7 }
 0x224   : > { %2791 = vmatprep.subr.mxu0 %v3087_v7 }
 0x225   : > { %2792 = vmatpush3.msra.mxu0 %v2562_v40 }
 0x226   : > { %2793 = vmatprep.subr.mxu0 %v3087_v7 }
 0x227   : > { %2794 = vmatpush3.msra.mxu0 %v2561_v41 }
 0x228   : > { %2795 = vmatprep.subr.mxu0 %v3087_v7 }
 0x229   : > { %2796 = vmatpush3.msra.mxu0 %v2560_v42 }
 0x22a   : > { %2798 = vmatmul.mubr.msk.f32.vlgmr.msra.gmra.mxu0 %vm385_vm0, %v3237_v20  ;;  %2810 = vmatprep.subr.mxu0 %v3087_v7 }
 0x22b   : > { %2812 = vmatprep.mubr.msk.f32.mxu0 %vm3088_vm1, %v3087_v7  ;;  %2811 = vmatpush3.msra.mxu0 %v2568_v14 }
 0x22c   : > { %2820 = vmatprep.subr.mxu0 %v3087_v7 }
 0x2da   : > { %v712_v43 = vpop.f32.mrf.mxu0 }
 0x2db   : > { %v716_v44 = vmul.f32 0.35355338, %v712_v43 }
 0x2dc   : > { %v2761_v45 = vpop.f32.mrf.mxu0 }
 0x2dd   : > { %v717_v46 = vsel %vm639_vm2, %v716_v44, -inf }
 0x2de   : > { %718 = vmax.xlane.f32.xlu1 %v717_v46 }
 0x2e2   : > { %v873_v47 = vpop.f32.mrf.mxu0 }
 0x2e4   : > { %v2777_v48 = vpop.f32.mrf.mxu0 }
 0x2ea   : > { %v1023_v49 = vpop.f32.mrf.mxu0 }
 0x2ec   : > { %v2799_v50 = vpop.f32.mrf.mxu0 }
 0x367   : > { %v719_v51 = vpop.xlane.xlu1 %718 }
 0x368   : > { %v720_v52 = vsub.f32 %v716_v44, %v719_v51 }
 0x36a   : > { %v721_v53 = vmul.f32 1.442695, %v720_v52 }
 0x36c   : > { %3005 = vpow2.f32 %v721_v53  ;;  %v2589_v53 = vld [vmem:[%s3681_s6 + $0x10] sm:$0xff] }
 0x379   : > { %v3006_v54 = vpop.eup %3005 }
 0x37a   : > { %v723_v55 = vsel %vm639_vm2, %v3006_v54, 0.0 }
 0x37b   : > { %724 = vadd.xlane.f32.xlu1 %v723_v55 }
 0x404   : > { %v725_v56 = vpop.xlane.xlu1 %724 }
 0x405   : > { %3007 = vrcp.f32 %v725_v56 }
 0x412   : > { %v3008_v57 = vpop.eup %3007 }
 0x413   : > { %v727_v58 = vmul.f32 %v3008_v57, %v3006_v54  ;;  %v2594_v57 = vld [vmem:[%s3678_s3 + $0x78] sm:$0xff] }
 0x415   : > { %2765 = vmatmul.mubr.msk.f32.vlgmr.msra.gmra.mxu1 %vm639_vm2, %v727_v58  ;;  %v2593_v58 = vld [vmem:[%s3678_s3 + $0x70] sm:$0xff] }
 0x416   : > { %2779 = vmatpush3.msra.mxu1 %v2558_v59  ;;  %2786 = vmatprep.mubr.msk.f32.mxu1 %vm3088_vm1, %v3087_v7  ;;  %v2592_v59 = vld [vmem:[%s3678_s3 + $0x68] sm:$0xff] }
 0x417   : > { %2780 = vmatprep.subr.mxu1 %v3087_v7 }
 0x418   : > { %2781 = vmatpush3.msra.mxu1 %v2557_v60  ;;  %v2591_v60 = vld [vmem:[%s3678_s3 + $0x60] sm:$0xff] }
 0x419   : > { %2782 = vmatprep.subr.mxu1 %v3087_v7 }
 0x41a   : > { %2783 = vmatpush3.msra.mxu1 %v2556_v61  ;;  %v2604_v61 = vld [vmem:[%s3680_s5 + $0x78] sm:$0xff] }
 0x41b   : > { %2784 = vmatprep.subr.mxu1 %v3087_v7 }
 0x41c   : > { %2785 = vmatpush3.msra.mxu1 %v2555_v62  ;;  %v2603_v62 = vld [vmem:[%s3680_s5 + $0x70] sm:$0xff] }
 0x41d   : > { %2787 = vmatmul.mubr.msk.f32.vlgmr.msra.gmra.mxu1 %vm385_vm0, %v3237_v20  ;;  %2800 = vmatprep.subr.mxu1 %v3087_v7 }
 0x41e   : > { %2802 = vmatprep.mubr.msk.f32.mxu1 %vm3088_vm1, %v3087_v7 }
 0x4d5   : > { %v797_v63 = vpop.f32.mrf.mxu1 }
 0x4d7   : > { %v2766_v1 = vpop.f32.mrf.mxu1 }
 0x4d8   : > { %v2601_v1 = vld [vmem:[%s3680_s5 + $0x60] sm:$0xff] }
 0x4dd   : > { %v948_v2 = vpop.f32.mrf.mxu1 }
 0x4de   : > { %2801 = vmatpush3.xpose.msk.msra.mxu1 %vm639_vm2, %v948_v2  ;;  %v2599_v2 = vld [vmem:[%s3679_s4 + $0x78] sm:$0xff] }
 0x4df   : > { %v2788_v3 = vpop.f32.mrf.mxu1  ;;  %2805 = vmatprep.subr.mxu1 %v3087_v7 }
 0x4e1   : > { %2803 = vmatmul.mubr.msk.f32.vlgmr.msra.gmra.mxu1 %vm639_vm2, %v873_v47 }
 0x4e2   : > { %2806 = vmatpush3.msra.mxu1 %v1023_v49  ;;  %2807 = vmatprep.mubr.msk.f32.mxu1 %vm3088_vm1, %v3087_v7 }
 0x4e3   : > { %2815 = vmatprep.subr.mxu1 %v3087_v7 }
 0x5a1   : > { %v1099_v4 = vpop.f32.mrf.mxu1 }
 0x5a2   : > { %v1103_v5 = vmul.f32 0.35355338, %v1099_v4  ;;  %v2598_v4 = vld [vmem:[%s3679_s4 + $0x70] sm:$0xff] }
 0x5a3   : > { %v2804_v6 = vpop.f32.mrf.mxu1 }
 0x5a4   : > { %v1104_v8 = vsel %vm639_vm2, %v1103_v5, -inf  ;;  %v2597_v6 = vld [vmem:[%s3679_s4 + $0x68] sm:$0xff] }
 0x5a5   : > { %1105 = vmax.xlane.f32.xlu0 %v1104_v8  ;;  %v2596_v8 = vld [vmem:[%s3679_s4 + $0x60] sm:$0xff] }
 0x62e   : > { %v1106_v9 = vpop.xlane.xlu0 %1105 }
 0x62f   : > { %v1107_v10 = vsub.f32 %v1103_v5, %v1106_v9 }
 0x631   : > { %v1108_v11 = vmul.f32 1.442695, %v1107_v10 }
 0x633   : > { %3009 = vpow2.f32 %v1108_v11 }
 0x640   : > { %v3010_v12 = vpop.eup %3009 }
 0x641   : > { %v1110_v13 = vsel %vm639_vm2, %v3010_v12, 0.0 }
 0x642   : > { %1111 = vadd.xlane.f32.xlu1 %v1110_v13 }
 0x6cb   : > { %v1112_v15 = vpop.xlane.xlu1 %1111 }
 0x6cc   : > { %3011 = vrcp.f32 %v1112_v15 }
 0x6d9   : > { %v3012_v16 = vpop.eup %3011 }
 0x6da   : > { %v1114_v17 = vmul.f32 %v3012_v16, %v3010_v12 }
 0x6dc   : > { %2808 = vmatmul.mubr.msk.f32.vlgmr.msra.gmra.mxu1 %vm639_vm2, %v1114_v17 }
 0x6dd   : > { %2816 = vmatpush3.msra.mxu1 %v801_v18  ;;  %2817 = vmatprep.mubr.msk.f32.mxu1 %vm3088_vm1, %v3087_v7 }
 0x6de   : > { %2831 = vmatprep.subr.mxu1 %v3087_v7 }
 0x6e0   : > { %2818 = vmatmul.mubr.msk.f32.vlgmr.msra.gmra.mxu1 %vm639_vm2, %v797_v63  ;;  %v2602_v63 = vld [vmem:[%s3680_s5 + $0x68] sm:$0xff] }
 0x6e1   : > { %2832 = vmatpush3.msra.mxu1 %v2579_v19  ;;  %2839 = vmatprep.mubr.msk.f32.mxu1 %vm3088_vm1, %v3087_v7 }
 0x6e2   : > { %2833 = vmatprep.subr.mxu1 %v3087_v7 }
 0x6e3   : > { %2834 = vmatpush3.msra.mxu1 %v2578_v21 }
 0x6e4   : > { %2835 = vmatprep.subr.mxu1 %v3087_v7 }
 0x6e5   : > { %2836 = vmatpush3.msra.mxu1 %v2577_v22 }
 0x6e6   : > { %2837 = vmatprep.subr.mxu1 %v3087_v7 }
 0x6e7   : > { %2838 = vmatpush3.msra.mxu1 %v2576_v23 }
 0x6e8   : > { %2840 = vmatmul.mubr.msk.f32.vlgmr.msra.gmra.mxu1 %vm385_vm0, %v3237_v20  ;;  %2853 = vmatprep.subr.mxu1 %v3087_v7 }
 0x6e9   : > { %2855 = vmatprep.mubr.msk.f32.mxu1 %vm3088_vm1, %v3087_v7 }
 0x79c   : > { %v1184_v25 = vpop.f32.mrf.mxu1 }
 0x79d   : > { %2813 = vmatmul.mubr.msk.f32.vlgmr.msra.gmra.mxu0 %vm639_vm2, %v1184_v25 }
 0x79e   : > { %2821 = vmatpush3.msra.mxu0 %v2574_v24  ;;  %v2809_v27 = vpop.f32.mrf.mxu1  ;;  %2828 = vmatprep.mubr.msk.f32.mxu0 %vm3088_vm1, %v3087_v7 }
 0x79f   : > { %2822 = vmatprep.subr.mxu0 %v3087_v7 }
 0x7a0   : > { %2823 = vmatpush3.msra.mxu0 %v2573_v26  ;;  %v3409_v29 = vpop.f32.mrf.mxu1 }
 0x7a1   : > { %2824 = vmatprep.subr.mxu0 %v3087_v7 }
 0x7a2   : > { %2825 = vmatpush3.msra.mxu0 %v2572_v28  ;;  %v2819_v31 = vpop.f32.mrf.mxu1  ;;  %v2609_v28 = vld [vmem:[%s3681_s6 + $0x18] sm:$0xff] }
 0x7a3   : > { %2826 = vmatprep.subr.mxu0 %v3087_v7 }
 0x7a4   : > { %2827 = vmatpush3.msra.mxu0 %v2571_v30 }
 0x7a5   : > { %2829 = vmatmul.mubr.msk.f32.vlgmr.msra.gmra.mxu0 %vm385_vm0, %v3237_v20  ;;  %2842 = vmatprep.subr.mxu0 %v3087_v7 }
 0x7a6   : > { %2843 = vmatpush3.msra.mxu0 %v2584_v32  ;;  %2850 = vmatprep.mubr.msk.f32.mxu0 %vm3088_vm1, %v3087_v7 }
 0x7a7   : > { %2844 = vmatprep.subr.mxu0 %v3087_v7 }
 0x7a8   : > { %v1482_v35 = vpop.f32.mrf.mxu1  ;;  %2845 = vmatpush3.msra.mxu0 %v2583_v33 }
 0x7a9   : > { %2846 = vmatprep.subr.mxu0 %v3087_v7  ;;  %2854 = vmatpush3.xpose.msk.msra.mxu1 %vm639_vm2, %v1482_v35 }
 0x7aa   : > { %v2841_v37 = vpop.f32.mrf.mxu1  ;;  %2847 = vmatpush3.msra.mxu0 %v2582_v34  ;;  %2858 = vmatprep.subr.mxu1 %v3087_v7 }
 0x7ab   : > { %2848 = vmatprep.subr.mxu0 %v3087_v7 }
 0x7ac   : > { %2849 = vmatpush3.msra.mxu0 %v2581_v36 }
 0x7ad   : > { %2851 = vmatmul.mubr.msk.f32.vlgmr.msra.gmra.mxu0 %vm385_vm0, %v3237_v20  ;;  %2863 = vmatprep.subr.mxu0 %v3087_v7 }
 0x7ae   : > { %2865 = vmatprep.mubr.msk.f32.mxu0 %vm3088_vm1, %v3087_v7  ;;  %2864 = vmatpush3.msra.mxu0 %v2589_v53 }
 0x7af   : > { %2879 = vmatprep.subr.mxu0 %v3087_v7 }
 0x85d   : > { %v3443_v38 = vpop.f32.mrf.mxu0 }
 0x85e   : > { %v1333_v13 = vadd.f32 %v3409_v29, %v3443_v38 }
 0x85f   : > { %v2814_v39 = vpop.f32.mrf.mxu0 }
 0x865   : > { %v1407_v40 = vpop.f32.mrf.mxu0 }
 0x866   : > { %2856 = vmatmul.mubr.msk.f32.vlgmr.msra.gmra.mxu1 %vm639_vm2, %v1407_v40 }
 0x867   : > { %v2830_v41 = vpop.f32.mrf.mxu0  ;;  %2860 = vmatprep.mubr.msk.f32.mxu1 %vm3088_vm1, %v3087_v7 }
 0x86d   : > { %v1557_v42 = vpop.f32.mrf.mxu0 }
 0x86e   : > { %2859 = vmatpush3.msra.mxu1 %v1557_v42 }
 0x86f   : > { %v2852_v43 = vpop.f32.mrf.mxu0  ;;  %2868 = vmatprep.subr.mxu1 %v3087_v7 }
 0x926   : > { %v1633_v44 = vpop.f32.mrf.mxu1 }
 0x927   : > { %v1637_v45 = vmul.f32 0.35355338, %v1633_v44  ;;  %v2266_v44 = vld [vmem:[%s3684_s9 + $0x18] sm:$0xff] }
 0x928   : > { %v2857_v46 = vpop.f32.mrf.mxu1 }
 0x929   : > { %v1638_v47 = vsel %vm639_vm2, %v1637_v45, -inf  ;;  %v2263_v46 = vld [vmem:[%s3684_s9] sm:$0xff] }
 0x92a   : > { %1639 = vmax.xlane.f32.xlu0 %v1638_v47  ;;  %v2282_v47 = vld [vmem:[%s3685_s10 + $0x78] sm:$0xff] }
 0x9b3   : > { %v1640_v48 = vpop.xlane.xlu0 %1639 }
 0x9b4   : > { %v1641_v49 = vsub.f32 %v1637_v45, %v1640_v48  ;;  %v2264_v45 = vld [vmem:[%s3684_s9 + $0x8] sm:$0xff] }
 0x9b6   : > { %v1642_v50 = vmul.f32 1.442695, %v1641_v49 }
 0x9b8   : > { %3013 = vpow2.f32 %v1642_v50 }
 0x9c5   : > { %v3014_v51 = vpop.eup %3013 }
 0x9c6   : > { %v1644_v52 = vsel %vm639_vm2, %v3014_v51, 0.0 }
 0x9c7   : > { %1645 = vadd.xlane.f32.xlu1 %v1644_v52  ;;  %v2611_v52 = vld [vmem:[%s3682_s7] ss:$0 sm:$0xff] }
 0xa50   : > { %v1646_v54 = vpop.xlane.xlu1 %1645 }
 0xa51   : > { %3015 = vrcp.f32 %v1646_v54  ;;  %v2612_v54 = vld [vmem:[%s3683_s8] ss:$0 sm:$0xff] }
 0xa5e   : > { %v3016_v55 = vpop.eup %3015 }
 0xa5f   : > { %v1648_v56 = vmul.f32 %v3016_v55, %v3014_v51 }
 0xa61   : > { %2861 = vmatmul.mubr.msk.f32.vlgmr.msra.gmra.mxu1 %vm639_vm2, %v1648_v56 }
 0xa62   : > { %2869 = vmatpush3.msra.mxu1 %v2594_v57  ;;  %2876 = vmatprep.mubr.msk.f32.mxu1 %vm3088_vm1, %v3087_v7  ;;  %v2281_v57 = vld [vmem:[%s3685_s10 + $0x70] sm:$0xff] }
 0xa63   : > { %2870 = vmatprep.subr.mxu1 %v3087_v7 }
 0xa64   : > { %2871 = vmatpush3.msra.mxu1 %v2593_v58  ;;  %v2280_v58 = vld [vmem:[%s3685_s10 + $0x68] sm:$0xff] }
 0xa65   : > { %2872 = vmatprep.subr.mxu1 %v3087_v7 }
 0xa66   : > { %2873 = vmatpush3.msra.mxu1 %v2592_v59  ;;  %v2279_v59 = vld [vmem:[%s3685_s10 + $0x60] sm:$0xff] }
 0xa67   : > { %2874 = vmatprep.subr.mxu1 %v3087_v7 }
 0xa68   : > { %2875 = vmatpush3.msra.mxu1 %v2591_v60  ;;  %v2278_v60 = vld [vmem:[%s3685_s10 + $0x58] sm:$0xff] }
 0xa69   : > { %2877 = vmatmul.mubr.msk.f32.vlgmr.msra.gmra.mxu1 %vm385_vm0, %v3237_v20  ;;  %2890 = vmatprep.subr.mxu1 %v3087_v7 }
 0xa6a   : > { %2891 = vmatpush3.msra.mxu1 %v2604_v61  ;;  %2898 = vmatprep.mubr.msk.f32.mxu1 %vm3088_vm1, %v3087_v7  ;;  %v2277_v61 = vld [vmem:[%s3685_s10 + $0x50] sm:$0xff] }
 0xa6b   : > { %2892 = vmatprep.subr.mxu1 %v3087_v7 }
 0xa6c   : > { %2893 = vmatpush3.msra.mxu1 %v2603_v62  ;;  %v2276_v62 = vld [vmem:[%s3685_s10 + $0x48] sm:$0xff] }
 0xa6d   : > { %2894 = vmatprep.subr.mxu1 %v3087_v7 }
 0xa6e   : > { %2895 = vmatpush3.msra.mxu1 %v2602_v63  ;;  %v2275_v63 = vld [vmem:[%s3685_s10 + $0x40] sm:$0xff] }
 0xa6f   : > { %2896 = vmatprep.subr.mxu1 %v3087_v7 }
 0xa70   : > { %2897 = vmatpush3.msra.mxu1 %v2601_v1  ;;  %v2274_v1 = vld [vmem:[%s3685_s10 + $0x38] sm:$0xff] }
 0xa71   : > { %2899 = vmatmul.mubr.msk.f32.vlgmr.msra.gmra.mxu1 %vm385_vm0, %v3237_v20  ;;  %2911 = vmatprep.subr.mxu1 %v3087_v7 }
 0xa72   : > { %2913 = vmatprep.mubr.msk.f32.mxu1 %vm3088_vm1, %v3087_v7  ;;  %2912 = vmatpush3.msra.mxu1 %v2609_v28 }
 0xa73   : > { %2927 = vmatprep.subr.mxu1 %v3087_v7 }
 0xb21   : > { %v1718_v3 = vpop.f32.mrf.mxu1 }
 0xb22   : > { %2866 = vmatmul.mubr.msk.f32.vlgmr.msra.gmra.mxu0 %vm639_vm2, %v1718_v3  ;;  %v2272_v3 = vld [vmem:[%s3685_s10 + $0x28] sm:$0xff] }
 0xb23   : > { %2880 = vmatpush3.msra.mxu0 %v2599_v2  ;;  %v2862_v5 = vpop.f32.mrf.mxu1  ;;  %2887 = vmatprep.mubr.msk.f32.mxu0 %vm3088_vm1, %v3087_v7  ;;  %v2273_v2 = vld [vmem:[%s3685_s10 + $0x30] sm:$0xff] }
 0xb24   : > { %2881 = vmatprep.subr.mxu0 %v3087_v7  ;;  %v2270_v5 = vld [vmem:[%s3685_s10 + $0x18] sm:$0xff] }
 0xb25   : > { %2882 = vmatpush3.msra.mxu0 %v2598_v4  ;;  %v2271_v4 = vld [vmem:[%s3685_s10 + $0x20] sm:$0xff] }
 0xb26   : > { %2883 = vmatprep.subr.mxu0 %v3087_v7 }
 0xb27   : > { %2884 = vmatpush3.msra.mxu0 %v2597_v6  ;;  %v2269_v6 = vld [vmem:[%s3685_s10 + $0x10] sm:$0xff] }
 0xb28   : > { %2885 = vmatprep.subr.mxu0 %v3087_v7 }
 0xb29   : > { %v1869_v9 = vpop.f32.mrf.mxu1  ;;  %2886 = vmatpush3.msra.mxu0 %v2596_v8  ;;  %v2268_v8 = vld [vmem:[%s3685_s10 + $0x8] sm:$0xff] }
 0xb2a   : > { %2888 = vmatmul.mubr.msk.f32.vlgmr.msra.gmra.mxu0 %vm385_vm0, %v3237_v20  ;;  %2901 = vmatprep.subr.mxu0 %v3087_v7 }
 0xb2b   : > { %v2878_v10 = vpop.f32.mrf.mxu1  ;;  %2903 = vmatprep.mubr.msk.f32.mxu0 %vm3088_vm1, %v3087_v7 }
 0xb31   : > { %v2019_v11 = vpop.f32.mrf.mxu1 }
 0xb33   : > { %v2900_v12 = vpop.f32.mrf.mxu1 }
 0xbe2   : > { %v1793_v14 = vpop.f32.mrf.mxu0 }
 0xbe3   : > { %v1797_v15 = vadd.f32 %v1793_v14, %v1333_v13 }
 0xbe4   : > { %v2867_v16 = vpop.f32.mrf.mxu0 }
 0xbea   : > { %v1944_v17 = vpop.f32.mrf.mxu0 }
 0xbeb   : > { %2902 = vmatpush3.xpose.msk.msra.mxu0 %vm639_vm2, %v1944_v17 }
 0xbec   : > { %v2889_v18 = vpop.f32.mrf.mxu0  ;;  %2906 = vmatprep.subr.mxu0 %v3087_v7 }
 0xbee   : > { %2904 = vmatmul.mubr.msk.f32.vlgmr.msra.gmra.mxu0 %vm639_vm2, %v1869_v9  ;;  %v2267_v9 = vld [vmem:[%s3685_s10] sm:$0xff] }
 0xbef   : > { %2907 = vmatpush3.msra.mxu0 %v2019_v11  ;;  %2908 = vmatprep.mubr.msk.f32.mxu0 %vm3088_vm1, %v3087_v7 }
 0xbf0   : > { %2916 = vmatprep.subr.mxu0 %v3087_v7 }
 0xcae   : > { %v2095_v20 = vpop.f32.mrf.mxu0 }
 0xcaf   : > { %v2099_v19 = vmul.f32 0.35355338, %v2095_v20 }
 0xcb0   : > { %v2905_v21 = vpop.f32.mrf.mxu0 }
 0xcb1   : > { %v2100_v22 = vsel %vm639_vm2, %v2099_v19, -inf }
 0xcb2   : > { %2101 = vmax.xlane.f32.xlu0 %v2100_v22 }
 0xd3b   : > { %v2102_v23 = vpop.xlane.xlu0 %2101 }
 0xd3c   : > { %v2103_v24 = vsub.f32 %v2099_v19, %v2102_v23 }
 0xd3e   : > { %v2104_v25 = vmul.f32 1.442695, %v2103_v24 }
 0xd40   : > { %3017 = vpow2.f32 %v2104_v25 }
 0xd4d   : > { %v3018_v26 = vpop.eup %3017 }
 0xd4e   : > { %v2106_v27 = vsel %vm639_vm2, %v3018_v26, 0.0 }
 0xd4f   : > { %2107 = vadd.xlane.f32.xlu1 %v2106_v27 }
 0xdd8   : > { %v2108_v29 = vpop.xlane.xlu1 %2107 }
 0xdd9   : > { %3019 = vrcp.f32 %v2108_v29 }
 0xde6   : > { %v3020_v30 = vpop.eup %3019 }
 0xde7   : > { %v2110_v31 = vmul.f32 %v3020_v30, %v3018_v26 }
 0xde9   : > { %2909 = vmatmul.mubr.msk.f32.vlgmr.msra.gmra.mxu0 %vm639_vm2, %v2110_v31 }
 0xdea   : > { %2924 = vmatprep.mubr.msk.f32.mxu0 %vm3088_vm1, %v3087_v7  ;;  %2917 = vmatpush3.msra.mxu0 %v2266_v44 }
 0xdeb   : > { %2918 = vmatprep.subr.mxu0 %v3087_v7 }
 0xea9   : > { %v2180_v32 = vpop.f32.mrf.mxu0 }
 0xeaa   : > { %2914 = vmatmul.mubr.msk.f32.vlgmr.msra.gmra.mxu1 %vm639_vm2, %v2180_v32 }
 0xeab   : > { %v2910_v33 = vpop.f32.mrf.mxu0  ;;  %2959 = vmatprep.mubr.msk.f32.mxu1 %vm3088_vm1, %v3087_v7  ;;  %2928 = vmatpush3.msra.mxu1 %v2282_v47 }
 0xeac   : > { %2929 = vmatprep.subr.mxu1 %v3087_v7 }
 0xead   : > { %2930 = vmatpush3.msra.mxu1 %v2281_v57 }
 0xeae   : > { %2931 = vmatprep.subr.mxu1 %v3087_v7 }
 0xeaf   : > { %2932 = vmatpush3.msra.mxu1 %v2280_v58 }
 0xeb0   : > { %2933 = vmatprep.subr.mxu1 %v3087_v7 }
 0xeb1   : > { %2934 = vmatpush3.msra.mxu1 %v2279_v59 }
 0xeb2   : > { %2935 = vmatprep.subr.mxu1 %v3087_v7 }
 0xeb3   : > { %2936 = vmatpush3.msra.mxu1 %v2278_v60 }
 0xeb4   : > { %2937 = vmatprep.subr.mxu1 %v3087_v7 }
 0xeb5   : > { %2938 = vmatpush3.msra.mxu1 %v2277_v61 }
 0xeb6   : > { %2939 = vmatprep.subr.mxu1 %v3087_v7 }
 0xeb7   : > { %2940 = vmatpush3.msra.mxu1 %v2276_v62 }
 0xeb8   : > { %2941 = vmatprep.subr.mxu1 %v3087_v7 }
 0xeb9   : > { %2942 = vmatpush3.msra.mxu1 %v2275_v63 }
 0xeba   : > { %2943 = vmatprep.subr.mxu1 %v3087_v7 }
 0xebb   : > { %2944 = vmatpush3.msra.mxu1 %v2274_v1 }
 0xebc   : > { %2945 = vmatprep.subr.mxu1 %v3087_v7 }
 0xebd   : > { %2946 = vmatpush3.msra.mxu1 %v2273_v2 }
 0xebe   : > { %2947 = vmatprep.subr.mxu1 %v3087_v7 }
 0xebf   : > { %2948 = vmatpush3.msra.mxu1 %v2272_v3 }
 0xec0   : > { %2949 = vmatprep.subr.mxu1 %v3087_v7 }
 0xec1   : > { %2950 = vmatpush3.msra.mxu1 %v2271_v4 }
 0xec2   : > { %2951 = vmatprep.subr.mxu1 %v3087_v7 }
 0xec3   : > { %2952 = vmatpush3.msra.mxu1 %v2270_v5 }
 0xec4   : > { %2953 = vmatprep.subr.mxu1 %v3087_v7 }
 0xec5   : > { %2954 = vmatpush3.msra.mxu1 %v2269_v6 }
 0xec6   : > { %2955 = vmatprep.subr.mxu1 %v3087_v7 }
 0xec7   : > { %2956 = vmatpush3.msra.mxu1 %v2268_v8 }
 0xec8   : > { %2957 = vmatprep.subr.mxu1 %v3087_v7 }
 0xec9   : > { %2958 = vmatpush3.msra.mxu1 %v2267_v9 }
 0xf6a   : > { %v2255_v34 = vpop.f32.mrf.mxu1 }
 0xf6b   : > { %v2259_v35 = vadd.f32 %v2255_v34, %v1797_v15 }
 0xf6c   : > { %v2915_v36 = vpop.f32.mrf.mxu1 }
 0xf6d   : > { %v3542_v37 = vadd.f32 %v2259_v35, %v3203_v0  ;;  %v2265_v0 = vld [vmem:[%s3684_s9 + $0x10] sm:$0xff] }
 0xf6e   : > { %2919 = vmatpush3.msra.mxu0 %v2265_v0 }
 0xf6f   : > { %v2283_v38 = vsel %vm385_vm0, %v3542_v37, 0.0  ;;  %2920 = vmatprep.subr.mxu0 %v3087_v7 }
 0xf70   : > { %2284 = vadd.xlane.f32.xlu0 %v2283_v38  ;;  %2921 = vmatpush3.msra.mxu0 %v2264_v45 }
 0xf71   : > { %2922 = vmatprep.subr.mxu0 %v3087_v7 }
 0xf72   : > { %2923 = vmatpush3.msra.mxu0 %v2263_v46 }
 0xff9   : > { %v2285_v39 = vpop.xlane.xlu0 %2284 }
 0xffa   : > { %v2286_v40 = vmul.f32 0.03125, %v2285_v39 }
 0xffc   : > { %v2287_v41 = vsub.f32 %v3542_v37, %v2286_v40 }
 0xffe   : > { %v2288_v42 = vmul.f32 %v2287_v41, %v2287_v41 }
0x1000   : > { %v2289_v43 = vsel %vm385_vm0, %v2288_v42, 0.0 }
0x1001   : > { %2290 = vadd.xlane.f32.xlu1 %v2289_v43 }
0x108a   : > { %v2291_v48 = vpop.xlane.xlu1 %2290 }
0x108b   : > { %v2292_v49 = vmul.f32 0.03125, %v2291_v48 }
0x108d   : > { %v2293_v50 = vadd.f32 1e-05, %v2292_v49 }
0x108f   : > { %3021 = vrsqrt.f32 %v2293_v50 }
0x109c   : > { %v3022_v51 = vpop.eup %3021 }
0x109d   : > { %v2295_v53 = vmul.f32 %v3022_v51, %v2287_v41 }
0x109f   : > { %v2302_v55 = vmul.f32 %v2611_v52, %v2295_v53 }
0x10a1   : > { %v2309_v56 = vadd.f32 %v2612_v54, %v2302_v55 }
0x10a3   : > { %2925 = vmatmul.mubr.msk.f32.vlgmr.msra.gmra.mxu0 %vm385_vm0, %v2309_v56 }
0x1163   : > { %v2379_v10 = vpop.f32.mrf.mxu0 }
0x1164   : > { %v2384_v11 = vmul.f32 0.044715, %v2379_v10  ;;  %v2383_v18 = vmul.f32 0.5, %v2379_v10 }
0x1165   : > { %v2926_v12 = vpop.f32.mrf.mxu0 }
0x1166   : > { %v2385_v13 = vmul.f32 %v2384_v11, %v2379_v10 }
0x1168   : > { %v2386_v14 = vmul.f32 %v2385_v13, %v2379_v10 }
0x116a   : > { %v2387_v15 = vadd.f32 %v2386_v14, %v2379_v10 }
0x116c   : > { %v2388_v16 = vmul.f32 0.7978846, %v2387_v15 }
0x116e   : > { %3023 = vtanh.f32 %v2388_v16 }
0x117b   : > { %v3024_v17 = vpop.eup %3023 }
0x117c   : > { %v2390_v20 = vadd.f32 1.0, %v3024_v17 }
0x117e   : > { %v2391_v19 = vmul.f32 %v2390_v20, %v2383_v18 }
0x1180   : > { %2960 = vmatmul.mubr.f32.vlgmr.msra.gmra.mxu1 %v2391_v19 }
0x1240   : > { %v2458_v7 = vpop.f32.mrf.mxu1 }
0x1241   : > { %v2459_v21 = vadd.f32 %v2458_v7, %v3542_v37 }
0x1242   : > { %v2961_v22 = vpop.f32.mrf.mxu1 }
0x1243   : > { %2462 = vst.msk [vmem:[%s377_s29] sm:$0xff] %vm385_vm0, %v2459_v21 }
0x1244   : > { %3038 = shalt.err (!%p3035_p3)
}
0x1245   : > { %s3039_s25 = scalar_lea.hbm %s3639_s14, 128  ;;  %s3043_s12 = scalar_lea.hbm %s3686_s11, 256 }
0x1246   : > { %p3040_p4 = scmp.ne.s32.totalorder %s3639_s14, %s3039_s25  ;;  %p3044_p9 = scmp.lt.s32.totalorder %s3639_s14, %s3686_s11 }
0x1247   : > { %p3045_p10 = scmp.lt.s32.totalorder %s3043_s12, %s3039_s25 }
0x1248   : > { %p3041_p7 = pnand %p3040_p4, %p3188_p5 }
0x1249   : > { %p3046_p11 = por %p3045_p10, %p3044_p9 }
0x124a   : > { %p3042_p8 = pneg %p3041_p7 }
0x124c   : > { %p3047_p12 = pnand %p3046_p11, %p3042_p8 }
0x124e   : > { %3050 = shalt.err (!%p3047_p12)
}
0x124f   : > { %2962 = dma.vmem_to_hbm [thread:$0]  (%p3188_p5), %s2478_s30, 128, %s3639_s14, %s2464_s15  }
0x1250 PF: > { %p2968_p13 = scmp.ge.s32.totalorder %s3085_s20, 2  ;;  %s2489_s0 = sand.u32 1, %s3073_s17  }
0x1251   : > { %s2490_s16 = scalar_lea.sflag [#allocation3], %s2489_s0 }
0x1252   : > { %p2965_p0 = pnand %p2968_p13, %p3192_p6 }
0x1254   : > { %p2966_p1 = pneg %p2965_p0 }
0x1256   : > { %3068 = dma.done.wait (%p2966_p1), %s2490_s16, 128  }
0x1257   : > { %3070 = vsyncadd (%p2966_p1), %s2490_s16, 4294967168  ;;  %p21_p2 = scmp.ge.s32.totalorder %s3175_s23, 4   ;;  %s3691_s17 = smov %s3077_s18 }
0x1258   : > { %s3692_s18 = smov %s3081_s19  ;;  %s3693_s19 = smov %s3186_s26 }
0x1259   : > { %s3694_s20 = smov %s3175_s23  ;;  %23 = sbr.rel (!%p21_p2) target bundleno = 5 (0x5), region = 111 }
0x125e   :  { %2495 = vsyncpa [#allocation3], 1 }
0x125f   :  { %2497 = vsyncpa [#allocation3 + $0x1], 1 }

</bundles_post_ra>
